<compile_context>
chip_gen: v7x
topology: tpu7x:2x2x1
jax: 0.10.0
libtpu: 0.0.40
codegen_flags: <defaults>
</compile_context>

<pallas_src>
import functools
from dataclasses import dataclass
from typing import Optional

import jax
import jax.numpy as jnp
from jax.experimental import pallas as pl
from jax.experimental.pallas import tpu as pltpu


# ----------------------------- config ---------------------------------------

@dataclass
class LayerCfg:
    input_dim: int
    middle_dim: int
    output_dim: int
    upsampling: Optional[int] = None  # pooling is always None in the decoder


def decoder_layer_configs(num_layers, hidden_dims, middle_reduction):
    cfgs = []
    for i, n in enumerate(num_layers):
        for j in range(n):
            handover = i < len(num_layers) - 1 and j == n - 1
            cfgs.append(
                LayerCfg(
                    input_dim=hidden_dims[i],
                    middle_dim=hidden_dims[i] // middle_reduction,
                    output_dim=hidden_dims[i + 1] if handover else hidden_dims[i],
                    upsampling=2 if handover else None,
                )
            )
    return cfgs


# ----------------------------- helpers ---------------------------------------

def _nearest2x_matrix(h, w):
    """(4*h*w, h*w) 0/1 matrix: row-major nearest-neighbour 2x upsample."""
    n_out = 4 * h * w
    p = jnp.arange(n_out)
    src = (p // (2 * w) // 2) * w + (p % (2 * w)) // 2
    return (src[:, None] == jnp.arange(h * w)[None, :]).astype(jnp.float32)


def _shift_rows(a, k):
    """b[i] = a[i + k] if 0 <= i + k < rows else 0 (static k, axis 0)."""
    if k == 0:
        return a
    n = a.shape[0]
    z = jnp.zeros((abs(k),) + a.shape[1:], a.dtype)
    if k > 0:
        return jnp.concatenate([a[k:], z], axis=0)
    return jnp.concatenate([z, a[:n + k]], axis=0)


# ----------------------------- fused layer kernel -----------------------------

def _layer_kernel(h, w, upsample, has_stem, has_head, *refs):
    refs = list(refs)
    x_ref = refs.pop(0)
    if has_stem:
        w0_ref, b0_ref = refs.pop(0), refs.pop(0)
    w1_ref, b1_ref = refs.pop(0), refs.pop(0)
    if upsample:
        u_ref = refs.pop(0)
    w2_ref, b2_ref = refs.pop(0), refs.pop(0)
    w3_ref, b3_ref = refs.pop(0), refs.pop(0)
    if has_head:
        wh_ref, bh_ref = refs.pop(0), refs.pop(0)
    o_ref = refs.pop(0)
    assert not refs

    ho, wo = (2 * h, 2 * w) if upsample else (h, w)
    n_out = ho * wo
    cm = w1_ref.shape[1]

    # ---- (optional) stem 1x1 conv, no relu ---------------------------------
    x = x_ref[...].astype(jnp.float32)                       # (H*W, Cx)
    if has_stem:
        x = jnp.dot(x.astype(jnp.bfloat16), w0_ref[...],
                    preferred_element_type=jnp.float32) + b0_ref[...]
    # x is now the layer input (H*W, Cl), f32 -- also the shortcut source.

    # ---- conv1 (1x1) on relu(x), then relu (commutes with nearest upsample) -
    m = jnp.dot(jnp.maximum(x, 0.0).astype(jnp.bfloat16), w1_ref[...],
                preferred_element_type=jnp.float32) + b1_ref[...]
    m = jnp.maximum(m, 0.0)                                   # (H*W, Cm)

    # ---- nearest-2x upsample of the conv path (0/1 matrix, hoisted) ---------
    if upsample:
        u = u_ref[...]                                         # (N_out, H*W) f32
        m = jnp.dot(u.astype(jnp.bfloat16), m.astype(jnp.bfloat16),
                    preferred_element_type=jnp.float32)
    mb = m.astype(jnp.bfloat16)                                # (N_out, Cm)

    # ---- conv2 (3x3, SAME) via 9 shifted/masked matmuls ---------------------
    # Column-validity masks (once per image; left/right zero padding).  Top /
    # bottom zero padding falls out of the zero-filled row shifts.
    col = jax.lax.broadcasted_iota(jnp.int32, (n_out, 1), 0) % wo
    mask_l = (col >= 1).astype(jnp.bfloat16)
    mask_r = (col <= wo - 2).astype(jnp.bfloat16)

    w2v = w2_ref[...]                                          # (9*Cm, Cm) bf16
    acc = jnp.zeros((n_out, cm), jnp.float32)
    for dy in range(3):
        for dx in range(3):
            tap = _shift_rows(mb, (dy - 1) * wo + (dx - 1))
            if dx == 0:
                tap = tap * mask_l
            elif dx == 2:
                tap = tap * mask_r
            t = 3 * dy + dx
            acc = acc + jnp.dot(tap, w2v[t * cm:(t + 1) * cm, :],
                                preferred_element_type=jnp.float32)
    y = acc + b2_ref[...]                                      # (N_out, Cm)

    # ---- conv3 (1x1) on relu ------------------------------------------------
    z = jnp.dot(jnp.maximum(y, 0.0).astype(jnp.bfloat16), w3_ref[...],
                preferred_element_type=jnp.float32) + b3_ref[...]
    cout = z.shape[-1]

    # ---- shortcut: exact f32 nearest-2x + channel trim/pad, residual in f32 -
    s = x
    if upsample:
        # 0/1 matrix in f32 -> exact duplication; microscopic matmul, so the
        # f32 MXU pass cost is negligible even on v5e.
        s = jnp.dot(u, s, preferred_element_type=jnp.float32)
    cl = s.shape[-1]
    if cl > cout:
        s = s[:, :cout]                                        # PyTorch trim
    elif cl < cout:
        s = jnp.concatenate(
            [s, jnp.zeros((n_out, cout - cl), jnp.float32)], axis=-1)
    hid = z + s                                                # (N_out, Cout) f32

    # ---- (optional) fused decoder head: relu -> 1x1 -> clamp(-1, 1) ---------
    if has_head:
        hv = jnp.dot(jnp.maximum(hid, 0.0).astype(jnp.bfloat16), wh_ref[...],
                     preferred_element_type=jnp.float32) + bh_ref[...]
        hid = jnp.clip(hv, -1.0, 1.0)                          # (N_out, Cf)

    o_ref[...] = hid.astype(o_ref.dtype)


def vqvae_layer_call(x, lp, *, h, w, stem=None, head=None):
    """One fused pallas_call for a whole VQVAELayer (plus optional stem/head).

    x: (B, H*W, Cx) f32 flattened channels-last activations.
    Returns (out, H_out, W_out); out is (B, H_out*W_out, C_out) f32
    (C_out = head channels when the head is fused).
    """
    bsz, n_in, cx = x.shape
    assert n_in == h * w
    cm = lp["w1"].shape[1]
    cout = lp["w3"].shape[1]
    upsample = bool(lp["upsampling"])
    ho, wo = (2 * h, 2 * w) if upsample else (h, w)
    n_out = ho * wo
    c_final = head[0].shape[1] if head is not None else cout

    xmap = lambda b: (b, 0, 0)
    const2 = lambda b: (0, 0)

    args = [x]
    specs = [pl.BlockSpec((None, n_in, cx), xmap)]

    def add_const(a):
        args.append(a)
        specs.append(pl.BlockSpec(a.shape, const2))   # fetched once, VMEM resident

    if stem is not None:
        add_const(stem[0].astype(jnp.bfloat16))
        add_const(stem[1].reshape(1, -1).astype(jnp.float32))
    add_const(lp["w1"].astype(jnp.bfloat16))
    add_const(lp["b1"].reshape(1, -1).astype(jnp.float32))
    if upsample:
        add_const(_nearest2x_matrix(h, w))            # hoisted duplication matrix
    add_const(lp["w2"].reshape(9 * cm, cm).astype(jnp.bfloat16))
    add_const(lp["b2"].reshape(1, -1).astype(jnp.float32))
    add_const(lp["w3"].astype(jnp.bfloat16))
    add_const(lp["b3"].reshape(1, -1).astype(jnp.float32))
    if head is not None:
        add_const(head[0].astype(jnp.bfloat16))
        add_const(head[1].reshape(1, -1).astype(jnp.float32))

    kernel = functools.partial(_layer_kernel, h, w, upsample,
                               stem is not None, head is not None)
    out = pl.pallas_call(
        kernel,
        out_shape=jax.ShapeDtypeStruct((bsz, n_out, c_final), jnp.float32),
        grid_spec=pltpu.PrefetchScalarGridSpec(
            num_scalar_prefetch=0,
            grid=(bsz,),
            in_specs=specs,
            out_specs=pl.BlockSpec((None, n_out, c_final), xmap),
        ),
        compiler_params=pltpu.CompilerParams(
            dimension_semantics=("parallel",),          # >=2 blocks -> both v7x TCs
            vmem_limit_bytes=32 * 1024 * 1024,
        ),
    )(*args)
    return out, ho, wo


# ----------------------------- decoder forward --------------------------------

def vqvae_decoder_forward(latent_ids, params):
    # Embedding gather is glue (XLA); we stay channels-last + flattened.
    emb = jnp.take(params["embeddings"], latent_ids, axis=0)    # (B, H, W, E)
    bsz, h, w, e = emb.shape
    x = emb.reshape(bsz, h * w, e)

    layers = params["layers"]
    if not layers:
        # TODO(synk): layer-free decoder (standalone head) never occurs for
        #             VQVAEDecoderConfig, so it is not implemented here.
        raise NotImplementedError("decoder needs at least one layer")

    for li, lp in enumerate(layers):
        stem = (params["stem_w"], params["stem_b"]) if li == 0 else None
        head = (params["head_w"], params["head_b"]) if li == len(layers) - 1 else None
        x, h, w = vqvae_layer_call(x, lp, h=h, w=w, stem=stem, head=head)

    cf = params["head_w"].shape[1]
    # (B, H*W, Cf) -> NCHW; tiny permute done in the wrapper as per review.
    return x.transpose(0, 2, 1).reshape(bsz, cf, h, w)


# ----------------------------- pure-JAX reference ------------------------------

def _reference_forward(latent_ids, params):
    """Straight jnp/lax translation of VQVAEDecoder.forward (for validation)."""
    def pw(t, w, b):
        return jnp.einsum("bhwc,cd->bhwd", t, w) + b

    def conv3x3(t, w, b):
        return jax.lax.conv_general_dilated(
            t, w, (1, 1), "SAME",
            dimension_numbers=("NHWC", "HWIO", "NHWC")) + b

    def up2(t):
        bb, hh, ww, cc = t.shape
        t = jnp.broadcast_to(t[:, :, None, :, None, :], (bb, hh, 2, ww, 2, cc))
        return t.reshape(bb, 2 * hh, 2 * ww, cc)

    h = pw(jnp.take(params["embeddings"], latent_ids, axis=0),
           params["stem_w"], params["stem_b"])
    for lp in params["layers"]:
        sc = up2(h) if lp["upsampling"] else h
        m = pw(jax.nn.relu(h), lp["w1"], lp["b1"])
        m = up2(jax.nn.relu(m)) if lp["upsampling"] else jax.nn.relu(m)
        m = conv3x3(m, lp["w2"], lp["b2"])
        m = pw(jax.nn.relu(m), lp["w3"], lp["b3"])
        cs, co = sc.shape[-1], m.shape[-1]
        if cs > co:
            sc = sc[..., :co]
        elif cs < co:
            sc = jnp.pad(sc, ((0, 0), (0, 0), (0, 0), (0, co - cs)))
        h = m + sc
    out = pw(jax.nn.relu(h), params["head_w"], params["head_b"])
    return jnp.clip(out, -1.0, 1.0).transpose(0, 3, 1, 2)


# ----------------------------- params ------------------------------------------

def init_params(key, *, num_channels, num_layers, hidden_dims, middle_reduction,
                num_embeddings, embedding_dim):
    cfgs = decoder_layer_configs(num_layers, hidden_dims, middle_reduction)
    keys = iter(jax.random.split(key, 8 + 6 * len(cfgs)))

    def nrm(shape, scale):
        return jax.random.normal(next(keys), shape, jnp.float32) * scale

    params = {
        "embeddings": nrm((num_embeddings, embedding_dim), 1.0),
        "stem_w": nrm((embedding_dim, hidden_dims[0]), embedding_dim ** -0.5),
        "stem_b": nrm((hidden_dims[0],), 0.02),
        "head_w": nrm((hidden_dims[-1], num_channels), hidden_dims[-1] ** -0.5),
        "head_b": nrm((num_channels,), 0.02),
        "layers": [],
    }
    for c in cfgs:
        params["layers"].append({
            "upsampling": c.upsampling,
            "w1": nrm((c.input_dim, c.middle_dim), c.input_dim ** -0.5),
            "b1": nrm((c.middle_dim,), 0.02),
            "w2": nrm((3, 3, c.middle_dim, c.middle_dim), (9 * c.middle_dim) ** -0.5),
            "b2": nrm((c.middle_dim,), 0.02),
            "w3": nrm((c.middle_dim, c.output_dim), c.middle_dim ** -0.5),
            "b3": nrm((c.output_dim,), 0.02),
        })
    return params


# ----------------------------- main ---------------------------------------------

if __name__ == "__main__":
    cfg = dict(
        num_channels=3,
        num_layers=(2, 2),
        hidden_dims=(64, 32),
        middle_reduction=4,
        num_embeddings=128,
        embedding_dim=16,
    )
    key = jax.random.PRNGKey(0)
    kp, ki = jax.random.split(key)
    params = init_params(kp, **cfg)

    latent_ids = jax.random.randint(ki, (2, 4, 4), 0, cfg["num_embeddings"],
                                    dtype=jnp.int32)

    # params are closed over so per-layer flags (ints/None) stay Python-static.
    fwd = jax.jit(lambda ids: vqvae_decoder_forward(ids, params))
    out = jax.block_until_ready(fwd(latent_ids))

    # one 2x upsample (stage-0 handover): spatial 4 -> 8; NCHW output
    assert out.shape == (2, 3, 8, 8), out.shape
    assert out.dtype == jnp.float32
    assert bool(jnp.all(out <= 1.0)) and bool(jnp.all(out >= -1.0))

    # validate against a plain-JAX reference (bf16 MXU operands -> loose tol)
    ref = jax.block_until_ready(_reference_forward(latent_ids, params))
    err = float(jnp.max(jnp.abs(out - ref)))
    assert err < 0.15, f"mismatch vs reference: {err}"

    print("KERNEL_OK")
</pallas_src>

<mosaic_0001>
module attributes {stable_mosaic.version = 11 : i64} {
  func.func @_layer_kernel(%arg0: i32, %arg1: memref<1x16x16xf32, #tpu.memory_space<vmem>>, %arg2: memref<16x64xbf16, #tpu.memory_space<vmem>>, %arg3: memref<1x64xf32, #tpu.memory_space<vmem>>, %arg4: memref<64x16xbf16, #tpu.memory_space<vmem>>, %arg5: memref<1x16xf32, #tpu.memory_space<vmem>>, %arg6: memref<144x16xbf16, #tpu.memory_space<vmem>>, %arg7: memref<1x16xf32, #tpu.memory_space<vmem>>, %arg8: memref<16x64xbf16, #tpu.memory_space<vmem>>, %arg9: memref<1x64xf32, #tpu.memory_space<vmem>>, %arg10: memref<1x16x64xf32, #tpu.memory_space<vmem>>) attributes {dimension_semantics = [#tpu.dimension_semantics<parallel>], iteration_bounds = array<i64: 2>, scalar_prefetch = 0 : i64, scratch_operands = 0 : i64, tpu.core_type = #tpu.core_type<tc>, window_params = [{transform_indices = @transform_0, window_bounds = array<i64: 1, 16, 16>}, {pipeline_mode = #tpu.pipeline_mode<synchronous>, transform_indices = @transform_1, window_bounds = array<i64: 16, 64>}, {pipeline_mode = #tpu.pipeline_mode<synchronous>, transform_indices = @transform_2, window_bounds = array<i64: 1, 64>}, {pipeline_mode = #tpu.pipeline_mode<synchronous>, transform_indices = @transform_3, window_bounds = array<i64: 64, 16>}, {pipeline_mode = #tpu.pipeline_mode<synchronous>, transform_indices = @transform_4, window_bounds = array<i64: 1, 16>}, {pipeline_mode = #tpu.pipeline_mode<synchronous>, transform_indices = @transform_5, window_bounds = array<i64: 144, 16>}, {pipeline_mode = #tpu.pipeline_mode<synchronous>, transform_indices = @transform_6, window_bounds = array<i64: 1, 16>}, {pipeline_mode = #tpu.pipeline_mode<synchronous>, transform_indices = @transform_7, window_bounds = array<i64: 16, 64>}, {pipeline_mode = #tpu.pipeline_mode<synchronous>, transform_indices = @transform_8, window_bounds = array<i64: 1, 64>}, {transform_indices = @transform_9, window_bounds = array<i64: 1, 16, 64>}]} {
    %c0 = arith.constant 0 : index
    %c0_0 = arith.constant 0 : index
    %c0_1 = arith.constant 0 : index
    %0 = vector.load %arg1[%c0, %c0_0, %c0_1] : memref<1x16x16xf32, #tpu.memory_space<vmem>>, vector<1x16x16xf32>
    %1 = vector.shape_cast %0 : vector<1x16x16xf32> to vector<16x16xf32>
    %2 = arith.truncf %1 : vector<16x16xf32> to vector<16x16xbf16>
    %c0_2 = arith.constant 0 : index
    %c0_3 = arith.constant 0 : index
    %3 = vector.load %arg2[%c0_2, %c0_3] : memref<16x64xbf16, #tpu.memory_space<vmem>>, vector<16x64xbf16>
    %cst = arith.constant dense<0.000000e+00> : vector<16x64xf32>
    %4 = tpu.matmul %2, %3, %cst {dimension_numbers = #tpu.dot_dimension_numbers<[1], [0], [0], [1], [0, 0, 1, 1], [], []>} : vector<16x16xbf16>, vector<16x64xbf16>, vector<16x64xf32> -> vector<16x64xf32>
    %c0_4 = arith.constant 0 : index
    %c0_5 = arith.constant 0 : index
    %5 = vector.load %arg3[%c0_4, %c0_5] : memref<1x64xf32, #tpu.memory_space<vmem>>, vector<1x64xf32>
    %6 = vector.broadcast %5 : vector<1x64xf32> to vector<16x64xf32>
    %7 = arith.addf %4, %6 : vector<16x64xf32>
    %cst_6 = arith.constant 0.000000e+00 : f32
    %8 = vector.broadcast %cst_6 : f32 to vector<16x64xf32>
    %9 = arith.maximumf %7, %8 : vector<16x64xf32>
    %10 = arith.truncf %9 : vector<16x64xf32> to vector<16x64xbf16>
    %c0_7 = arith.constant 0 : index
    %c0_8 = arith.constant 0 : index
    %11 = vector.load %arg4[%c0_7, %c0_8] : memref<64x16xbf16, #tpu.memory_space<vmem>>, vector<64x16xbf16>
    %cst_9 = arith.constant dense<0.000000e+00> : vector<16x16xf32>
    %12 = tpu.matmul %10, %11, %cst_9 {dimension_numbers = #tpu.dot_dimension_numbers<[1], [0], [0], [1], [0, 0, 1, 1], [], []>} : vector<16x64xbf16>, vector<64x16xbf16>, vector<16x16xf32> -> vector<16x16xf32>
    %c0_10 = arith.constant 0 : index
    %c0_11 = arith.constant 0 : index
    %13 = vector.load %arg5[%c0_10, %c0_11] : memref<1x16xf32, #tpu.memory_space<vmem>>, vector<1x16xf32>
    %14 = vector.broadcast %13 : vector<1x16xf32> to vector<16x16xf32>
    %15 = arith.addf %12, %14 : vector<16x16xf32>
    %cst_12 = arith.constant 0.000000e+00 : f32
    %16 = vector.broadcast %cst_12 : f32 to vector<16x16xf32>
    %17 = arith.maximumf %15, %16 : vector<16x16xf32>
    %18 = arith.truncf %17 : vector<16x16xf32> to vector<16x16xbf16>
    %19 = tpu.iota {dimensions = array<i32: 0>} : vector<16x1xi32>
    %c4_i32 = arith.constant 4 : i32
    %c0_i32 = arith.constant 0 : i32
    %20 = arith.cmpi eq, %c4_i32, %c0_i32 : i32
    %c1_i32 = arith.constant 1 : i32
    %21 = arith.select %20, %c1_i32, %c4_i32 : i32
    %22 = vector.broadcast %21 : i32 to vector<16x1xi32>
    %23 = arith.remsi %19, %22 : vector<16x1xi32>
    %c0_i32_13 = arith.constant 0 : i32
    %24 = vector.broadcast %c0_i32_13 : i32 to vector<16x1xi32>
    %25 = arith.cmpi ne, %23, %24 : vector<16x1xi32>
    %c0_i32_14 = arith.constant 0 : i32
    %26 = vector.broadcast %c0_i32_14 : i32 to vector<16x1xi32>
    %27 = arith.cmpi slt, %23, %26 : vector<16x1xi32>
    %c0_i32_15 = arith.constant 0 : i32
    %28 = arith.cmpi slt, %21, %c0_i32_15 : i32
    %29 = vector.broadcast %28 : i1 to vector<16x1xi1>
    %30 = vector.broadcast %29 : vector<16x1xi1> to vector<16x1xi1>
    %31 = arith.xori %27, %30 : vector<16x1xi1>
    %32 = arith.andi %31, %25 : vector<16x1xi1>
    %33 = vector.broadcast %21 : i32 to vector<16x1xi32>
    %34 = arith.addi %23, %33 : vector<16x1xi32>
    %35 = arith.select %32, %34, %23 : vector<16x1xi1>, vector<16x1xi32>
    %c1_i32_16 = arith.constant 1 : i32
    %36 = vector.broadcast %c1_i32_16 : i32 to vector<16x1xi32>
    %37 = arith.cmpi sge, %35, %36 : vector<16x1xi32>
    %38 = arith.extui %37 : vector<16x1xi1> to vector<16x1xi32>
    %39 = arith.sitofp %38 : vector<16x1xi32> to vector<16x1xf32>
    %40 = arith.truncf %39 : vector<16x1xf32> to vector<16x1xbf16>
    %c2_i32 = arith.constant 2 : i32
    %41 = vector.broadcast %c2_i32 : i32 to vector<16x1xi32>
    %42 = arith.cmpi sle, %35, %41 : vector<16x1xi32>
    %43 = arith.extui %42 : vector<16x1xi1> to vector<16x1xi32>
    %44 = arith.sitofp %43 : vector<16x1xi32> to vector<16x1xf32>
    %45 = arith.truncf %44 : vector<16x1xf32> to vector<16x1xbf16>
    %c0_17 = arith.constant 0 : index
    %c0_18 = arith.constant 0 : index
    %46 = vector.load %arg6[%c0_17, %c0_18] : memref<144x16xbf16, #tpu.memory_space<vmem>>, vector<144x16xbf16>
    %cst_19 = arith.constant 0.000000e+00 : f32
    %47 = vector.broadcast %cst_19 : f32 to vector<16x16xf32>
    %cst_20 = arith.constant 0.000000e+00 : bf16
    %48 = vector.broadcast %cst_20 : bf16 to vector<5x16xbf16>
    %49 = vector.extract_strided_slice %18 {offsets = [0, 0], sizes = [11, 16], strides = [1, 1]} : vector<16x16xbf16> to vector<11x16xbf16>
    %50 = tpu.concatenate %48, %49 in 0 : vector<5x16xbf16>, vector<11x16xbf16> -> vector<16x16xbf16>
    %51 = vector.broadcast %40 : vector<16x1xbf16> to vector<16x16xbf16>
    %52 = arith.mulf %50, %51 : vector<16x16xbf16>
    %53 = vector.extract_strided_slice %46 {offsets = [0, 0], sizes = [16, 16], strides = [1, 1]} : vector<144x16xbf16> to vector<16x16xbf16>
    %cst_21 = arith.constant dense<0.000000e+00> : vector<16x16xf32>
    %54 = tpu.matmul %52, %53, %cst_21 {dimension_numbers = #tpu.dot_dimension_numbers<[1], [0], [0], [1], [0, 0, 1, 1], [], []>} : vector<16x16xbf16>, vector<16x16xbf16>, vector<16x16xf32> -> vector<16x16xf32>
    %55 = arith.addf %47, %54 : vector<16x16xf32>
    %cst_22 = arith.constant 0.000000e+00 : bf16
    %56 = vector.broadcast %cst_22 : bf16 to vector<4x16xbf16>
    %57 = vector.extract_strided_slice %18 {offsets = [0, 0], sizes = [12, 16], strides = [1, 1]} : vector<16x16xbf16> to vector<12x16xbf16>
    %58 = tpu.concatenate %56, %57 in 0 : vector<4x16xbf16>, vector<12x16xbf16> -> vector<16x16xbf16>
    %59 = vector.extract_strided_slice %46 {offsets = [16, 0], sizes = [16, 16], strides = [1, 1]} : vector<144x16xbf16> to vector<16x16xbf16>
    %cst_23 = arith.constant dense<0.000000e+00> : vector<16x16xf32>
    %60 = tpu.matmul %58, %59, %cst_23 {dimension_numbers = #tpu.dot_dimension_numbers<[1], [0], [0], [1], [0, 0, 1, 1], [], []>} : vector<16x16xbf16>, vector<16x16xbf16>, vector<16x16xf32> -> vector<16x16xf32>
    %61 = arith.addf %55, %60 : vector<16x16xf32>
    %cst_24 = arith.constant 0.000000e+00 : bf16
    %62 = vector.broadcast %cst_24 : bf16 to vector<3x16xbf16>
    %63 = vector.extract_strided_slice %18 {offsets = [0, 0], sizes = [13, 16], strides = [1, 1]} : vector<16x16xbf16> to vector<13x16xbf16>
    %64 = tpu.concatenate %62, %63 in 0 : vector<3x16xbf16>, vector<13x16xbf16> -> vector<16x16xbf16>
    %65 = vector.broadcast %45 : vector<16x1xbf16> to vector<16x16xbf16>
    %66 = arith.mulf %64, %65 : vector<16x16xbf16>
    %67 = vector.extract_strided_slice %46 {offsets = [32, 0], sizes = [16, 16], strides = [1, 1]} : vector<144x16xbf16> to vector<16x16xbf16>
    %cst_25 = arith.constant dense<0.000000e+00> : vector<16x16xf32>
    %68 = tpu.matmul %66, %67, %cst_25 {dimension_numbers = #tpu.dot_dimension_numbers<[1], [0], [0], [1], [0, 0, 1, 1], [], []>} : vector<16x16xbf16>, vector<16x16xbf16>, vector<16x16xf32> -> vector<16x16xf32>
    %69 = arith.addf %61, %68 : vector<16x16xf32>
    %cst_26 = arith.constant 0.000000e+00 : bf16
    %70 = vector.broadcast %cst_26 : bf16 to vector<1x16xbf16>
    %71 = vector.extract_strided_slice %18 {offsets = [0, 0], sizes = [15, 16], strides = [1, 1]} : vector<16x16xbf16> to vector<15x16xbf16>
    %72 = tpu.concatenate %70, %71 in 0 : vector<1x16xbf16>, vector<15x16xbf16> -> vector<16x16xbf16>
    %73 = vector.broadcast %40 : vector<16x1xbf16> to vector<16x16xbf16>
    %74 = arith.mulf %72, %73 : vector<16x16xbf16>
    %75 = vector.extract_strided_slice %46 {offsets = [48, 0], sizes = [16, 16], strides = [1, 1]} : vector<144x16xbf16> to vector<16x16xbf16>
    %cst_27 = arith.constant dense<0.000000e+00> : vector<16x16xf32>
    %76 = tpu.matmul %74, %75, %cst_27 {dimension_numbers = #tpu.dot_dimension_numbers<[1], [0], [0], [1], [0, 0, 1, 1], [], []>} : vector<16x16xbf16>, vector<16x16xbf16>, vector<16x16xf32> -> vector<16x16xf32>
    %77 = arith.addf %69, %76 : vector<16x16xf32>
    %78 = vector.extract_strided_slice %46 {offsets = [64, 0], sizes = [16, 16], strides = [1, 1]} : vector<144x16xbf16> to vector<16x16xbf16>
    %cst_28 = arith.constant dense<0.000000e+00> : vector<16x16xf32>
    %79 = tpu.matmul %18, %78, %cst_28 {dimension_numbers = #tpu.dot_dimension_numbers<[1], [0], [0], [1], [0, 0, 1, 1], [], []>} : vector<16x16xbf16>, vector<16x16xbf16>, vector<16x16xf32> -> vector<16x16xf32>
    %80 = arith.addf %77, %79 : vector<16x16xf32>
    %cst_29 = arith.constant 0.000000e+00 : bf16
    %81 = vector.broadcast %cst_29 : bf16 to vector<1x16xbf16>
    %82 = vector.extract_strided_slice %18 {offsets = [1, 0], sizes = [15, 16], strides = [1, 1]} : vector<16x16xbf16> to vector<15x16xbf16>
    %83 = tpu.concatenate %82, %81 in 0 : vector<15x16xbf16>, vector<1x16xbf16> -> vector<16x16xbf16>
    %84 = vector.broadcast %45 : vector<16x1xbf16> to vector<16x16xbf16>
    %85 = arith.mulf %83, %84 : vector<16x16xbf16>
    %86 = vector.extract_strided_slice %46 {offsets = [80, 0], sizes = [16, 16], strides = [1, 1]} : vector<144x16xbf16> to vector<16x16xbf16>
    %cst_30 = arith.constant dense<0.000000e+00> : vector<16x16xf32>
    %87 = tpu.matmul %85, %86, %cst_30 {dimension_numbers = #tpu.dot_dimension_numbers<[1], [0], [0], [1], [0, 0, 1, 1], [], []>} : vector<16x16xbf16>, vector<16x16xbf16>, vector<16x16xf32> -> vector<16x16xf32>
    %88 = arith.addf %80, %87 : vector<16x16xf32>
    %cst_31 = arith.constant 0.000000e+00 : bf16
    %89 = vector.broadcast %cst_31 : bf16 to vector<3x16xbf16>
    %90 = vector.extract_strided_slice %18 {offsets = [3, 0], sizes = [13, 16], strides = [1, 1]} : vector<16x16xbf16> to vector<13x16xbf16>
    %91 = tpu.concatenate %90, %89 in 0 : vector<13x16xbf16>, vector<3x16xbf16> -> vector<16x16xbf16>
    %92 = vector.broadcast %40 : vector<16x1xbf16> to vector<16x16xbf16>
    %93 = arith.mulf %91, %92 : vector<16x16xbf16>
    %94 = vector.extract_strided_slice %46 {offsets = [96, 0], sizes = [16, 16], strides = [1, 1]} : vector<144x16xbf16> to vector<16x16xbf16>
    %cst_32 = arith.constant dense<0.000000e+00> : vector<16x16xf32>
    %95 = tpu.matmul %93, %94, %cst_32 {dimension_numbers = #tpu.dot_dimension_numbers<[1], [0], [0], [1], [0, 0, 1, 1], [], []>} : vector<16x16xbf16>, vector<16x16xbf16>, vector<16x16xf32> -> vector<16x16xf32>
    %96 = arith.addf %88, %95 : vector<16x16xf32>
    %cst_33 = arith.constant 0.000000e+00 : bf16
    %97 = vector.broadcast %cst_33 : bf16 to vector<4x16xbf16>
    %98 = vector.extract_strided_slice %18 {offsets = [4, 0], sizes = [12, 16], strides = [1, 1]} : vector<16x16xbf16> to vector<12x16xbf16>
    %99 = tpu.concatenate %98, %97 in 0 : vector<12x16xbf16>, vector<4x16xbf16> -> vector<16x16xbf16>
    %100 = vector.extract_strided_slice %46 {offsets = [112, 0], sizes = [16, 16], strides = [1, 1]} : vector<144x16xbf16> to vector<16x16xbf16>
    %cst_34 = arith.constant dense<0.000000e+00> : vector<16x16xf32>
    %101 = tpu.matmul %99, %100, %cst_34 {dimension_numbers = #tpu.dot_dimension_numbers<[1], [0], [0], [1], [0, 0, 1, 1], [], []>} : vector<16x16xbf16>, vector<16x16xbf16>, vector<16x16xf32> -> vector<16x16xf32>
    %102 = arith.addf %96, %101 : vector<16x16xf32>
    %cst_35 = arith.constant 0.000000e+00 : bf16
    %103 = vector.broadcast %cst_35 : bf16 to vector<5x16xbf16>
    %104 = vector.extract_strided_slice %18 {offsets = [5, 0], sizes = [11, 16], strides = [1, 1]} : vector<16x16xbf16> to vector<11x16xbf16>
    %105 = tpu.concatenate %104, %103 in 0 : vector<11x16xbf16>, vector<5x16xbf16> -> vector<16x16xbf16>
    %106 = vector.broadcast %45 : vector<16x1xbf16> to vector<16x16xbf16>
    %107 = arith.mulf %105, %106 : vector<16x16xbf16>
    %108 = vector.extract_strided_slice %46 {offsets = [128, 0], sizes = [16, 16], strides = [1, 1]} : vector<144x16xbf16> to vector<16x16xbf16>
    %cst_36 = arith.constant dense<0.000000e+00> : vector<16x16xf32>
    %109 = tpu.matmul %107, %108, %cst_36 {dimension_numbers = #tpu.dot_dimension_numbers<[1], [0], [0], [1], [0, 0, 1, 1], [], []>} : vector<16x16xbf16>, vector<16x16xbf16>, vector<16x16xf32> -> vector<16x16xf32>
    %110 = arith.addf %102, %109 : vector<16x16xf32>
    %c0_37 = arith.constant 0 : index
    %c0_38 = arith.constant 0 : index
    %111 = vector.load %arg7[%c0_37, %c0_38] : memref<1x16xf32, #tpu.memory_space<vmem>>, vector<1x16xf32>
    %112 = vector.broadcast %111 : vector<1x16xf32> to vector<16x16xf32>
    %113 = arith.addf %110, %112 : vector<16x16xf32>
    %cst_39 = arith.constant 0.000000e+00 : f32
    %114 = vector.broadcast %cst_39 : f32 to vector<16x16xf32>
    %115 = arith.maximumf %113, %114 : vector<16x16xf32>
    %116 = arith.truncf %115 : vector<16x16xf32> to vector<16x16xbf16>
    %c0_40 = arith.constant 0 : index
    %c0_41 = arith.constant 0 : index
    %117 = vector.load %arg8[%c0_40, %c0_41] : memref<16x64xbf16, #tpu.memory_space<vmem>>, vector<16x64xbf16>
    %cst_42 = arith.constant dense<0.000000e+00> : vector<16x64xf32>
    %118 = tpu.matmul %116, %117, %cst_42 {dimension_numbers = #tpu.dot_dimension_numbers<[1], [0], [0], [1], [0, 0, 1, 1], [], []>} : vector<16x16xbf16>, vector<16x64xbf16>, vector<16x64xf32> -> vector<16x64xf32>
    %c0_43 = arith.constant 0 : index
    %c0_44 = arith.constant 0 : index
    %119 = vector.load %arg9[%c0_43, %c0_44] : memref<1x64xf32, #tpu.memory_space<vmem>>, vector<1x64xf32>
    %120 = vector.broadcast %119 : vector<1x64xf32> to vector<16x64xf32>
    %121 = arith.addf %118, %120 : vector<16x64xf32>
    %122 = arith.addf %121, %7 : vector<16x64xf32>
    %c0_45 = arith.constant 0 : index
    %c0_46 = arith.constant 0 : index
    %c0_47 = arith.constant 0 : index
    %123 = vector.load %arg10[%c0_45, %c0_46, %c0_47] : memref<1x16x64xf32, #tpu.memory_space<vmem>>, vector<1x16x64xf32>
    %124 = vector.shape_cast %123 : vector<1x16x64xf32> to vector<16x64xf32>
    %125 = vector.shape_cast %122 : vector<16x64xf32> to vector<1x16x64xf32>
    tpu.vector_store %arg10[%c0_45, %c0_46, %c0_47], %125 {strides = array<i32>} : memref<1x16x64xf32, #tpu.memory_space<vmem>>, vector<1x16x64xf32>,
    return
  }
  func.func @transform_0(%arg0: i32) -> (i32, i32, i32) {
    %c0_i32 = arith.constant 0 : i32
    %c0_i32_0 = arith.constant 0 : i32
    %c0_i32_1 = arith.constant 0 : i32
    return %arg0, %c0_i32, %c0_i32_0 : i32, i32, i32
  }
  func.func @transform_1(%arg0: i32) -> (i32, i32) {
    %c0_i32 = arith.constant 0 : i32
    %c0_i32_0 = arith.constant 0 : i32
    %c0_i32_1 = arith.constant 0 : i32
    return %c0_i32, %c0_i32_0 : i32, i32
  }
  func.func @transform_2(%arg0: i32) -> (i32, i32) {
    %c0_i32 = arith.constant 0 : i32
    %c0_i32_0 = arith.constant 0 : i32
    %c0_i32_1 = arith.constant 0 : i32
    return %c0_i32, %c0_i32_0 : i32, i32
  }
  func.func @transform_3(%arg0: i32) -> (i32, i32) {
    %c0_i32 = arith.constant 0 : i32
    %c0_i32_0 = arith.constant 0 : i32
    %c0_i32_1 = arith.constant 0 : i32
    return %c0_i32, %c0_i32_0 : i32, i32
  }
  func.func @transform_4(%arg0: i32) -> (i32, i32) {
    %c0_i32 = arith.constant 0 : i32
    %c0_i32_0 = arith.constant 0 : i32
    %c0_i32_1 = arith.constant 0 : i32
    return %c0_i32, %c0_i32_0 : i32, i32
  }
  func.func @transform_5(%arg0: i32) -> (i32, i32) {
    %c0_i32 = arith.constant 0 : i32
    %c0_i32_0 = arith.constant 0 : i32
    %c0_i32_1 = arith.constant 0 : i32
    return %c0_i32, %c0_i32_0 : i32, i32
  }
  func.func @transform_6(%arg0: i32) -> (i32, i32) {
    %c0_i32 = arith.constant 0 : i32
    %c0_i32_0 = arith.constant 0 : i32
    %c0_i32_1 = arith.constant 0 : i32
    return %c0_i32, %c0_i32_0 : i32, i32
  }
  func.func @transform_7(%arg0: i32) -> (i32, i32) {
    %c0_i32 = arith.constant 0 : i32
    %c0_i32_0 = arith.constant 0 : i32
    %c0_i32_1 = arith.constant 0 : i32
    return %c0_i32, %c0_i32_0 : i32, i32
  }
  func.func @transform_8(%arg0: i32) -> (i32, i32) {
    %c0_i32 = arith.constant 0 : i32
    %c0_i32_0 = arith.constant 0 : i32
    %c0_i32_1 = arith.constant 0 : i32
    return %c0_i32, %c0_i32_0 : i32, i32
  }
  func.func @transform_9(%arg0: i32) -> (i32, i32, i32) {
    %c0_i32 = arith.constant 0 : i32
    %c0_i32_0 = arith.constant 0 : i32
    %c0_i32_1 = arith.constant 0 : i32
    return %arg0, %c0_i32, %c0_i32_0 : i32, i32, i32
  }
}

module attributes {stable_mosaic.version = 11 : i64} {
  func.func @_layer_kernel(%arg0: i32, %arg1: memref<1x64x32xf32, #tpu.memory_space<vmem>>, %arg2: memref<32x8xbf16, #tpu.memory_space<vmem>>, %arg3: memref<1x8xf32, #tpu.memory_space<vmem>>, %arg4: memref<72x8xbf16, #tpu.memory_space<vmem>>, %arg5: memref<1x8xf32, #tpu.memory_space<vmem>>, %arg6: memref<8x32xbf16, #tpu.memory_space<vmem>>, %arg7: memref<1x32xf32, #tpu.memory_space<vmem>>, %arg8: memref<32x3xbf16, #tpu.memory_space<vmem>>, %arg9: memref<1x3xf32, #tpu.memory_space<vmem>>, %arg10: memref<1x64x3xf32, #tpu.memory_space<vmem>>) attributes {dimension_semantics = [#tpu.dimension_semantics<parallel>], iteration_bounds = array<i64: 2>, scalar_prefetch = 0 : i64, scratch_operands = 0 : i64, tpu.core_type = #tpu.core_type<tc>, window_params = [{transform_indices = @transform_0, window_bounds = array<i64: 1, 64, 32>}, {pipeline_mode = #tpu.pipeline_mode<synchronous>, transform_indices = @transform_1, window_bounds = array<i64: 32, 8>}, {pipeline_mode = #tpu.pipeline_mode<synchronous>, transform_indices = @transform_2, window_bounds = array<i64: 1, 8>}, {pipeline_mode = #tpu.pipeline_mode<synchronous>, transform_indices = @transform_3, window_bounds = array<i64: 72, 8>}, {pipeline_mode = #tpu.pipeline_mode<synchronous>, transform_indices = @transform_4, window_bounds = array<i64: 1, 8>}, {pipeline_mode = #tpu.pipeline_mode<synchronous>, transform_indices = @transform_5, window_bounds = array<i64: 8, 32>}, {pipeline_mode = #tpu.pipeline_mode<synchronous>, transform_indices = @transform_6, window_bounds = array<i64: 1, 32>}, {pipeline_mode = #tpu.pipeline_mode<synchronous>, transform_indices = @transform_7, window_bounds = array<i64: 32, 3>}, {pipeline_mode = #tpu.pipeline_mode<synchronous>, transform_indices = @transform_8, window_bounds = array<i64: 1, 3>}, {transform_indices = @transform_9, window_bounds = array<i64: 1, 64, 3>}]} {
    %c0 = arith.constant 0 : index
    %c0_0 = arith.constant 0 : index
    %c0_1 = arith.constant 0 : index
    %0 = vector.load %arg1[%c0, %c0_0, %c0_1] : memref<1x64x32xf32, #tpu.memory_space<vmem>>, vector<1x64x32xf32>
    %1 = vector.shape_cast %0 : vector<1x64x32xf32> to vector<64x32xf32>
    %cst = arith.constant 0.000000e+00 : f32
    %2 = vector.broadcast %cst : f32 to vector<64x32xf32>
    %3 = arith.maximumf %1, %2 : vector<64x32xf32>
    %4 = arith.truncf %3 : vector<64x32xf32> to vector<64x32xbf16>
    %c0_2 = arith.constant 0 : index
    %c0_3 = arith.constant 0 : index
    %5 = vector.load %arg2[%c0_2, %c0_3] : memref<32x8xbf16, #tpu.memory_space<vmem>>, vector<32x8xbf16>
    %cst_4 = arith.constant dense<0.000000e+00> : vector<64x8xf32>
    %6 = tpu.matmul %4, %5, %cst_4 {dimension_numbers = #tpu.dot_dimension_numbers<[1], [0], [0], [1], [0, 0, 1, 1], [], []>} : vector<64x32xbf16>, vector<32x8xbf16>, vector<64x8xf32> -> vector<64x8xf32>
    %c0_5 = arith.constant 0 : index
    %c0_6 = arith.constant 0 : index
    %7 = vector.load %arg3[%c0_5, %c0_6] : memref<1x8xf32, #tpu.memory_space<vmem>>, vector<1x8xf32>
    %8 = vector.broadcast %7 : vector<1x8xf32> to vector<64x8xf32>
    %9 = arith.addf %6, %8 : vector<64x8xf32>
    %cst_7 = arith.constant 0.000000e+00 : f32
    %10 = vector.broadcast %cst_7 : f32 to vector<64x8xf32>
    %11 = arith.maximumf %9, %10 : vector<64x8xf32>
    %12 = arith.truncf %11 : vector<64x8xf32> to vector<64x8xbf16>
    %13 = tpu.iota {dimensions = array<i32: 0>} : vector<64x1xi32>
    %c8_i32 = arith.constant 8 : i32
    %c0_i32 = arith.constant 0 : i32
    %14 = arith.cmpi eq, %c8_i32, %c0_i32 : i32
    %c1_i32 = arith.constant 1 : i32
    %15 = arith.select %14, %c1_i32, %c8_i32 : i32
    %16 = vector.broadcast %15 : i32 to vector<64x1xi32>
    %17 = arith.remsi %13, %16 : vector<64x1xi32>
    %c0_i32_8 = arith.constant 0 : i32
    %18 = vector.broadcast %c0_i32_8 : i32 to vector<64x1xi32>
    %19 = arith.cmpi ne, %17, %18 : vector<64x1xi32>
    %c0_i32_9 = arith.constant 0 : i32
    %20 = vector.broadcast %c0_i32_9 : i32 to vector<64x1xi32>
    %21 = arith.cmpi slt, %17, %20 : vector<64x1xi32>
    %c0_i32_10 = arith.constant 0 : i32
    %22 = arith.cmpi slt, %15, %c0_i32_10 : i32
    %23 = vector.broadcast %22 : i1 to vector<64x1xi1>
    %24 = vector.broadcast %23 : vector<64x1xi1> to vector<64x1xi1>
    %25 = arith.xori %21, %24 : vector<64x1xi1>
    %26 = arith.andi %25, %19 : vector<64x1xi1>
    %27 = vector.broadcast %15 : i32 to vector<64x1xi32>
    %28 = arith.addi %17, %27 : vector<64x1xi32>
    %29 = arith.select %26, %28, %17 : vector<64x1xi1>, vector<64x1xi32>
    %c1_i32_11 = arith.constant 1 : i32
    %30 = vector.broadcast %c1_i32_11 : i32 to vector<64x1xi32>
    %31 = arith.cmpi sge, %29, %30 : vector<64x1xi32>
    %32 = arith.extui %31 : vector<64x1xi1> to vector<64x1xi32>
    %33 = arith.sitofp %32 : vector<64x1xi32> to vector<64x1xf32>
    %34 = arith.truncf %33 : vector<64x1xf32> to vector<64x1xbf16>
    %c6_i32 = arith.constant 6 : i32
    %35 = vector.broadcast %c6_i32 : i32 to vector<64x1xi32>
    %36 = arith.cmpi sle, %29, %35 : vector<64x1xi32>
    %37 = arith.extui %36 : vector<64x1xi1> to vector<64x1xi32>
    %38 = arith.sitofp %37 : vector<64x1xi32> to vector<64x1xf32>
    %39 = arith.truncf %38 : vector<64x1xf32> to vector<64x1xbf16>
    %c0_12 = arith.constant 0 : index
    %c0_13 = arith.constant 0 : index
    %40 = vector.load %arg4[%c0_12, %c0_13] : memref<72x8xbf16, #tpu.memory_space<vmem>>, vector<72x8xbf16>
    %cst_14 = arith.constant 0.000000e+00 : f32
    %41 = vector.broadcast %cst_14 : f32 to vector<64x8xf32>
    %cst_15 = arith.constant 0.000000e+00 : bf16
    %42 = vector.broadcast %cst_15 : bf16 to vector<9x8xbf16>
    %43 = vector.extract_strided_slice %12 {offsets = [0, 0], sizes = [55, 8], strides = [1, 1]} : vector<64x8xbf16> to vector<55x8xbf16>
    %44 = tpu.concatenate %42, %43 in 0 : vector<9x8xbf16>, vector<55x8xbf16> -> vector<64x8xbf16>
    %45 = vector.broadcast %34 : vector<64x1xbf16> to vector<64x8xbf16>
    %46 = arith.mulf %44, %45 : vector<64x8xbf16>
    %47 = vector.extract_strided_slice %40 {offsets = [0, 0], sizes = [8, 8], strides = [1, 1]} : vector<72x8xbf16> to vector<8x8xbf16>
    %cst_16 = arith.constant dense<0.000000e+00> : vector<64x8xf32>
    %48 = tpu.matmul %46, %47, %cst_16 {dimension_numbers = #tpu.dot_dimension_numbers<[1], [0], [0], [1], [0, 0, 1, 1], [], []>} : vector<64x8xbf16>, vector<8x8xbf16>, vector<64x8xf32> -> vector<64x8xf32>
    %49 = arith.addf %41, %48 : vector<64x8xf32>
    %cst_17 = arith.constant 0.000000e+00 : bf16
    %50 = vector.broadcast %cst_17 : bf16 to vector<8x8xbf16>
    %51 = vector.extract_strided_slice %12 {offsets = [0, 0], sizes = [56, 8], strides = [1, 1]} : vector<64x8xbf16> to vector<56x8xbf16>
    %52 = tpu.concatenate %50, %51 in 0 : vector<8x8xbf16>, vector<56x8xbf16> -> vector<64x8xbf16>
    %53 = vector.extract_strided_slice %40 {offsets = [8, 0], sizes = [8, 8], strides = [1, 1]} : vector<72x8xbf16> to vector<8x8xbf16>
    %cst_18 = arith.constant dense<0.000000e+00> : vector<64x8xf32>
    %54 = tpu.matmul %52, %53, %cst_18 {dimension_numbers = #tpu.dot_dimension_numbers<[1], [0], [0], [1], [0, 0, 1, 1], [], []>} : vector<64x8xbf16>, vector<8x8xbf16>, vector<64x8xf32> -> vector<64x8xf32>
    %55 = arith.addf %49, %54 : vector<64x8xf32>
    %cst_19 = arith.constant 0.000000e+00 : bf16
    %56 = vector.broadcast %cst_19 : bf16 to vector<7x8xbf16>
    %57 = vector.extract_strided_slice %12 {offsets = [0, 0], sizes = [57, 8], strides = [1, 1]} : vector<64x8xbf16> to vector<57x8xbf16>
    %58 = tpu.concatenate %56, %57 in 0 : vector<7x8xbf16>, vector<57x8xbf16> -> vector<64x8xbf16>
    %59 = vector.broadcast %39 : vector<64x1xbf16> to vector<64x8xbf16>
    %60 = arith.mulf %58, %59 : vector<64x8xbf16>
    %61 = vector.extract_strided_slice %40 {offsets = [16, 0], sizes = [8, 8], strides = [1, 1]} : vector<72x8xbf16> to vector<8x8xbf16>
    %cst_20 = arith.constant dense<0.000000e+00> : vector<64x8xf32>
    %62 = tpu.matmul %60, %61, %cst_20 {dimension_numbers = #tpu.dot_dimension_numbers<[1], [0], [0], [1], [0, 0, 1, 1], [], []>} : vector<64x8xbf16>, vector<8x8xbf16>, vector<64x8xf32> -> vector<64x8xf32>
    %63 = arith.addf %55, %62 : vector<64x8xf32>
    %cst_21 = arith.constant 0.000000e+00 : bf16
    %64 = vector.broadcast %cst_21 : bf16 to vector<1x8xbf16>
    %65 = vector.extract_strided_slice %12 {offsets = [0, 0], sizes = [63, 8], strides = [1, 1]} : vector<64x8xbf16> to vector<63x8xbf16>
    %66 = tpu.concatenate %64, %65 in 0 : vector<1x8xbf16>, vector<63x8xbf16> -> vector<64x8xbf16>
    %67 = vector.broadcast %34 : vector<64x1xbf16> to vector<64x8xbf16>
    %68 = arith.mulf %66, %67 : vector<64x8xbf16>
    %69 = vector.extract_strided_slice %40 {offsets = [24, 0], sizes = [8, 8], strides = [1, 1]} : vector<72x8xbf16> to vector<8x8xbf16>
    %cst_22 = arith.constant dense<0.000000e+00> : vector<64x8xf32>
    %70 = tpu.matmul %68, %69, %cst_22 {dimension_numbers = #tpu.dot_dimension_numbers<[1], [0], [0], [1], [0, 0, 1, 1], [], []>} : vector<64x8xbf16>, vector<8x8xbf16>, vector<64x8xf32> -> vector<64x8xf32>
    %71 = arith.addf %63, %70 : vector<64x8xf32>
    %72 = vector.extract_strided_slice %40 {offsets = [32, 0], sizes = [8, 8], strides = [1, 1]} : vector<72x8xbf16> to vector<8x8xbf16>
    %cst_23 = arith.constant dense<0.000000e+00> : vector<64x8xf32>
    %73 = tpu.matmul %12, %72, %cst_23 {dimension_numbers = #tpu.dot_dimension_numbers<[1], [0], [0], [1], [0, 0, 1, 1], [], []>} : vector<64x8xbf16>, vector<8x8xbf16>, vector<64x8xf32> -> vector<64x8xf32>
    %74 = arith.addf %71, %73 : vector<64x8xf32>
    %cst_24 = arith.constant 0.000000e+00 : bf16
    %75 = vector.broadcast %cst_24 : bf16 to vector<1x8xbf16>
    %76 = vector.extract_strided_slice %12 {offsets = [1, 0], sizes = [63, 8], strides = [1, 1]} : vector<64x8xbf16> to vector<63x8xbf16>
    %77 = tpu.concatenate %76, %75 in 0 : vector<63x8xbf16>, vector<1x8xbf16> -> vector<64x8xbf16>
    %78 = vector.broadcast %39 : vector<64x1xbf16> to vector<64x8xbf16>
    %79 = arith.mulf %77, %78 : vector<64x8xbf16>
    %80 = vector.extract_strided_slice %40 {offsets = [40, 0], sizes = [8, 8], strides = [1, 1]} : vector<72x8xbf16> to vector<8x8xbf16>
    %cst_25 = arith.constant dense<0.000000e+00> : vector<64x8xf32>
    %81 = tpu.matmul %79, %80, %cst_25 {dimension_numbers = #tpu.dot_dimension_numbers<[1], [0], [0], [1], [0, 0, 1, 1], [], []>} : vector<64x8xbf16>, vector<8x8xbf16>, vector<64x8xf32> -> vector<64x8xf32>
    %82 = arith.addf %74, %81 : vector<64x8xf32>
    %cst_26 = arith.constant 0.000000e+00 : bf16
    %83 = vector.broadcast %cst_26 : bf16 to vector<7x8xbf16>
    %84 = vector.extract_strided_slice %12 {offsets = [7, 0], sizes = [57, 8], strides = [1, 1]} : vector<64x8xbf16> to vector<57x8xbf16>
    %85 = tpu.concatenate %84, %83 in 0 : vector<57x8xbf16>, vector<7x8xbf16> -> vector<64x8xbf16>
    %86 = vector.broadcast %34 : vector<64x1xbf16> to vector<64x8xbf16>
    %87 = arith.mulf %85, %86 : vector<64x8xbf16>
    %88 = vector.extract_strided_slice %40 {offsets = [48, 0], sizes = [8, 8], strides = [1, 1]} : vector<72x8xbf16> to vector<8x8xbf16>
    %cst_27 = arith.constant dense<0.000000e+00> : vector<64x8xf32>
    %89 = tpu.matmul %87, %88, %cst_27 {dimension_numbers = #tpu.dot_dimension_numbers<[1], [0], [0], [1], [0, 0, 1, 1], [], []>} : vector<64x8xbf16>, vector<8x8xbf16>, vector<64x8xf32> -> vector<64x8xf32>
    %90 = arith.addf %82, %89 : vector<64x8xf32>
    %cst_28 = arith.constant 0.000000e+00 : bf16
    %91 = vector.broadcast %cst_28 : bf16 to vector<8x8xbf16>
    %92 = vector.extract_strided_slice %12 {offsets = [8, 0], sizes = [56, 8], strides = [1, 1]} : vector<64x8xbf16> to vector<56x8xbf16>
    %93 = tpu.concatenate %92, %91 in 0 : vector<56x8xbf16>, vector<8x8xbf16> -> vector<64x8xbf16>
    %94 = vector.extract_strided_slice %40 {offsets = [56, 0], sizes = [8, 8], strides = [1, 1]} : vector<72x8xbf16> to vector<8x8xbf16>
    %cst_29 = arith.constant dense<0.000000e+00> : vector<64x8xf32>
    %95 = tpu.matmul %93, %94, %cst_29 {dimension_numbers = #tpu.dot_dimension_numbers<[1], [0], [0], [1], [0, 0, 1, 1], [], []>} : vector<64x8xbf16>, vector<8x8xbf16>, vector<64x8xf32> -> vector<64x8xf32>
    %96 = arith.addf %90, %95 : vector<64x8xf32>
    %cst_30 = arith.constant 0.000000e+00 : bf16
    %97 = vector.broadcast %cst_30 : bf16 to vector<9x8xbf16>
    %98 = vector.extract_strided_slice %12 {offsets = [9, 0], sizes = [55, 8], strides = [1, 1]} : vector<64x8xbf16> to vector<55x8xbf16>
    %99 = tpu.concatenate %98, %97 in 0 : vector<55x8xbf16>, vector<9x8xbf16> -> vector<64x8xbf16>
    %100 = vector.broadcast %39 : vector<64x1xbf16> to vector<64x8xbf16>
    %101 = arith.mulf %99, %100 : vector<64x8xbf16>
    %102 = vector.extract_strided_slice %40 {offsets = [64, 0], sizes = [8, 8], strides = [1, 1]} : vector<72x8xbf16> to vector<8x8xbf16>
    %cst_31 = arith.constant dense<0.000000e+00> : vector<64x8xf32>
    %103 = tpu.matmul %101, %102, %cst_31 {dimension_numbers = #tpu.dot_dimension_numbers<[1], [0], [0], [1], [0, 0, 1, 1], [], []>} : vector<64x8xbf16>, vector<8x8xbf16>, vector<64x8xf32> -> vector<64x8xf32>
    %104 = arith.addf %96, %103 : vector<64x8xf32>
    %c0_32 = arith.constant 0 : index
    %c0_33 = arith.constant 0 : index
    %105 = vector.load %arg5[%c0_32, %c0_33] : memref<1x8xf32, #tpu.memory_space<vmem>>, vector<1x8xf32>
    %106 = vector.broadcast %105 : vector<1x8xf32> to vector<64x8xf32>
    %107 = arith.addf %104, %106 : vector<64x8xf32>
    %cst_34 = arith.constant 0.000000e+00 : f32
    %108 = vector.broadcast %cst_34 : f32 to vector<64x8xf32>
    %109 = arith.maximumf %107, %108 : vector<64x8xf32>
    %110 = arith.truncf %109 : vector<64x8xf32> to vector<64x8xbf16>
    %c0_35 = arith.constant 0 : index
    %c0_36 = arith.constant 0 : index
    %111 = vector.load %arg6[%c0_35, %c0_36] : memref<8x32xbf16, #tpu.memory_space<vmem>>, vector<8x32xbf16>
    %cst_37 = arith.constant dense<0.000000e+00> : vector<64x32xf32>
    %112 = tpu.matmul %110, %111, %cst_37 {dimension_numbers = #tpu.dot_dimension_numbers<[1], [0], [0], [1], [0, 0, 1, 1], [], []>} : vector<64x8xbf16>, vector<8x32xbf16>, vector<64x32xf32> -> vector<64x32xf32>
    %c0_38 = arith.constant 0 : index
    %c0_39 = arith.constant 0 : index
    %113 = vector.load %arg7[%c0_38, %c0_39] : memref<1x32xf32, #tpu.memory_space<vmem>>, vector<1x32xf32>
    %114 = vector.broadcast %113 : vector<1x32xf32> to vector<64x32xf32>
    %115 = arith.addf %112, %114 : vector<64x32xf32>
    %116 = arith.addf %115, %1 : vector<64x32xf32>
    %cst_40 = arith.constant 0.000000e+00 : f32
    %117 = vector.broadcast %cst_40 : f32 to vector<64x32xf32>
    %118 = arith.maximumf %116, %117 : vector<64x32xf32>
    %119 = arith.truncf %118 : vector<64x32xf32> to vector<64x32xbf16>
    %c0_41 = arith.constant 0 : index
    %c0_42 = arith.constant 0 : index
    %120 = vector.load %arg8[%c0_41, %c0_42] : memref<32x3xbf16, #tpu.memory_space<vmem>>, vector<32x3xbf16>
    %cst_43 = arith.constant dense<0.000000e+00> : vector<64x3xf32>
    %121 = tpu.matmul %119, %120, %cst_43 {dimension_numbers = #tpu.dot_dimension_numbers<[1], [0], [0], [1], [0, 0, 1, 1], [], []>} : vector<64x32xbf16>, vector<32x3xbf16>, vector<64x3xf32> -> vector<64x3xf32>
    %c0_44 = arith.constant 0 : index
    %c0_45 = arith.constant 0 : index
    %122 = vector.load %arg9[%c0_44, %c0_45] : memref<1x3xf32, #tpu.memory_space<vmem>>, vector<1x3xf32>
    %123 = vector.broadcast %122 : vector<1x3xf32> to vector<64x3xf32>
    %124 = arith.addf %121, %123 : vector<64x3xf32>
    %cst_46 = arith.constant -1.000000e+00 : f32
    %cst_47 = arith.constant 1.000000e+00 : f32
    %125 = vector.broadcast %cst_46 : f32 to vector<64x3xf32>
    %126 = arith.maximumf %125, %124 : vector<64x3xf32>
    %127 = vector.broadcast %cst_47 : f32 to vector<64x3xf32>
    %128 = arith.minimumf %127, %126 : vector<64x3xf32>
    %c0_48 = arith.constant 0 : index
    %c0_49 = arith.constant 0 : index
    %c0_50 = arith.constant 0 : index
    %129 = vector.load %arg10[%c0_48, %c0_49, %c0_50] : memref<1x64x3xf32, #tpu.memory_space<vmem>>, vector<1x64x3xf32>
    %130 = vector.shape_cast %129 : vector<1x64x3xf32> to vector<64x3xf32>
    %131 = vector.shape_cast %128 : vector<64x3xf32> to vector<1x64x3xf32>
    tpu.vector_store %arg10[%c0_48, %c0_49, %c0_50], %131 {strides = array<i32>} : memref<1x64x3xf32, #tpu.memory_space<vmem>>, vector<1x64x3xf32>,
    return
  }
  func.func @transform_0(%arg0: i32) -> (i32, i32, i32) {
    %c0_i32 = arith.constant 0 : i32
    %c0_i32_0 = arith.constant 0 : i32
    %c0_i32_1 = arith.constant 0 : i32
    return %arg0, %c0_i32, %c0_i32_0 : i32, i32, i32
  }
  func.func @transform_1(%arg0: i32) -> (i32, i32) {
    %c0_i32 = arith.constant 0 : i32
    %c0_i32_0 = arith.constant 0 : i32
    %c0_i32_1 = arith.constant 0 : i32
    return %c0_i32, %c0_i32_0 : i32, i32
  }
  func.func @transform_2(%arg0: i32) -> (i32, i32) {
    %c0_i32 = arith.constant 0 : i32
    %c0_i32_0 = arith.constant 0 : i32
    %c0_i32_1 = arith.constant 0 : i32
    return %c0_i32, %c0_i32_0 : i32, i32
  }
  func.func @transform_3(%arg0: i32) -> (i32, i32) {
    %c0_i32 = arith.constant 0 : i32
    %c0_i32_0 = arith.constant 0 : i32
    %c0_i32_1 = arith.constant 0 : i32
    return %c0_i32, %c0_i32_0 : i32, i32
  }
  func.func @transform_4(%arg0: i32) -> (i32, i32) {
    %c0_i32 = arith.constant 0 : i32
    %c0_i32_0 = arith.constant 0 : i32
    %c0_i32_1 = arith.constant 0 : i32
    return %c0_i32, %c0_i32_0 : i32, i32
  }
  func.func @transform_5(%arg0: i32) -> (i32, i32) {
    %c0_i32 = arith.constant 0 : i32
    %c0_i32_0 = arith.constant 0 : i32
    %c0_i32_1 = arith.constant 0 : i32
    return %c0_i32, %c0_i32_0 : i32, i32
  }
  func.func @transform_6(%arg0: i32) -> (i32, i32) {
    %c0_i32 = arith.constant 0 : i32
    %c0_i32_0 = arith.constant 0 : i32
    %c0_i32_1 = arith.constant 0 : i32
    return %c0_i32, %c0_i32_0 : i32, i32
  }
  func.func @transform_7(%arg0: i32) -> (i32, i32) {
    %c0_i32 = arith.constant 0 : i32
    %c0_i32_0 = arith.constant 0 : i32
    %c0_i32_1 = arith.constant 0 : i32
    return %c0_i32, %c0_i32_0 : i32, i32
  }
  func.func @transform_8(%arg0: i32) -> (i32, i32) {
    %c0_i32 = arith.constant 0 : i32
    %c0_i32_0 = arith.constant 0 : i32
    %c0_i32_1 = arith.constant 0 : i32
    return %c0_i32, %c0_i32_0 : i32, i32
  }
  func.func @transform_9(%arg0: i32) -> (i32, i32, i32) {
    %c0_i32 = arith.constant 0 : i32
    %c0_i32_0 = arith.constant 0 : i32
    %c0_i32_1 = arith.constant 0 : i32
    return %arg0, %c0_i32, %c0_i32_0 : i32, i32, i32
  }
}

module attributes {stable_mosaic.version = 11 : i64} {
  func.func @_layer_kernel(%arg0: i32, %arg1: memref<1x64x32xf32, #tpu.memory_space<vmem>>, %arg2: memref<32x8xbf16, #tpu.memory_space<vmem>>, %arg3: memref<1x8xf32, #tpu.memory_space<vmem>>, %arg4: memref<72x8xbf16, #tpu.memory_space<vmem>>, %arg5: memref<1x8xf32, #tpu.memory_space<vmem>>, %arg6: memref<8x32xbf16, #tpu.memory_space<vmem>>, %arg7: memref<1x32xf32, #tpu.memory_space<vmem>>, %arg8: memref<1x64x32xf32, #tpu.memory_space<vmem>>) attributes {dimension_semantics = [#tpu.dimension_semantics<parallel>], iteration_bounds = array<i64: 2>, scalar_prefetch = 0 : i64, scratch_operands = 0 : i64, tpu.core_type = #tpu.core_type<tc>, window_params = [{transform_indices = @transform_0, window_bounds = array<i64: 1, 64, 32>}, {pipeline_mode = #tpu.pipeline_mode<synchronous>, transform_indices = @transform_1, window_bounds = array<i64: 32, 8>}, {pipeline_mode = #tpu.pipeline_mode<synchronous>, transform_indices = @transform_2, window_bounds = array<i64: 1, 8>}, {pipeline_mode = #tpu.pipeline_mode<synchronous>, transform_indices = @transform_3, window_bounds = array<i64: 72, 8>}, {pipeline_mode = #tpu.pipeline_mode<synchronous>, transform_indices = @transform_4, window_bounds = array<i64: 1, 8>}, {pipeline_mode = #tpu.pipeline_mode<synchronous>, transform_indices = @transform_5, window_bounds = array<i64: 8, 32>}, {pipeline_mode = #tpu.pipeline_mode<synchronous>, transform_indices = @transform_6, window_bounds = array<i64: 1, 32>}, {transform_indices = @transform_7, window_bounds = array<i64: 1, 64, 32>}]} {
    %c0 = arith.constant 0 : index
    %c0_0 = arith.constant 0 : index
    %c0_1 = arith.constant 0 : index
    %0 = vector.load %arg1[%c0, %c0_0, %c0_1] : memref<1x64x32xf32, #tpu.memory_space<vmem>>, vector<1x64x32xf32>
    %1 = vector.shape_cast %0 : vector<1x64x32xf32> to vector<64x32xf32>
    %cst = arith.constant 0.000000e+00 : f32
    %2 = vector.broadcast %cst : f32 to vector<64x32xf32>
    %3 = arith.maximumf %1, %2 : vector<64x32xf32>
    %4 = arith.truncf %3 : vector<64x32xf32> to vector<64x32xbf16>
    %c0_2 = arith.constant 0 : index
    %c0_3 = arith.constant 0 : index
    %5 = vector.load %arg2[%c0_2, %c0_3] : memref<32x8xbf16, #tpu.memory_space<vmem>>, vector<32x8xbf16>
    %cst_4 = arith.constant dense<0.000000e+00> : vector<64x8xf32>
    %6 = tpu.matmul %4, %5, %cst_4 {dimension_numbers = #tpu.dot_dimension_numbers<[1], [0], [0], [1], [0, 0, 1, 1], [], []>} : vector<64x32xbf16>, vector<32x8xbf16>, vector<64x8xf32> -> vector<64x8xf32>
    %c0_5 = arith.constant 0 : index
    %c0_6 = arith.constant 0 : index
    %7 = vector.load %arg3[%c0_5, %c0_6] : memref<1x8xf32, #tpu.memory_space<vmem>>, vector<1x8xf32>
    %8 = vector.broadcast %7 : vector<1x8xf32> to vector<64x8xf32>
    %9 = arith.addf %6, %8 : vector<64x8xf32>
    %cst_7 = arith.constant 0.000000e+00 : f32
    %10 = vector.broadcast %cst_7 : f32 to vector<64x8xf32>
    %11 = arith.maximumf %9, %10 : vector<64x8xf32>
    %12 = arith.truncf %11 : vector<64x8xf32> to vector<64x8xbf16>
    %13 = tpu.iota {dimensions = array<i32: 0>} : vector<64x1xi32>
    %c8_i32 = arith.constant 8 : i32
    %c0_i32 = arith.constant 0 : i32
    %14 = arith.cmpi eq, %c8_i32, %c0_i32 : i32
    %c1_i32 = arith.constant 1 : i32
    %15 = arith.select %14, %c1_i32, %c8_i32 : i32
    %16 = vector.broadcast %15 : i32 to vector<64x1xi32>
    %17 = arith.remsi %13, %16 : vector<64x1xi32>
    %c0_i32_8 = arith.constant 0 : i32
    %18 = vector.broadcast %c0_i32_8 : i32 to vector<64x1xi32>
    %19 = arith.cmpi ne, %17, %18 : vector<64x1xi32>
    %c0_i32_9 = arith.constant 0 : i32
    %20 = vector.broadcast %c0_i32_9 : i32 to vector<64x1xi32>
    %21 = arith.cmpi slt, %17, %20 : vector<64x1xi32>
    %c0_i32_10 = arith.constant 0 : i32
    %22 = arith.cmpi slt, %15, %c0_i32_10 : i32
    %23 = vector.broadcast %22 : i1 to vector<64x1xi1>
    %24 = vector.broadcast %23 : vector<64x1xi1> to vector<64x1xi1>
    %25 = arith.xori %21, %24 : vector<64x1xi1>
    %26 = arith.andi %25, %19 : vector<64x1xi1>
    %27 = vector.broadcast %15 : i32 to vector<64x1xi32>
    %28 = arith.addi %17, %27 : vector<64x1xi32>
    %29 = arith.select %26, %28, %17 : vector<64x1xi1>, vector<64x1xi32>
    %c1_i32_11 = arith.constant 1 : i32
    %30 = vector.broadcast %c1_i32_11 : i32 to vector<64x1xi32>
    %31 = arith.cmpi sge, %29, %30 : vector<64x1xi32>
    %32 = arith.extui %31 : vector<64x1xi1> to vector<64x1xi32>
    %33 = arith.sitofp %32 : vector<64x1xi32> to vector<64x1xf32>
    %34 = arith.truncf %33 : vector<64x1xf32> to vector<64x1xbf16>
    %c6_i32 = arith.constant 6 : i32
    %35 = vector.broadcast %c6_i32 : i32 to vector<64x1xi32>
    %36 = arith.cmpi sle, %29, %35 : vector<64x1xi32>
    %37 = arith.extui %36 : vector<64x1xi1> to vector<64x1xi32>
    %38 = arith.sitofp %37 : vector<64x1xi32> to vector<64x1xf32>
    %39 = arith.truncf %38 : vector<64x1xf32> to vector<64x1xbf16>
    %c0_12 = arith.constant 0 : index
    %c0_13 = arith.constant 0 : index
    %40 = vector.load %arg4[%c0_12, %c0_13] : memref<72x8xbf16, #tpu.memory_space<vmem>>, vector<72x8xbf16>
    %cst_14 = arith.constant 0.000000e+00 : f32
    %41 = vector.broadcast %cst_14 : f32 to vector<64x8xf32>
    %cst_15 = arith.constant 0.000000e+00 : bf16
    %42 = vector.broadcast %cst_15 : bf16 to vector<9x8xbf16>
    %43 = vector.extract_strided_slice %12 {offsets = [0, 0], sizes = [55, 8], strides = [1, 1]} : vector<64x8xbf16> to vector<55x8xbf16>
    %44 = tpu.concatenate %42, %43 in 0 : vector<9x8xbf16>, vector<55x8xbf16> -> vector<64x8xbf16>
    %45 = vector.broadcast %34 : vector<64x1xbf16> to vector<64x8xbf16>
    %46 = arith.mulf %44, %45 : vector<64x8xbf16>
    %47 = vector.extract_strided_slice %40 {offsets = [0, 0], sizes = [8, 8], strides = [1, 1]} : vector<72x8xbf16> to vector<8x8xbf16>
    %cst_16 = arith.constant dense<0.000000e+00> : vector<64x8xf32>
    %48 = tpu.matmul %46, %47, %cst_16 {dimension_numbers = #tpu.dot_dimension_numbers<[1], [0], [0], [1], [0, 0, 1, 1], [], []>} : vector<64x8xbf16>, vector<8x8xbf16>, vector<64x8xf32> -> vector<64x8xf32>
    %49 = arith.addf %41, %48 : vector<64x8xf32>
    %cst_17 = arith.constant 0.000000e+00 : bf16
    %50 = vector.broadcast %cst_17 : bf16 to vector<8x8xbf16>
    %51 = vector.extract_strided_slice %12 {offsets = [0, 0], sizes = [56, 8], strides = [1, 1]} : vector<64x8xbf16> to vector<56x8xbf16>
    %52 = tpu.concatenate %50, %51 in 0 : vector<8x8xbf16>, vector<56x8xbf16> -> vector<64x8xbf16>
    %53 = vector.extract_strided_slice %40 {offsets = [8, 0], sizes = [8, 8], strides = [1, 1]} : vector<72x8xbf16> to vector<8x8xbf16>
    %cst_18 = arith.constant dense<0.000000e+00> : vector<64x8xf32>
    %54 = tpu.matmul %52, %53, %cst_18 {dimension_numbers = #tpu.dot_dimension_numbers<[1], [0], [0], [1], [0, 0, 1, 1], [], []>} : vector<64x8xbf16>, vector<8x8xbf16>, vector<64x8xf32> -> vector<64x8xf32>
    %55 = arith.addf %49, %54 : vector<64x8xf32>
    %cst_19 = arith.constant 0.000000e+00 : bf16
    %56 = vector.broadcast %cst_19 : bf16 to vector<7x8xbf16>
    %57 = vector.extract_strided_slice %12 {offsets = [0, 0], sizes = [57, 8], strides = [1, 1]} : vector<64x8xbf16> to vector<57x8xbf16>
    %58 = tpu.concatenate %56, %57 in 0 : vector<7x8xbf16>, vector<57x8xbf16> -> vector<64x8xbf16>
    %59 = vector.broadcast %39 : vector<64x1xbf16> to vector<64x8xbf16>
    %60 = arith.mulf %58, %59 : vector<64x8xbf16>
    %61 = vector.extract_strided_slice %40 {offsets = [16, 0], sizes = [8, 8], strides = [1, 1]} : vector<72x8xbf16> to vector<8x8xbf16>
    %cst_20 = arith.constant dense<0.000000e+00> : vector<64x8xf32>
    %62 = tpu.matmul %60, %61, %cst_20 {dimension_numbers = #tpu.dot_dimension_numbers<[1], [0], [0], [1], [0, 0, 1, 1], [], []>} : vector<64x8xbf16>, vector<8x8xbf16>, vector<64x8xf32> -> vector<64x8xf32>
    %63 = arith.addf %55, %62 : vector<64x8xf32>
    %cst_21 = arith.constant 0.000000e+00 : bf16
    %64 = vector.broadcast %cst_21 : bf16 to vector<1x8xbf16>
    %65 = vector.extract_strided_slice %12 {offsets = [0, 0], sizes = [63, 8], strides = [1, 1]} : vector<64x8xbf16> to vector<63x8xbf16>
    %66 = tpu.concatenate %64, %65 in 0 : vector<1x8xbf16>, vector<63x8xbf16> -> vector<64x8xbf16>
    %67 = vector.broadcast %34 : vector<64x1xbf16> to vector<64x8xbf16>
    %68 = arith.mulf %66, %67 : vector<64x8xbf16>
    %69 = vector.extract_strided_slice %40 {offsets = [24, 0], sizes = [8, 8], strides = [1, 1]} : vector<72x8xbf16> to vector<8x8xbf16>
    %cst_22 = arith.constant dense<0.000000e+00> : vector<64x8xf32>
    %70 = tpu.matmul %68, %69, %cst_22 {dimension_numbers = #tpu.dot_dimension_numbers<[1], [0], [0], [1], [0, 0, 1, 1], [], []>} : vector<64x8xbf16>, vector<8x8xbf16>, vector<64x8xf32> -> vector<64x8xf32>
    %71 = arith.addf %63, %70 : vector<64x8xf32>
    %72 = vector.extract_strided_slice %40 {offsets = [32, 0], sizes = [8, 8], strides = [1, 1]} : vector<72x8xbf16> to vector<8x8xbf16>
    %cst_23 = arith.constant dense<0.000000e+00> : vector<64x8xf32>
    %73 = tpu.matmul %12, %72, %cst_23 {dimension_numbers = #tpu.dot_dimension_numbers<[1], [0], [0], [1], [0, 0, 1, 1], [], []>} : vector<64x8xbf16>, vector<8x8xbf16>, vector<64x8xf32> -> vector<64x8xf32>
    %74 = arith.addf %71, %73 : vector<64x8xf32>
    %cst_24 = arith.constant 0.000000e+00 : bf16
    %75 = vector.broadcast %cst_24 : bf16 to vector<1x8xbf16>
    %76 = vector.extract_strided_slice %12 {offsets = [1, 0], sizes = [63, 8], strides = [1, 1]} : vector<64x8xbf16> to vector<63x8xbf16>
    %77 = tpu.concatenate %76, %75 in 0 : vector<63x8xbf16>, vector<1x8xbf16> -> vector<64x8xbf16>
    %78 = vector.broadcast %39 : vector<64x1xbf16> to vector<64x8xbf16>
    %79 = arith.mulf %77, %78 : vector<64x8xbf16>
    %80 = vector.extract_strided_slice %40 {offsets = [40, 0], sizes = [8, 8], strides = [1, 1]} : vector<72x8xbf16> to vector<8x8xbf16>
    %cst_25 = arith.constant dense<0.000000e+00> : vector<64x8xf32>
    %81 = tpu.matmul %79, %80, %cst_25 {dimension_numbers = #tpu.dot_dimension_numbers<[1], [0], [0], [1], [0, 0, 1, 1], [], []>} : vector<64x8xbf16>, vector<8x8xbf16>, vector<64x8xf32> -> vector<64x8xf32>
    %82 = arith.addf %74, %81 : vector<64x8xf32>
    %cst_26 = arith.constant 0.000000e+00 : bf16
    %83 = vector.broadcast %cst_26 : bf16 to vector<7x8xbf16>
    %84 = vector.extract_strided_slice %12 {offsets = [7, 0], sizes = [57, 8], strides = [1, 1]} : vector<64x8xbf16> to vector<57x8xbf16>
    %85 = tpu.concatenate %84, %83 in 0 : vector<57x8xbf16>, vector<7x8xbf16> -> vector<64x8xbf16>
    %86 = vector.broadcast %34 : vector<64x1xbf16> to vector<64x8xbf16>
    %87 = arith.mulf %85, %86 : vector<64x8xbf16>
    %88 = vector.extract_strided_slice %40 {offsets = [48, 0], sizes = [8, 8], strides = [1, 1]} : vector<72x8xbf16> to vector<8x8xbf16>
    %cst_27 = arith.constant dense<0.000000e+00> : vector<64x8xf32>
    %89 = tpu.matmul %87, %88, %cst_27 {dimension_numbers = #tpu.dot_dimension_numbers<[1], [0], [0], [1], [0, 0, 1, 1], [], []>} : vector<64x8xbf16>, vector<8x8xbf16>, vector<64x8xf32> -> vector<64x8xf32>
    %90 = arith.addf %82, %89 : vector<64x8xf32>
    %cst_28 = arith.constant 0.000000e+00 : bf16
    %91 = vector.broadcast %cst_28 : bf16 to vector<8x8xbf16>
    %92 = vector.extract_strided_slice %12 {offsets = [8, 0], sizes = [56, 8], strides = [1, 1]} : vector<64x8xbf16> to vector<56x8xbf16>
    %93 = tpu.concatenate %92, %91 in 0 : vector<56x8xbf16>, vector<8x8xbf16> -> vector<64x8xbf16>
    %94 = vector.extract_strided_slice %40 {offsets = [56, 0], sizes = [8, 8], strides = [1, 1]} : vector<72x8xbf16> to vector<8x8xbf16>
    %cst_29 = arith.constant dense<0.000000e+00> : vector<64x8xf32>
    %95 = tpu.matmul %93, %94, %cst_29 {dimension_numbers = #tpu.dot_dimension_numbers<[1], [0], [0], [1], [0, 0, 1, 1], [], []>} : vector<64x8xbf16>, vector<8x8xbf16>, vector<64x8xf32> -> vector<64x8xf32>
    %96 = arith.addf %90, %95 : vector<64x8xf32>
    %cst_30 = arith.constant 0.000000e+00 : bf16
    %97 = vector.broadcast %cst_30 : bf16 to vector<9x8xbf16>
    %98 = vector.extract_strided_slice %12 {offsets = [9, 0], sizes = [55, 8], strides = [1, 1]} : vector<64x8xbf16> to vector<55x8xbf16>
    %99 = tpu.concatenate %98, %97 in 0 : vector<55x8xbf16>, vector<9x8xbf16> -> vector<64x8xbf16>
    %100 = vector.broadcast %39 : vector<64x1xbf16> to vector<64x8xbf16>
    %101 = arith.mulf %99, %100 : vector<64x8xbf16>
    %102 = vector.extract_strided_slice %40 {offsets = [64, 0], sizes = [8, 8], strides = [1, 1]} : vector<72x8xbf16> to vector<8x8xbf16>
    %cst_31 = arith.constant dense<0.000000e+00> : vector<64x8xf32>
    %103 = tpu.matmul %101, %102, %cst_31 {dimension_numbers = #tpu.dot_dimension_numbers<[1], [0], [0], [1], [0, 0, 1, 1], [], []>} : vector<64x8xbf16>, vector<8x8xbf16>, vector<64x8xf32> -> vector<64x8xf32>
    %104 = arith.addf %96, %103 : vector<64x8xf32>
    %c0_32 = arith.constant 0 : index
    %c0_33 = arith.constant 0 : index
    %105 = vector.load %arg5[%c0_32, %c0_33] : memref<1x8xf32, #tpu.memory_space<vmem>>, vector<1x8xf32>
    %106 = vector.broadcast %105 : vector<1x8xf32> to vector<64x8xf32>
    %107 = arith.addf %104, %106 : vector<64x8xf32>
    %cst_34 = arith.constant 0.000000e+00 : f32
    %108 = vector.broadcast %cst_34 : f32 to vector<64x8xf32>
    %109 = arith.maximumf %107, %108 : vector<64x8xf32>
    %110 = arith.truncf %109 : vector<64x8xf32> to vector<64x8xbf16>
    %c0_35 = arith.constant 0 : index
    %c0_36 = arith.constant 0 : index
    %111 = vector.load %arg6[%c0_35, %c0_36] : memref<8x32xbf16, #tpu.memory_space<vmem>>, vector<8x32xbf16>
    %cst_37 = arith.constant dense<0.000000e+00> : vector<64x32xf32>
    %112 = tpu.matmul %110, %111, %cst_37 {dimension_numbers = #tpu.dot_dimension_numbers<[1], [0], [0], [1], [0, 0, 1, 1], [], []>} : vector<64x8xbf16>, vector<8x32xbf16>, vector<64x32xf32> -> vector<64x32xf32>
    %c0_38 = arith.constant 0 : index
    %c0_39 = arith.constant 0 : index
    %113 = vector.load %arg7[%c0_38, %c0_39] : memref<1x32xf32, #tpu.memory_space<vmem>>, vector<1x32xf32>
    %114 = vector.broadcast %113 : vector<1x32xf32> to vector<64x32xf32>
    %115 = arith.addf %112, %114 : vector<64x32xf32>
    %116 = arith.addf %115, %1 : vector<64x32xf32>
    %c0_40 = arith.constant 0 : index
    %c0_41 = arith.constant 0 : index
    %c0_42 = arith.constant 0 : index
    %117 = vector.load %arg8[%c0_40, %c0_41, %c0_42] : memref<1x64x32xf32, #tpu.memory_space<vmem>>, vector<1x64x32xf32>
    %118 = vector.shape_cast %117 : vector<1x64x32xf32> to vector<64x32xf32>
    %119 = vector.shape_cast %116 : vector<64x32xf32> to vector<1x64x32xf32>
    tpu.vector_store %arg8[%c0_40, %c0_41, %c0_42], %119 {strides = array<i32>} : memref<1x64x32xf32, #tpu.memory_space<vmem>>, vector<1x64x32xf32>,
    return
  }
  func.func @transform_0(%arg0: i32) -> (i32, i32, i32) {
    %c0_i32 = arith.constant 0 : i32
    %c0_i32_0 = arith.constant 0 : i32
    %c0_i32_1 = arith.constant 0 : i32
    return %arg0, %c0_i32, %c0_i32_0 : i32, i32, i32
  }
  func.func @transform_1(%arg0: i32) -> (i32, i32) {
    %c0_i32 = arith.constant 0 : i32
    %c0_i32_0 = arith.constant 0 : i32
    %c0_i32_1 = arith.constant 0 : i32
    return %c0_i32, %c0_i32_0 : i32, i32
  }
  func.func @transform_2(%arg0: i32) -> (i32, i32) {
    %c0_i32 = arith.constant 0 : i32
    %c0_i32_0 = arith.constant 0 : i32
    %c0_i32_1 = arith.constant 0 : i32
    return %c0_i32, %c0_i32_0 : i32, i32
  }
  func.func @transform_3(%arg0: i32) -> (i32, i32) {
    %c0_i32 = arith.constant 0 : i32
    %c0_i32_0 = arith.constant 0 : i32
    %c0_i32_1 = arith.constant 0 : i32
    return %c0_i32, %c0_i32_0 : i32, i32
  }
  func.func @transform_4(%arg0: i32) -> (i32, i32) {
    %c0_i32 = arith.constant 0 : i32
    %c0_i32_0 = arith.constant 0 : i32
    %c0_i32_1 = arith.constant 0 : i32
    return %c0_i32, %c0_i32_0 : i32, i32
  }
  func.func @transform_5(%arg0: i32) -> (i32, i32) {
    %c0_i32 = arith.constant 0 : i32
    %c0_i32_0 = arith.constant 0 : i32
    %c0_i32_1 = arith.constant 0 : i32
    return %c0_i32, %c0_i32_0 : i32, i32
  }
  func.func @transform_6(%arg0: i32) -> (i32, i32) {
    %c0_i32 = arith.constant 0 : i32
    %c0_i32_0 = arith.constant 0 : i32
    %c0_i32_1 = arith.constant 0 : i32
    return %c0_i32, %c0_i32_0 : i32, i32
  }
  func.func @transform_7(%arg0: i32) -> (i32, i32, i32) {
    %c0_i32 = arith.constant 0 : i32
    %c0_i32_0 = arith.constant 0 : i32
    %c0_i32_1 = arith.constant 0 : i32
    return %arg0, %c0_i32, %c0_i32_0 : i32, i32, i32
  }
}

module attributes {stable_mosaic.version = 11 : i64} {
  func.func @_layer_kernel(%arg0: i32, %arg1: memref<1x16x64xf32, #tpu.memory_space<vmem>>, %arg2: memref<64x16xbf16, #tpu.memory_space<vmem>>, %arg3: memref<1x16xf32, #tpu.memory_space<vmem>>, %arg4: memref<64x16xf32, #tpu.memory_space<vmem>>, %arg5: memref<144x16xbf16, #tpu.memory_space<vmem>>, %arg6: memref<1x16xf32, #tpu.memory_space<vmem>>, %arg7: memref<16x32xbf16, #tpu.memory_space<vmem>>, %arg8: memref<1x32xf32, #tpu.memory_space<vmem>>, %arg9: memref<1x64x32xf32, #tpu.memory_space<vmem>>) attributes {dimension_semantics = [#tpu.dimension_semantics<parallel>], iteration_bounds = array<i64: 2>, scalar_prefetch = 0 : i64, scratch_operands = 0 : i64, tpu.core_type = #tpu.core_type<tc>, window_params = [{transform_indices = @transform_0, window_bounds = array<i64: 1, 16, 64>}, {pipeline_mode = #tpu.pipeline_mode<synchronous>, transform_indices = @transform_1, window_bounds = array<i64: 64, 16>}, {pipeline_mode = #tpu.pipeline_mode<synchronous>, transform_indices = @transform_2, window_bounds = array<i64: 1, 16>}, {pipeline_mode = #tpu.pipeline_mode<synchronous>, transform_indices = @transform_3, window_bounds = array<i64: 64, 16>}, {pipeline_mode = #tpu.pipeline_mode<synchronous>, transform_indices = @transform_4, window_bounds = array<i64: 144, 16>}, {pipeline_mode = #tpu.pipeline_mode<synchronous>, transform_indices = @transform_5, window_bounds = array<i64: 1, 16>}, {pipeline_mode = #tpu.pipeline_mode<synchronous>, transform_indices = @transform_6, window_bounds = array<i64: 16, 32>}, {pipeline_mode = #tpu.pipeline_mode<synchronous>, transform_indices = @transform_7, window_bounds = array<i64: 1, 32>}, {transform_indices = @transform_8, window_bounds = array<i64: 1, 64, 32>}]} {
    %c0 = arith.constant 0 : index
    %c0_0 = arith.constant 0 : index
    %c0_1 = arith.constant 0 : index
    %0 = vector.load %arg1[%c0, %c0_0, %c0_1] : memref<1x16x64xf32, #tpu.memory_space<vmem>>, vector<1x16x64xf32>
    %1 = vector.shape_cast %0 : vector<1x16x64xf32> to vector<16x64xf32>
    %cst = arith.constant 0.000000e+00 : f32
    %2 = vector.broadcast %cst : f32 to vector<16x64xf32>
    %3 = arith.maximumf %1, %2 : vector<16x64xf32>
    %4 = arith.truncf %3 : vector<16x64xf32> to vector<16x64xbf16>
    %c0_2 = arith.constant 0 : index
    %c0_3 = arith.constant 0 : index
    %5 = vector.load %arg2[%c0_2, %c0_3] : memref<64x16xbf16, #tpu.memory_space<vmem>>, vector<64x16xbf16>
    %cst_4 = arith.constant dense<0.000000e+00> : vector<16x16xf32>
    %6 = tpu.matmul %4, %5, %cst_4 {dimension_numbers = #tpu.dot_dimension_numbers<[1], [0], [0], [1], [0, 0, 1, 1], [], []>} : vector<16x64xbf16>, vector<64x16xbf16>, vector<16x16xf32> -> vector<16x16xf32>
    %c0_5 = arith.constant 0 : index
    %c0_6 = arith.constant 0 : index
    %7 = vector.load %arg3[%c0_5, %c0_6] : memref<1x16xf32, #tpu.memory_space<vmem>>, vector<1x16xf32>
    %8 = vector.broadcast %7 : vector<1x16xf32> to vector<16x16xf32>
    %9 = arith.addf %6, %8 : vector<16x16xf32>
    %cst_7 = arith.constant 0.000000e+00 : f32
    %10 = vector.broadcast %cst_7 : f32 to vector<16x16xf32>
    %11 = arith.maximumf %9, %10 : vector<16x16xf32>
    %c0_8 = arith.constant 0 : index
    %c0_9 = arith.constant 0 : index
    %12 = vector.load %arg4[%c0_8, %c0_9] : memref<64x16xf32, #tpu.memory_space<vmem>>, vector<64x16xf32>
    %13 = arith.truncf %12 : vector<64x16xf32> to vector<64x16xbf16>
    %14 = arith.truncf %11 : vector<16x16xf32> to vector<16x16xbf16>
    %cst_10 = arith.constant dense<0.000000e+00> : vector<64x16xf32>
    %15 = tpu.matmul %13, %14, %cst_10 {dimension_numbers = #tpu.dot_dimension_numbers<[1], [0], [0], [1], [0, 0, 1, 1], [], []>} : vector<64x16xbf16>, vector<16x16xbf16>, vector<64x16xf32> -> vector<64x16xf32>
    %16 = arith.truncf %15 : vector<64x16xf32> to vector<64x16xbf16>
    %17 = tpu.iota {dimensions = array<i32: 0>} : vector<64x1xi32>
    %c8_i32 = arith.constant 8 : i32
    %c0_i32 = arith.constant 0 : i32
    %18 = arith.cmpi eq, %c8_i32, %c0_i32 : i32
    %c1_i32 = arith.constant 1 : i32
    %19 = arith.select %18, %c1_i32, %c8_i32 : i32
    %20 = vector.broadcast %19 : i32 to vector<64x1xi32>
    %21 = arith.remsi %17, %20 : vector<64x1xi32>
    %c0_i32_11 = arith.constant 0 : i32
    %22 = vector.broadcast %c0_i32_11 : i32 to vector<64x1xi32>
    %23 = arith.cmpi ne, %21, %22 : vector<64x1xi32>
    %c0_i32_12 = arith.constant 0 : i32
    %24 = vector.broadcast %c0_i32_12 : i32 to vector<64x1xi32>
    %25 = arith.cmpi slt, %21, %24 : vector<64x1xi32>
    %c0_i32_13 = arith.constant 0 : i32
    %26 = arith.cmpi slt, %19, %c0_i32_13 : i32
    %27 = vector.broadcast %26 : i1 to vector<64x1xi1>
    %28 = vector.broadcast %27 : vector<64x1xi1> to vector<64x1xi1>
    %29 = arith.xori %25, %28 : vector<64x1xi1>
    %30 = arith.andi %29, %23 : vector<64x1xi1>
    %31 = vector.broadcast %19 : i32 to vector<64x1xi32>
    %32 = arith.addi %21, %31 : vector<64x1xi32>
    %33 = arith.select %30, %32, %21 : vector<64x1xi1>, vector<64x1xi32>
    %c1_i32_14 = arith.constant 1 : i32
    %34 = vector.broadcast %c1_i32_14 : i32 to vector<64x1xi32>
    %35 = arith.cmpi sge, %33, %34 : vector<64x1xi32>
    %36 = arith.extui %35 : vector<64x1xi1> to vector<64x1xi32>
    %37 = arith.sitofp %36 : vector<64x1xi32> to vector<64x1xf32>
    %38 = arith.truncf %37 : vector<64x1xf32> to vector<64x1xbf16>
    %c6_i32 = arith.constant 6 : i32
    %39 = vector.broadcast %c6_i32 : i32 to vector<64x1xi32>
    %40 = arith.cmpi sle, %33, %39 : vector<64x1xi32>
    %41 = arith.extui %40 : vector<64x1xi1> to vector<64x1xi32>
    %42 = arith.sitofp %41 : vector<64x1xi32> to vector<64x1xf32>
    %43 = arith.truncf %42 : vector<64x1xf32> to vector<64x1xbf16>
    %c0_15 = arith.constant 0 : index
    %c0_16 = arith.constant 0 : index
    %44 = vector.load %arg5[%c0_15, %c0_16] : memref<144x16xbf16, #tpu.memory_space<vmem>>, vector<144x16xbf16>
    %cst_17 = arith.constant 0.000000e+00 : f32
    %45 = vector.broadcast %cst_17 : f32 to vector<64x16xf32>
    %cst_18 = arith.constant 0.000000e+00 : bf16
    %46 = vector.broadcast %cst_18 : bf16 to vector<9x16xbf16>
    %47 = vector.extract_strided_slice %16 {offsets = [0, 0], sizes = [55, 16], strides = [1, 1]} : vector<64x16xbf16> to vector<55x16xbf16>
    %48 = tpu.concatenate %46, %47 in 0 : vector<9x16xbf16>, vector<55x16xbf16> -> vector<64x16xbf16>
    %49 = vector.broadcast %38 : vector<64x1xbf16> to vector<64x16xbf16>
    %50 = arith.mulf %48, %49 : vector<64x16xbf16>
    %51 = vector.extract_strided_slice %44 {offsets = [0, 0], sizes = [16, 16], strides = [1, 1]} : vector<144x16xbf16> to vector<16x16xbf16>
    %cst_19 = arith.constant dense<0.000000e+00> : vector<64x16xf32>
    %52 = tpu.matmul %50, %51, %cst_19 {dimension_numbers = #tpu.dot_dimension_numbers<[1], [0], [0], [1], [0, 0, 1, 1], [], []>} : vector<64x16xbf16>, vector<16x16xbf16>, vector<64x16xf32> -> vector<64x16xf32>
    %53 = arith.addf %45, %52 : vector<64x16xf32>
    %cst_20 = arith.constant 0.000000e+00 : bf16
    %54 = vector.broadcast %cst_20 : bf16 to vector<8x16xbf16>
    %55 = vector.extract_strided_slice %16 {offsets = [0, 0], sizes = [56, 16], strides = [1, 1]} : vector<64x16xbf16> to vector<56x16xbf16>
    %56 = tpu.concatenate %54, %55 in 0 : vector<8x16xbf16>, vector<56x16xbf16> -> vector<64x16xbf16>
    %57 = vector.extract_strided_slice %44 {offsets = [16, 0], sizes = [16, 16], strides = [1, 1]} : vector<144x16xbf16> to vector<16x16xbf16>
    %cst_21 = arith.constant dense<0.000000e+00> : vector<64x16xf32>
    %58 = tpu.matmul %56, %57, %cst_21 {dimension_numbers = #tpu.dot_dimension_numbers<[1], [0], [0], [1], [0, 0, 1, 1], [], []>} : vector<64x16xbf16>, vector<16x16xbf16>, vector<64x16xf32> -> vector<64x16xf32>
    %59 = arith.addf %53, %58 : vector<64x16xf32>
    %cst_22 = arith.constant 0.000000e+00 : bf16
    %60 = vector.broadcast %cst_22 : bf16 to vector<7x16xbf16>
    %61 = vector.extract_strided_slice %16 {offsets = [0, 0], sizes = [57, 16], strides = [1, 1]} : vector<64x16xbf16> to vector<57x16xbf16>
    %62 = tpu.concatenate %60, %61 in 0 : vector<7x16xbf16>, vector<57x16xbf16> -> vector<64x16xbf16>
    %63 = vector.broadcast %43 : vector<64x1xbf16> to vector<64x16xbf16>
    %64 = arith.mulf %62, %63 : vector<64x16xbf16>
    %65 = vector.extract_strided_slice %44 {offsets = [32, 0], sizes = [16, 16], strides = [1, 1]} : vector<144x16xbf16> to vector<16x16xbf16>
    %cst_23 = arith.constant dense<0.000000e+00> : vector<64x16xf32>
    %66 = tpu.matmul %64, %65, %cst_23 {dimension_numbers = #tpu.dot_dimension_numbers<[1], [0], [0], [1], [0, 0, 1, 1], [], []>} : vector<64x16xbf16>, vector<16x16xbf16>, vector<64x16xf32> -> vector<64x16xf32>
    %67 = arith.addf %59, %66 : vector<64x16xf32>
    %cst_24 = arith.constant 0.000000e+00 : bf16
    %68 = vector.broadcast %cst_24 : bf16 to vector<1x16xbf16>
    %69 = vector.extract_strided_slice %16 {offsets = [0, 0], sizes = [63, 16], strides = [1, 1]} : vector<64x16xbf16> to vector<63x16xbf16>
    %70 = tpu.concatenate %68, %69 in 0 : vector<1x16xbf16>, vector<63x16xbf16> -> vector<64x16xbf16>
    %71 = vector.broadcast %38 : vector<64x1xbf16> to vector<64x16xbf16>
    %72 = arith.mulf %70, %71 : vector<64x16xbf16>
    %73 = vector.extract_strided_slice %44 {offsets = [48, 0], sizes = [16, 16], strides = [1, 1]} : vector<144x16xbf16> to vector<16x16xbf16>
    %cst_25 = arith.constant dense<0.000000e+00> : vector<64x16xf32>
    %74 = tpu.matmul %72, %73, %cst_25 {dimension_numbers = #tpu.dot_dimension_numbers<[1], [0], [0], [1], [0, 0, 1, 1], [], []>} : vector<64x16xbf16>, vector<16x16xbf16>, vector<64x16xf32> -> vector<64x16xf32>
    %75 = arith.addf %67, %74 : vector<64x16xf32>
    %76 = vector.extract_strided_slice %44 {offsets = [64, 0], sizes = [16, 16], strides = [1, 1]} : vector<144x16xbf16> to vector<16x16xbf16>
    %cst_26 = arith.constant dense<0.000000e+00> : vector<64x16xf32>
    %77 = tpu.matmul %16, %76, %cst_26 {dimension_numbers = #tpu.dot_dimension_numbers<[1], [0], [0], [1], [0, 0, 1, 1], [], []>} : vector<64x16xbf16>, vector<16x16xbf16>, vector<64x16xf32> -> vector<64x16xf32>
    %78 = arith.addf %75, %77 : vector<64x16xf32>
    %cst_27 = arith.constant 0.000000e+00 : bf16
    %79 = vector.broadcast %cst_27 : bf16 to vector<1x16xbf16>
    %80 = vector.extract_strided_slice %16 {offsets = [1, 0], sizes = [63, 16], strides = [1, 1]} : vector<64x16xbf16> to vector<63x16xbf16>
    %81 = tpu.concatenate %80, %79 in 0 : vector<63x16xbf16>, vector<1x16xbf16> -> vector<64x16xbf16>
    %82 = vector.broadcast %43 : vector<64x1xbf16> to vector<64x16xbf16>
    %83 = arith.mulf %81, %82 : vector<64x16xbf16>
    %84 = vector.extract_strided_slice %44 {offsets = [80, 0], sizes = [16, 16], strides = [1, 1]} : vector<144x16xbf16> to vector<16x16xbf16>
    %cst_28 = arith.constant dense<0.000000e+00> : vector<64x16xf32>
    %85 = tpu.matmul %83, %84, %cst_28 {dimension_numbers = #tpu.dot_dimension_numbers<[1], [0], [0], [1], [0, 0, 1, 1], [], []>} : vector<64x16xbf16>, vector<16x16xbf16>, vector<64x16xf32> -> vector<64x16xf32>
    %86 = arith.addf %78, %85 : vector<64x16xf32>
    %cst_29 = arith.constant 0.000000e+00 : bf16
    %87 = vector.broadcast %cst_29 : bf16 to vector<7x16xbf16>
    %88 = vector.extract_strided_slice %16 {offsets = [7, 0], sizes = [57, 16], strides = [1, 1]} : vector<64x16xbf16> to vector<57x16xbf16>
    %89 = tpu.concatenate %88, %87 in 0 : vector<57x16xbf16>, vector<7x16xbf16> -> vector<64x16xbf16>
    %90 = vector.broadcast %38 : vector<64x1xbf16> to vector<64x16xbf16>
    %91 = arith.mulf %89, %90 : vector<64x16xbf16>
    %92 = vector.extract_strided_slice %44 {offsets = [96, 0], sizes = [16, 16], strides = [1, 1]} : vector<144x16xbf16> to vector<16x16xbf16>
    %cst_30 = arith.constant dense<0.000000e+00> : vector<64x16xf32>
    %93 = tpu.matmul %91, %92, %cst_30 {dimension_numbers = #tpu.dot_dimension_numbers<[1], [0], [0], [1], [0, 0, 1, 1], [], []>} : vector<64x16xbf16>, vector<16x16xbf16>, vector<64x16xf32> -> vector<64x16xf32>
    %94 = arith.addf %86, %93 : vector<64x16xf32>
    %cst_31 = arith.constant 0.000000e+00 : bf16
    %95 = vector.broadcast %cst_31 : bf16 to vector<8x16xbf16>
    %96 = vector.extract_strided_slice %16 {offsets = [8, 0], sizes = [56, 16], strides = [1, 1]} : vector<64x16xbf16> to vector<56x16xbf16>
    %97 = tpu.concatenate %96, %95 in 0 : vector<56x16xbf16>, vector<8x16xbf16> -> vector<64x16xbf16>
    %98 = vector.extract_strided_slice %44 {offsets = [112, 0], sizes = [16, 16], strides = [1, 1]} : vector<144x16xbf16> to vector<16x16xbf16>
    %cst_32 = arith.constant dense<0.000000e+00> : vector<64x16xf32>
    %99 = tpu.matmul %97, %98, %cst_32 {dimension_numbers = #tpu.dot_dimension_numbers<[1], [0], [0], [1], [0, 0, 1, 1], [], []>} : vector<64x16xbf16>, vector<16x16xbf16>, vector<64x16xf32> -> vector<64x16xf32>
    %100 = arith.addf %94, %99 : vector<64x16xf32>
    %cst_33 = arith.constant 0.000000e+00 : bf16
    %101 = vector.broadcast %cst_33 : bf16 to vector<9x16xbf16>
    %102 = vector.extract_strided_slice %16 {offsets = [9, 0], sizes = [55, 16], strides = [1, 1]} : vector<64x16xbf16> to vector<55x16xbf16>
    %103 = tpu.concatenate %102, %101 in 0 : vector<55x16xbf16>, vector<9x16xbf16> -> vector<64x16xbf16>
    %104 = vector.broadcast %43 : vector<64x1xbf16> to vector<64x16xbf16>
    %105 = arith.mulf %103, %104 : vector<64x16xbf16>
    %106 = vector.extract_strided_slice %44 {offsets = [128, 0], sizes = [16, 16], strides = [1, 1]} : vector<144x16xbf16> to vector<16x16xbf16>
    %cst_34 = arith.constant dense<0.000000e+00> : vector<64x16xf32>
    %107 = tpu.matmul %105, %106, %cst_34 {dimension_numbers = #tpu.dot_dimension_numbers<[1], [0], [0], [1], [0, 0, 1, 1], [], []>} : vector<64x16xbf16>, vector<16x16xbf16>, vector<64x16xf32> -> vector<64x16xf32>
    %108 = arith.addf %100, %107 : vector<64x16xf32>
    %c0_35 = arith.constant 0 : index
    %c0_36 = arith.constant 0 : index
    %109 = vector.load %arg6[%c0_35, %c0_36] : memref<1x16xf32, #tpu.memory_space<vmem>>, vector<1x16xf32>
    %110 = vector.broadcast %109 : vector<1x16xf32> to vector<64x16xf32>
    %111 = arith.addf %108, %110 : vector<64x16xf32>
    %cst_37 = arith.constant 0.000000e+00 : f32
    %112 = vector.broadcast %cst_37 : f32 to vector<64x16xf32>
    %113 = arith.maximumf %111, %112 : vector<64x16xf32>
    %114 = arith.truncf %113 : vector<64x16xf32> to vector<64x16xbf16>
    %c0_38 = arith.constant 0 : index
    %c0_39 = arith.constant 0 : index
    %115 = vector.load %arg7[%c0_38, %c0_39] : memref<16x32xbf16, #tpu.memory_space<vmem>>, vector<16x32xbf16>
    %cst_40 = arith.constant dense<0.000000e+00> : vector<64x32xf32>
    %116 = tpu.matmul %114, %115, %cst_40 {dimension_numbers = #tpu.dot_dimension_numbers<[1], [0], [0], [1], [0, 0, 1, 1], [], []>} : vector<64x16xbf16>, vector<16x32xbf16>, vector<64x32xf32> -> vector<64x32xf32>
    %c0_41 = arith.constant 0 : index
    %c0_42 = arith.constant 0 : index
    %117 = vector.load %arg8[%c0_41, %c0_42] : memref<1x32xf32, #tpu.memory_space<vmem>>, vector<1x32xf32>
    %118 = vector.broadcast %117 : vector<1x32xf32> to vector<64x32xf32>
    %119 = arith.addf %116, %118 : vector<64x32xf32>
    %cst_43 = arith.constant dense<0.000000e+00> : vector<64x64xf32>
    %120 = tpu.matmul %12, %1, %cst_43 {dimension_numbers = #tpu.dot_dimension_numbers<[1], [0], [0], [1], [0, 0, 1, 1], [], []>} : vector<64x16xf32>, vector<16x64xf32>, vector<64x64xf32> -> vector<64x64xf32>
    %121 = vector.extract_strided_slice %120 {offsets = [0, 0], sizes = [64, 32], strides = [1, 1]} : vector<64x64xf32> to vector<64x32xf32>
    %122 = arith.addf %119, %121 : vector<64x32xf32>
    %c0_44 = arith.constant 0 : index
    %c0_45 = arith.constant 0 : index
    %c0_46 = arith.constant 0 : index
    %123 = vector.load %arg9[%c0_44, %c0_45, %c0_46] : memref<1x64x32xf32, #tpu.memory_space<vmem>>, vector<1x64x32xf32>
    %124 = vector.shape_cast %123 : vector<1x64x32xf32> to vector<64x32xf32>
    %125 = vector.shape_cast %122 : vector<64x32xf32> to vector<1x64x32xf32>
    tpu.vector_store %arg9[%c0_44, %c0_45, %c0_46], %125 {strides = array<i32>} : memref<1x64x32xf32, #tpu.memory_space<vmem>>, vector<1x64x32xf32>,
    return
  }
  func.func @transform_0(%arg0: i32) -> (i32, i32, i32) {
    %c0_i32 = arith.constant 0 : i32
    %c0_i32_0 = arith.constant 0 : i32
    %c0_i32_1 = arith.constant 0 : i32
    return %arg0, %c0_i32, %c0_i32_0 : i32, i32, i32
  }
  func.func @transform_1(%arg0: i32) -> (i32, i32) {
    %c0_i32 = arith.constant 0 : i32
    %c0_i32_0 = arith.constant 0 : i32
    %c0_i32_1 = arith.constant 0 : i32
    return %c0_i32, %c0_i32_0 : i32, i32
  }
  func.func @transform_2(%arg0: i32) -> (i32, i32) {
    %c0_i32 = arith.constant 0 : i32
    %c0_i32_0 = arith.constant 0 : i32
    %c0_i32_1 = arith.constant 0 : i32
    return %c0_i32, %c0_i32_0 : i32, i32
  }
  func.func @transform_3(%arg0: i32) -> (i32, i32) {
    %c0_i32 = arith.constant 0 : i32
    %c0_i32_0 = arith.constant 0 : i32
    %c0_i32_1 = arith.constant 0 : i32
    return %c0_i32, %c0_i32_0 : i32, i32
  }
  func.func @transform_4(%arg0: i32) -> (i32, i32) {
    %c0_i32 = arith.constant 0 : i32
    %c0_i32_0 = arith.constant 0 : i32
    %c0_i32_1 = arith.constant 0 : i32
    return %c0_i32, %c0_i32_0 : i32, i32
  }
  func.func @transform_5(%arg0: i32) -> (i32, i32) {
    %c0_i32 = arith.constant 0 : i32
    %c0_i32_0 = arith.constant 0 : i32
    %c0_i32_1 = arith.constant 0 : i32
    return %c0_i32, %c0_i32_0 : i32, i32
  }
  func.func @transform_6(%arg0: i32) -> (i32, i32) {
    %c0_i32 = arith.constant 0 : i32
    %c0_i32_0 = arith.constant 0 : i32
    %c0_i32_1 = arith.constant 0 : i32
    return %c0_i32, %c0_i32_0 : i32, i32
  }
  func.func @transform_7(%arg0: i32) -> (i32, i32) {
    %c0_i32 = arith.constant 0 : i32
    %c0_i32_0 = arith.constant 0 : i32
    %c0_i32_1 = arith.constant 0 : i32
    return %c0_i32, %c0_i32_0 : i32, i32
  }
  func.func @transform_8(%arg0: i32) -> (i32, i32, i32) {
    %c0_i32 = arith.constant 0 : i32
    %c0_i32_0 = arith.constant 0 : i32
    %c0_i32_1 = arith.constant 0 : i32
    return %arg0, %c0_i32, %c0_i32_0 : i32, i32, i32
  }
}

</mosaic_0001>

<bundles_post_ra>
// kernel: _lambda_.6
= control target key start
LH: loop header
LB: loop body
LE: loop exit
PB: predicated region body
PF: predicated region fallthrough
CT: control target
= control target key end

     0   :  { %s2063_s24 = smov 0   ;;  %s2560_s0 = inlined_call_operand.vmem [shape: f32[2,64,32], index: 0, kind: input, shape index: {}]   ;;  %s2561_s1 = inlined_call_operand.vmem [shape: bf16[32,8], index: 1, kind: input, shape index: {}]   ;;  %s2562_s2 = inlined_call_operand.vmem [shape: f32[1,8], index: 2, kind: input, shape index: {}]   ;;  %s2563_s3 = inlined_call_operand.vmem [shape: bf16[72,8], index: 3, kind: input, shape index: {}]   ;;  %s2564_s4 = inlined_call_operand.vmem [shape: f32[1,8], index: 4, kind: input, shape index: {}]   ;;  %s2565_s5 = inlined_call_operand.vmem [shape: bf16[8,32], index: 5, kind: input, shape index: {}]   ;;  %s2566_s6 = inlined_call_operand.vmem [shape: f32[1,32], index: 6, kind: input, shape index: {}]   ;;  %s2567_s7 = inlined_call_operand.vmem [shape: f32[2,64,32], index: 7, kind: output, shape index: {}]  }
   0x1 LB: > { %s1680_s25 = sadd.s32 4294967295, %s2020_s24   ;;  %p1684_p0 = scmp.ge.s32.totalorder %s2020_s24, 1  ;;  %s2020_s24 = sphi %s2063_s24, %s17_s24  }
   0x2   : > { %p237_p1 = scmp.lt.s32.totalorder %s2020_s24, 3 }
   0x4   : > { %p238_p2 = pnand %p1684_p0, %p237_p1 }
   0x6   : > { %241 = sbr.rel (%p238_p2) target bundleno = 787 (0x313), region = 48 }
   0xd   : > { %v2012_v0 = vld [vmem:[%s2561_s1] sm:$0xff]   ;;  %p269_p3 = scmp.lt.s32.totalorder %s1680_s25, 1  ;;  %v2013_v1 = vld [vmem:[%s2561_s1 + $0x8] sm:$0xff]   ;;  %vm323_vm0 = vcmask 261120   ;;  %vm634_vm1 = vcmask 1043456   ;;  %v413_v28 = vlaneseq  ;;  %v2576_v52 = vmov 0.0  }
   0xe   : > { %1814 = vmatprep.subr.bf16.mxu0 %v2012_v0  ;;  %v575_v22 = vld [vmem:[%s2563_s3 + $0x4] sm:$0xf]  ;;  %v2121_v24 = vld [vmem:[%s2563_s3 + $0xc] sm:$0xf]  ;;  %v574_v25 = vld [vmem:[%s2563_s3] sm:$0xf] }
   0xf   : > { %s2612_s25 = smov (!%p269_p3, %s1680_s25), 1  ;;  %1815 = vmatpush3.bf16.msra.mxu0 %v2012_v0  ;;  %v659_v23 = vsel %vm634_vm1, %v575_v22, 0  ;;  %1996 = vmatprep.subr.msk.bf16.mxu1 %vm634_vm1, %v2121_v24  ;;  %v2130_v26 = vsel %vm634_vm1, %v2121_v24, 0  ;;  %v2137_v27 = vld [vmem:[%s2563_s3 + $0x10] sm:$0xf]  ;;  %v2141_v29 = vshrl.u32 %v413_v28, 7 }
  0x10   : > { %1816 = vmatprep.subr.bf16.mxu0 %v2013_v1  ;;  %s1756_s30 = sshll.u32 %s2612_s25, 6  ;;  %1927 = vmatpush3.bf16.msra.mxu1 %v2130_v26  ;;  %v1689_v40 = vld [vmem:[%s2562_s2] ss:$0 sm:$0xff]  ;;  %vm646_vm6 = vcmask 64512   ;;  %vm583_vm10 = vsmask.f32 4352 }
  0x11   : > { %s273_s10 = scalar_lea.vmem %s2560_s0, %s1756_s30  ;;  %1997 = vmatprep.subr.msk.bf16.mxu1 %vm634_vm1, %v2137_v27  ;;  %v2144_v30 = vadd.s32 16, %v2141_v29  ;;  %v2147_v31 = vadd.s32 24, %v2141_v29  ;;  %v2150_v32 = vadd.s32 8, %v2141_v29  ;;  %v2579_v33 = vand.u32 7, %v2141_v29  ;;  %s278_s19 = scalar_lea.vmem %s2567_s7, %s1756_s30 }
  0x12   : > { %v2085_v2 = vld [vmem:[%s273_s10] sm:$0xff]  ;;  %v2087_v3 = vld [vmem:[%s273_s10 + $0x8] sm:$0xff]  ;;  %v2089_v4 = vld [vmem:[%s273_s10 + $0x10] sm:$0xff]  ;;  %v2157_v37 = vadd.s32 32, %v2141_v29  ;;  %v2160_v38 = vadd.s32 40, %v2141_v29  ;;  %v2163_v39 = vadd.s32 48, %v2141_v29 }
  0x13   : > { %1817 = vmatpush3.bf16.msra.mxu0 %v2013_v1  ;;  %v288_v5 = vmax.f32 %v2085_v2, 0.0  ;;  %v289_v6 = vmax.f32 %v2087_v3, 0.0  ;;  %v2093_v7 = vld [vmem:[%s273_s10 + $0x18] sm:$0xff]  ;;  %v290_v8 = vmax.f32 %v2089_v4, 0.0  ;;  %v2096_v9 = vld [vmem:[%s273_s10 + $0x20] sm:$0xff]  ;;  %v2098_v10 = vld [vmem:[%s273_s10 + $0x28] sm:$0xff] }
  0x14   : > { %2582 = vst [vmem:[#allocation2_spill] sm:$0xff] %v2098_v10  ;;  %v291_v11 = vmax.f32 %v2093_v7, 0.0  ;;  %v292_v12 = vmax.f32 %v2096_v9, 0.0  ;;  %v293_v13 = vmax.f32 %v2098_v10, 0.0  ;;  %v2103_v15 = vld [vmem:[%s273_s10 + $0x30] sm:$0xff]  ;;  %v2105_v16 = vld [vmem:[%s273_s10 + $0x38] sm:$0xff]  ;;  %1992 = vmatprep.subr.msk.bf16.mxu0 %vm634_vm1, %v575_v22 }
  0x15   : > { %v296_v14 = vpack.c.bf16 %v289_v6, %v288_v5  ;;  %2583 = vst [vmem:[#allocation3_spill] sm:$0xff] %v2105_v16  ;;  %v294_v19 = vmax.f32 %v2103_v15, 0.0  ;;  %v295_v20 = vmax.f32 %v2105_v16, 0.0  ;;  %v2575_v34 = vand.u32 7, %v2144_v30 }
  0x16   : > { %v297_v17 = vpack.c.bf16 %v291_v11, %v290_v8  ;;  %v298_v18 = vpack.c.bf16 %v293_v13, %v292_v12  ;;  %v2573_v35 = vand.u32 7, %v2147_v31  ;;  %v2578_v36 = vand.u32 7, %v2150_v32 }
  0x17   : > { %1818 = vmatprep.mubr.msk.bf16.mxu0 %vm323_vm0, %v296_v14  ;;  %v299_v21 = vpack.c.bf16 %v295_v20, %v294_v19  ;;  %vm2170_vm2 = vcmp.ge.s32.totalorder %v2579_v33, 1  ;;  %vm520_vm3 = vcmp.ge.s32.totalorder %v2575_v34, 1  ;;  %v2572_v44 = vand.u32 7, %v2157_v37 }
  0x18   : > { %1819 = vmatmul.mubr.msk.bf16.vlgmr.msra.gmra.mrb[0].mxu0 %vm323_vm0, %v297_v17  ;;  %vm521_vm4 = vcmp.ge.s32.totalorder %v2573_v35, 1  ;;  %vm2180_vm5 = vcmp.ge.s32.totalorder %v2578_v36, 1  ;;  %v2571_v45 = vand.u32 7, %v2160_v38  ;;  %v2187_v46 = vadd.s32 56, %v2141_v29 }
  0x19   : > { %1822 = vmatprep.mubr.msk.bf16.mxu0 %vm323_vm0, %v298_v18  ;;  %1827 = vmatpush3.bf16.msra.mxu0 %v659_v23  ;;  %v2569_v49 = vand.u32 7, %v2163_v39  ;;  %v1698_v53 = vsel %vm520_vm3, 1.0, %v2576_v52  ;;  %v1699_v54 = vsel %vm521_vm4, 1.0, %v2576_v52  ;;  %v1696_v57 = vsel %vm2170_vm2, 1.0, %v2576_v52 }
  0x1a   : > { %1993 = vmatprep.subr.msk.bf16.mxu0 %vm634_vm1, %v574_v25  ;;  %v1697_v58 = vsel %vm2180_vm5, 1.0, %v2576_v52  ;;  %vm522_vm7 = vcmp.ge.s32.totalorder %v2572_v44, 1  ;;  %vm523_vm8 = vcmp.ge.s32.totalorder %v2571_v45, 1  ;;  %v2568_v60 = vand.u32 7, %v2187_v46 }
  0x1b   : > { %v2203_v63 = vpack.c.bf16 %v1699_v54, %v1698_v53  ;;  %vm524_vm9 = vcmp.ge.s32.totalorder %v2569_v49, 1  ;;  %v2207_v5 = vpack.c.bf16 %v1697_v58, %v1696_v57  ;;  %vm623_vm11 = vcmask 1044480  }
  0x1c   : > { %v1700_v8 = vsel %vm522_vm7, 1.0, %v2576_v52  ;;  %v1701_v11 = vsel %vm523_vm8, 1.0, %v2576_v52  ;;  %v739_v14 = vsel %vm634_vm1, %v574_v25, 0  ;;  %vm2218_vm12 = vcmp.ge.s32.totalorder %v2568_v60, 1  ;;  %vm2260_vm15 = vmand %vm623_vm11, %vm583_vm10 }
  0x1d   : > { %v1702_v18 = vsel %vm524_vm9, 1.0, %v2576_v52  ;;  %vm920_vm13 = vsmask.f32 256  ;;  %v1703_v53 = vsel %vm2218_vm12, 1.0, %v2576_v52  ;;  %vm806_vm14 = vsmask.f32 3328 }
  0x1e   : > { %vm1115_vm2 = vsmask.f32 7424  ;;  %v1040_v33 = vsel %vm634_vm1, %v2137_v27, 0  ;;  %v2592_v27 = vand.u32 7, %v2141_v29  ;;  %vm2387_vm5 = vmand %vm634_vm1, %vm806_vm14 }
  0x20   : > { %1823 = vmatmul.mubr.msk.bf16.gmra.mrb[4].mxu0 %vm323_vm0, %v299_v21  ;;  %vm2347_vm3 = vcmp.le.s32.totalorder %v2592_v27, 6  ;;  %v2603_v27 = vand.u32 7, %v2157_v37 }
  0x22   : > { %vm550_vm9 = vcmp.le.s32.totalorder %v2603_v27, 6 }
  0xeb   : > { %v1820_v42 = vpop.f32.mrb[0].mxu0 }
  0xec   : > { %v379_v47 = vadd.f32 %v1820_v42, %v1689_v40  ;;  %v370_v48 = vpop.f32.mrb[1].mxu0 }
  0xed   : > { %v371_v50 = vadd.f32 %v1689_v40, %v370_v48  ;;  %v1821_v51 = vpop.f32.mrb[2].mxu0 }
  0xee   : > { %v382_v55 = vadd.f32 %v1821_v51, %v1689_v40  ;;  %v373_v56 = vpop.f32.mrb[3].mxu0  ;;  %v403_v61 = vmax.f32 %v379_v47, 0.0 }
  0xef   : > { %v374_v59 = vadd.f32 %v1689_v40, %v373_v56  ;;  %v401_v0 = vmax.f32 %v371_v50, 0.0 }
  0xf0   : > { %v404_v62 = vmax.f32 %v382_v55, 0.0 }
  0xf1   : > { %v402_v1 = vmax.f32 %v374_v59, 0.0 }
  0xf2   : > { %v2209_v6 = vpack.c.bf16 %v404_v62, %v403_v61 }
  0xf3   : > { %v2213_v12 = vpack.c.bf16 %v402_v1, %v401_v0  ;;  %v1824_v13 = vpop.f32.mrb[4].mxu0 }
  0xf4   : > { %v2224_v19 = vshrl.u32 %v2209_v6, 16  ;;  %v2227_v20 = vshll.u32 %v2209_v6, 16  ;;  %v636_v21 = vrot.slane %v2209_v6, 4  ;;  %v395_v22 = vadd.f32 %v1824_v13, %v1689_v40  ;;  %v386_v23 = vpop.f32.mrb[5].mxu0 }
  0xf5   : > { %v2231_v25 = vshrl.u32 %v2213_v12, 16  ;;  %v2234_v28 = vshll.u32 %v2213_v12, 16  ;;  %v387_v41 = vadd.f32 %v1689_v40, %v386_v23  ;;  %v1825_v42 = vpop.f32.mrb[6].mxu0  ;;  %v635_v43 = vrot.slane %v2213_v12, 4 }
  0xf6   : > { %v595_v47 = vrot.slane %v2224_v19, 3  ;;  %v598_v48 = vrot.slane %v2227_v20, 4  ;;  %v810_v50 = vrot.slane %v2224_v19, 4  ;;  %v389_v51 = vpop.f32.mrb[7].mxu0  ;;  %v811_v54 = vrot.slane %v2227_v20, 5 }
  0xf7   : > { %v407_v55 = vmax.f32 %v395_v22, 0.0  ;;  %v398_v56 = vadd.f32 %v1825_v42, %v1689_v40  ;;  %v390_v57 = vadd.f32 %v1689_v40, %v389_v51  ;;  %v645_v58 = vsel %vm634_vm1, 0, %v635_v43  ;;  %v2254_v40 = vld [vmem:[%s2563_s3 + $0x8] sm:$0xf] }
  0xf8   : > { %v2246_v59 = vsel %vm634_vm1, %v635_v43, %v636_v21  ;;  %v587_v61 = vrot.slane %v2231_v25, 3  ;;  %v590_v62 = vrot.slane %v2234_v28, 4  ;;  %v405_v0 = vmax.f32 %v387_v41, 0.0  ;;  %1828 = vmatprep.mubr.msk.bf16.mxu0 %vm646_vm6, %v645_v58 }
  0xf9   : > { %v408_v1 = vmax.f32 %v398_v56, 0.0  ;;  %v406_v13 = vmax.f32 %v390_v57, 0.0  ;;  %v599_v17 = vor.u32 %v598_v48, %v595_v47  ;;  %1829 = vmatmul.mubr.msk.bf16.vlgmr.msra.gmra.mrb[8].mxu0 %vm646_vm6, %v2246_v59  ;;  %v923_v41 = vrot.slane %v2224_v19, 7 }
  0xfa   : > { %v591_v22 = vor.u32 %v590_v62, %v587_v61  ;;  %v807_v42 = vrot.slane %v2231_v25, 4  ;;  %v808_v43 = vrot.slane %v2234_v28, 5  ;;  %1837 = vmatpush3.bf16.msra.mxu0 %v739_v14  ;;  %v2271_v51 = vpack.c.bf16 %v1701_v11, %v1700_v8 }
  0xfb   : > { %v2267_v47 = vpack.c.bf16 %v408_v1, %v407_v55  ;;  %v2269_v48 = vpack.c.bf16 %v406_v13, %v405_v0  ;;  %v2570_v56 = vrot.slane %v2231_v25, 7  ;;  %v924_v58 = vor.u32 %v923_v41, %v2227_v20  ;;  %1994 = vmatprep.subr.msk.bf16.mxu0 %vm634_vm1, %v2254_v40 }
  0xfc   : > { %v2275_v57 = vsel %vm583_vm10, %v591_v22, %v599_v17  ;;  %v2278_v61 = vpack.c.bf16 %v1703_v53, %v1702_v18  ;;  %v812_v62 = vor.u32 %v811_v54, %v810_v50  ;;  %v625_v11 = vsel %vm2260_vm15, 0, %v591_v22 }
  0xfd   : > { %v2283_v55 = vshrl.u32 %v2267_v47, 16  ;;  %v602_v14 = vshrl.u32 %v2269_v48, 16  ;;  %v605_v8 = vshll.u32 %v2269_v48, 16  ;;  %v2290_v0 = vshll.u32 %v2267_v47, 16 }
  0xfe   : > { %v638_v18 = vrot.slane %v2269_v48, 4  ;;  %v2574_v50 = vrot.slane %v2267_v47, 4  ;;  %v2294_v53 = vor.u32 %v808_v43, %v807_v42  ;;  %v2299_v54 = vsel %vm920_vm13, %v2570_v56, %v924_v58 }
  0xff   : > { %v926_v1 = vrot.slane %v602_v14, 7  ;;  %v929_v13 = vrot.slane %v2283_v55, 7  ;;  %v1116_v60 = vrot.slane %v2234_v28, 1  ;;  %v626_v42 = vmul.bf16 %v625_v11, %v2207_v5 }
 0x100   : > { %v2304_v22 = vsel %vm634_vm1, %v636_v21, %v638_v18  ;;  %v2309_v49 = vsel %vm634_vm1, %v638_v18, %v2574_v50  ;;  %v604_v43 = vrot.slane %v602_v14, 3  ;;  %v607_v45 = vrot.slane %v605_v8, 4 }
 0x101   : > { %1832 = vmatprep.mubr.msk.bf16.mxu0 %vm646_vm6, %v2304_v22  ;;  %v927_v58 = vor.u32 %v926_v1, %v605_v8  ;;  %v930_v56 = vor.u32 %v929_v13, %v2290_v0  ;;  %v613_v44 = vrot.slane %v2283_v55, 3  ;;  %v1121_v35 = vrot.slane %v605_v8, 1 }
 0x102   : > { %1833 = vmatmul.mubr.msk.bf16.gmra.mrb[12].mxu0 %vm646_vm6, %v2309_v49  ;;  %v616_v21 = vrot.slane %v2290_v0, 4  ;;  %v2321_v18 = vsel %vm806_vm14, %v2294_v53, %v812_v62  ;;  %v608_v50 = vor.u32 %v607_v45, %v604_v43  ;;  %v1117_v34 = vor.u32 %v1116_v60, %v2231_v25  ;;  %v579_v45 = vld [vmem:[%s2563_s3 + $0x14] sm:$0xf] }
 0x103   : > { %1838 = vmatprep.mubr.msk.bf16.mxu0 %vm646_vm6, %v626_v42  ;;  %v928_v11 = vsel %vm920_vm13, %v923_v41, %v927_v58  ;;  %v931_v13 = vsel %vm920_vm13, %v926_v1, %v930_v56  ;;  %v1118_v42 = vrot.slane %v2227_v20, 1  ;;  %v814_v41 = vrot.slane %v602_v14, 4 }
 0x104   : > { %v941_v52 = vmul.bf16 %v928_v11, %v2271_v51  ;;  %v942_v36 = vmul.bf16 %v931_v13, %v2278_v61  ;;  %v2331_v10 = vor.u32 %v616_v21, %v613_v44  ;;  %v2334_v16 = vsel %vm583_vm10, %v599_v17, %v608_v50 }
 0x105   : > { %v815_v58 = vrot.slane %v605_v8, 5  ;;  %v2595_v20 = vand.u32 7, %v2150_v32  ;;  %v845_v56 = vsel %vm634_vm1, %v2254_v40, 0  ;;  %v1119_v8 = vsel %vm1115_vm2, %v1117_v34, %v1118_v42 }
 0x106   : > { %1862 = vmatprep.mubr.msk.bf16.mxu1 %vm646_vm6, %v941_v52  ;;  %v2343_v60 = vsel %vm583_vm10, %v608_v50, %v2331_v10  ;;  %v1123_v52 = vor.u32 %v1121_v35, %v602_v14  ;;  %v1120_v29 = vor.u32 %v1118_v42, %v2224_v19  ;;  %v627_v1 = vmul.bf16 %v2275_v57, %v2203_v63 }
 0x107   : > { %vm2353_vm4 = vcmp.le.s32.totalorder %v2595_v20, 6  ;;  %1863 = vmatmul.mubr.msk.bf16.vlgmr.msra.gmra.mrb[0].mxu1 %vm646_vm6, %v942_v36  ;;  %v816_v50 = vor.u32 %v815_v58, %v814_v41  ;;  %v1124_v32 = vrot.slane %v2290_v0, 1  ;;  %v818_v14 = vrot.slane %v2283_v55, 4 }
 0x108   : > { %1867 = vmatpush3.bf16.msra.mxu1 %v1040_v33  ;;  %1868 = vmatprep.mubr.msk.bf16.mxu1 %vm646_vm6, %v2213_v12  ;;  %v819_v36 = vrot.slane %v2290_v0, 5  ;;  %v628_v40 = vmul.bf16 %v2334_v16, %v2271_v51  ;;  %v1122_v34 = vsel %vm1115_vm2, %v1120_v29, %v1121_v35  ;;  %v2598_v33 = vmov 0.0  }
 0x109   : > { %1998 = vmatprep.subr.msk.bf16.mxu1 %vm634_vm1, %v579_v45  ;;  %v2374_v19 = vsel %vm806_vm14, %v812_v62, %v816_v50  ;;  %v1704_v12 = vsel %vm2347_vm3, 1.0, %v2598_v33  ;;  %v1705_v0 = vsel %vm2353_vm4, 1.0, %v2598_v33  ;;  %v1125_v43 = vsel %vm1115_vm2, %v1123_v52, %v1124_v32 }
 0x10a   : > { %1839 = vmatmul.mubr.msk.bf16.vlgmr.msra.gmra.mrb[8].mxu0 %vm646_vm6, %v627_v1  ;;  %v2391_v62 = vor.u32 %v819_v36, %v818_v14  ;;  %v1151_v21 = vsel %vm634_vm1, %v579_v45, 0  ;;  %v2396_v11 = vpack.c.bf16 %v1705_v0, %v1704_v12  ;;  %v2601_v42 = vand.u32 7, %v2144_v30 }
 0x10b   : > { %1842 = vmatprep.mubr.msk.bf16.mxu0 %vm646_vm6, %v628_v40  ;;  %1847 = vmatpush3.bf16.msra.mxu0 %v845_v56  ;;  %v2602_v41 = vand.u32 7, %v2147_v31  ;;  %v827_v58 = vsel %vm2387_vm5, 0, %v2294_v53  ;;  %v2604_v30 = vand.u32 7, %v2160_v38  ;;  %v629_v31 = vmul.bf16 %v2343_v60, %v2278_v61 }
 0x10c   : > { %1995 = vmatprep.subr.msk.bf16.mxu0 %vm634_vm1, %v2121_v24  ;;  %v2400_v13 = vsel %vm806_vm14, %v816_v50, %v2391_v62  ;;  %vm548_vm7 = vcmp.le.s32.totalorder %v2601_v42, 6  ;;  %v580_v24 = vld [vmem:[%s2563_s3 + $0x18] sm:$0xf]  ;;  %v1401_v45 = vsel %vm2387_vm5, %v2391_v62, 0  ;;  %v828_v37 = vmul.bf16 %v827_v58, %v2396_v11 }
 0x10d   : > { %vm549_vm8 = vcmp.le.s32.totalorder %v2602_v41, 6  ;;  %vm551_vm10 = vcmp.le.s32.totalorder %v2604_v30, 6  ;;  %v1706_v53 = vsel %vm548_vm7, 1.0, %v2598_v33  ;;  %v1708_v38 = vsel %vm550_vm9, 1.0, %v2598_v33 }
 0x10e   : > { %v1707_v44 = vsel %vm549_vm8, 1.0, %v2598_v33  ;;  %v1134_v17 = vmul.bf16 %v1119_v8, %v2396_v11  ;;  %v2605_v52 = vand.u32 7, %v2163_v39  ;;  %v2606_v56 = vand.u32 7, %v2187_v46 }
 0x10f   : > { %1869 = vmatmul.mubr.msk.bf16.vlgmr.msra.gmra.mrb[4].mxu1 %vm646_vm6, %v2209_v6  ;;  %v1709_v6 = vsel %vm551_vm10, 1.0, %v2598_v33  ;;  %vm936_vm14 = vcmask 1040384   ;;  %v2607_v46 = vrot.slane %v2231_v25, 7  ;;  %vm1131_vm4 = vcmask 1047552   ;;  %v581_v25 = vld [vmem:[%s2563_s3 + $0x1c] sm:$0xf] }
 0x110   : > { %1877 = vmatpush3.bf16.msra.mxu1 %v1151_v21  ;;  %1872 = vmatprep.mubr.msk.bf16.mxu1 %vm646_vm6, %v2269_v48  ;;  %v2433_v48 = vpack.c.bf16 %v1707_v44, %v1706_v53  ;;  %v2435_v20 = vpack.c.bf16 %v1709_v6, %v1708_v38  ;;  %vm552_vm11 = vcmp.le.s32.totalorder %v2605_v52, 6  ;;  %vm553_vm12 = vcmp.le.s32.totalorder %v2606_v56, 6  ;;  %vm937_vm3 = vmand %vm936_vm14, %vm920_vm13 }
 0x111   : > { %1999 = vmatprep.subr.msk.bf16.mxu1 %vm634_vm1, %v580_v24  ;;  %v1710_v8 = vsel %vm552_vm11, 1.0, %v2598_v33  ;;  %v1711_v39 = vsel %vm553_vm12, 1.0, %v2598_v33  ;;  %v922_v1 = vor.u32 %v2607_v46, %v2234_v28  ;;  %v1245_v40 = vsel %vm634_vm1, %v580_v24, 0  ;;  %vm1132_vm13 = vmand %vm1131_vm4, %vm1115_vm2  ;;  %v1748_v24 = vld [vmem:[%s2564_s4] ss:$0 sm:$0xff] }
 0x112   : > { %1843 = vmatmul.mubr.msk.bf16.gmra.mrb[12].mxu0 %vm646_vm6, %v629_v31  ;;  %v829_v29 = vmul.bf16 %v2321_v18, %v2433_v48  ;;  %v830_v50 = vmul.bf16 %v2374_v19, %v2435_v20  ;;  %v573_v14 = vpack.c.bf16 %v1711_v39, %v1710_v8  ;;  %v1135_v36 = vmul.bf16 %v1122_v34, %v2433_v48 }
 0x113   : > { %1848 = vmatprep.mubr.msk.bf16.mxu0 %vm646_vm6, %v828_v37  ;;  %v1136_v33 = vmul.bf16 %v1125_v43, %v2435_v20  ;;  %v938_v12 = vsel %vm937_vm3, 0, %v922_v1  ;;  %v1126_v0 = vor.u32 %v1124_v32, %v2283_v55  ;;  %v1228_v34 = vmul.bf16 %v2275_v57, %v2207_v5 }
 0x114   : > { %v939_v28 = vmul.bf16 %v938_v12, %v2207_v5  ;;  %v940_v43 = vmul.bf16 %v2299_v54, %v2203_v63  ;;  %v1229_v21 = vmul.bf16 %v2334_v16, %v2203_v63  ;;  %v1325_v42 = vsel %vm634_vm1, %v581_v25, 0  ;;  %v582_v5 = vld [vmem:[%s2563_s3 + $0x20] sm:$0xf] }
 0x115   : > { %v1133_v55 = vsel %vm1132_vm13, %v1126_v0, 0  ;;  %v1230_v41 = vmul.bf16 %v2343_v60, %v2271_v51  ;;  %v1227_v16 = vsel %vm2260_vm15, %v2331_v10, 0  ;;  %v1419_v51 = vsel %vm634_vm1, %v582_v5, 0 }
 0x116   : > { %v1137_v32 = vmul.bf16 %v1133_v55, %v573_v14  ;;  %v1231_v63 = vmul.bf16 %v1227_v16, %v2278_v61  ;;  %v2608_v57 = vrot.slane %v2267_v47, 4  ;;  %v1402_v23 = vmul.bf16 %v2321_v18, %v2396_v11 }
 0x117   : > { %1873 = vmatmul.mubr.msk.bf16.gmra.mrb[0].mxu1 %vm646_vm6, %v2267_v47  ;;  %v1404_v61 = vmul.bf16 %v2400_v13, %v2435_v20  ;;  %v1521_v47 = vld [vmem:[%s2565_s5] sm:$0xf] }
 0x118   : > { %1878 = vmatprep.mubr.msk.bf16.mxu1 %vm646_vm6, %v1134_v17  ;;  %v1321_v10 = vsel %vm634_vm1, %v2608_v57, 0  ;;  %v1542_v54 = vsel %vm634_vm1, %v1521_v47, 0 }
 0x11a   : > { %1849 = vmatmul.mubr.msk.bf16.vlgmr.msra.gmra.mrb[8].mxu0 %vm646_vm6, %v829_v29 }
 0x11b   : > { %1852 = vmatprep.mubr.msk.bf16.mxu0 %vm646_vm6, %v830_v50  ;;  %1857 = vmatpush3.bf16.msra.mxu0 %v2130_v26  ;;  %v831_v26 = vmul.bf16 %v2400_v13, %v573_v14 }
 0x11c   : > { %2002 = vmatprep.subr.msk.bf16.mxu0 %vm634_vm1, %v1521_v47 }
 0x11f   : > { %1879 = vmatmul.mubr.msk.bf16.vlgmr.msra.gmra.mrb[4].mxu1 %vm646_vm6, %v1135_v36 }
 0x120   : > { %1887 = vmatpush3.bf16.msra.mxu1 %v1245_v40  ;;  %1882 = vmatprep.mubr.msk.bf16.mxu1 %vm646_vm6, %v1136_v33 }
 0x121   : > { %2000 = vmatprep.subr.msk.bf16.mxu1 %vm634_vm1, %v581_v25 }
 0x122   : > { %1853 = vmatmul.mubr.msk.bf16.gmra.mrb[12].mxu0 %vm646_vm6, %v831_v26 }
 0x123   : > { %1858 = vmatprep.mubr.msk.bf16.mxu0 %vm646_vm6, %v939_v28 }
 0x127   : > { %1883 = vmatmul.mubr.msk.bf16.gmra.mrb[0].mxu1 %vm646_vm6, %v1137_v32 }
 0x128   : > { %1888 = vmatprep.mubr.msk.bf16.mxu1 %vm646_vm6, %v1228_v34 }
 0x12a   : > { %1859 = vmatmul.mubr.msk.bf16.vlgmr.msra.gmra.mrb[8].mxu0 %vm646_vm6, %v940_v43 }
 0x12b   : > { %1917 = vmatpush3.bf16.msra.mxu0 %v1542_v54 }
 0x12f   : > { %1889 = vmatmul.mubr.msk.bf16.vlgmr.msra.gmra.mrb[4].mxu1 %vm646_vm6, %v1229_v21 }
 0x130   : > { %1897 = vmatpush3.bf16.msra.mxu1 %v1325_v42  ;;  %1892 = vmatprep.mubr.msk.bf16.mxu1 %vm646_vm6, %v1230_v41  ;;  %v1749_v41 = vld [vmem:[%s2566_s6] ss:$0 sm:$0xff] }
 0x131   : > { %2001 = vmatprep.subr.msk.bf16.mxu1 %vm634_vm1, %v582_v5 }
 0x137   : > { %1893 = vmatmul.mubr.msk.bf16.gmra.mrb[0].mxu1 %vm646_vm6, %v1231_v63 }
 0x138   : > { %1898 = vmatprep.mubr.msk.bf16.mxu1 %vm646_vm6, %v2246_v59  ;;  %v1403_v59 = vmul.bf16 %v2374_v19, %v2433_v48 }
 0x13f   : > { %1899 = vmatmul.mubr.msk.bf16.vlgmr.msra.gmra.mrb[4].mxu1 %vm646_vm6, %v2304_v22 }
 0x140   : > { %1907 = vmatpush3.bf16.msra.mxu1 %v1419_v51  ;;  %1902 = vmatprep.mubr.msk.bf16.mxu1 %vm646_vm6, %v2309_v49  ;;  %v1405_v49 = vmul.bf16 %v1401_v45, %v573_v14 }
 0x147   : > { %1903 = vmatmul.mubr.msk.bf16.gmra.mrb[0].mxu1 %vm646_vm6, %v1321_v10 }
 0x148   : > { %1908 = vmatprep.mubr.msk.bf16.mxu1 %vm646_vm6, %v1402_v23 }
 0x14f   : > { %1909 = vmatmul.mubr.msk.bf16.vlgmr.msra.gmra.mrb[4].mxu1 %vm646_vm6, %v1403_v59 }
 0x150   : > { %1912 = vmatprep.mubr.msk.bf16.mxu1 %vm646_vm6, %v1404_v61 }
 0x157   : > { %1913 = vmatmul.mubr.msk.bf16.gmra.mrb[0].mxu1 %vm646_vm6, %v1405_v49 }
 0x1f5   : > { %v1854_v22 = vpop.f32.mrb[12].mxu0 }
 0x1f6   : > { %v897_v18 = vpop.f32.mrb[13].mxu0 }
 0x1f7   : > { %v1855_v60 = vpop.f32.mrb[14].mxu0 }
 0x1f8   : > { %v900_v19 = vpop.f32.mrb[15].mxu0 }
 0x1fd   : > { %v1860_v11 = vpop.f32.mrb[8].mxu0 }
 0x1fe   : > { %v992_v35 = vpop.f32.mrb[9].mxu0 }
 0x1ff   : > { %v1861_v13 = vpop.f32.mrb[10].mxu0 }
 0x200   : > { %v995_v62 = vpop.f32.mrb[11].mxu0 }
 0x222   : > { %v1910_v58 = vpop.f32.mrb[4].mxu1 }
 0x223   : > { %v1928_v45 = vadd.f32 %v1910_v58, %v1860_v11  ;;  %v1455_v27 = vpop.f32.mrb[5].mxu1  ;;  %v2610_v58 = vld [vmem:[#allocation2_spill] sm:$0xff] }
 0x224   : > { %v1929_v30 = vadd.f32 %v1455_v27, %v992_v35  ;;  %v1911_v31 = vpop.f32.mrb[6].mxu1 }
 0x225   : > { %v1503_v53 = vadd.f32 %v1928_v45, %v1748_v24  ;;  %v1930_v44 = vadd.f32 %v1911_v31, %v1861_v13  ;;  %v1458_v37 = vpop.f32.mrb[7].mxu1 }
 0x226   : > { %v1501_v38 = vadd.f32 %v1929_v30, %v1748_v24  ;;  %v1931_v6 = vadd.f32 %v1458_v37, %v995_v62  ;;  %v2609_v62 = vld [vmem:[#allocation3_spill] sm:$0xff] }
 0x227   : > { %v1504_v48 = vadd.f32 %v1930_v44, %v1748_v24  ;;  %v1511_v17 = vmax.f32 %v1503_v53, 0.0 }
 0x228   : > { %v1502_v20 = vadd.f32 %v1931_v6, %v1748_v24  ;;  %v1509_v56 = vmax.f32 %v1501_v38, 0.0 }
 0x229   : > { %v1512_v52 = vmax.f32 %v1504_v48, 0.0 }
 0x22a   : > { %v1510_v29 = vmax.f32 %v1502_v20, 0.0  ;;  %v1914_v50 = vpop.f32.mrb[0].mxu1 }
 0x22b   : > { %v1518_v8 = vpack.c.bf16 %v1512_v52, %v1511_v17  ;;  %v1932_v39 = vadd.f32 %v1914_v50, %v1854_v22  ;;  %v1471_v46 = vpop.f32.mrb[1].mxu1 }
 0x22c   : > { %v1517_v1 = vpack.c.bf16 %v1510_v29, %v1509_v56  ;;  %v1933_v14 = vadd.f32 %v1471_v46, %v897_v18  ;;  %v1915_v36 = vpop.f32.mrb[2].mxu1 }
 0x22d   : > { %v1507_v40 = vadd.f32 %v1932_v39, %v1748_v24  ;;  %v1934_v33 = vadd.f32 %v1915_v36, %v1855_v60  ;;  %v1474_v12 = vpop.f32.mrb[3].mxu1 }
 0x22e   : > { %v1505_v0 = vadd.f32 %v1933_v14, %v1748_v24  ;;  %v1935_v25 = vadd.f32 %v1474_v12, %v900_v19  ;;  %1918 = vmatprep.mubr.msk.bf16.mxu0 %vm646_vm6, %v1517_v1 }
 0x22f   : > { %v1508_v26 = vadd.f32 %v1934_v33, %v1748_v24  ;;  %1919 = vmatmul.mubr.msk.bf16.vlgmr.msra.gmra.mrb[16].mxu0 %vm646_vm6, %v1518_v8  ;;  %v1515_v55 = vmax.f32 %v1507_v40, 0.0 }
 0x230   : > { %v1506_v28 = vadd.f32 %v1935_v25, %v1748_v24  ;;  %v1513_v34 = vmax.f32 %v1505_v0, 0.0 }
 0x231   : > { %v1516_v32 = vmax.f32 %v1508_v26, 0.0 }
 0x232   : > { %v1514_v43 = vmax.f32 %v1506_v28, 0.0 }
 0x233   : > { %v1520_v21 = vpack.c.bf16 %v1516_v32, %v1515_v55 }
 0x234   : > { %v1519_v42 = vpack.c.bf16 %v1514_v43, %v1513_v34 }
 0x236   : > { %1922 = vmatprep.mubr.msk.bf16.mxu0 %vm646_vm6, %v1519_v42 }
 0x237   : > { %1923 = vmatmul.mubr.msk.bf16.gmra.mrb[20].mxu0 %vm646_vm6, %v1520_v21 }
 0x302   : > { %v1920_v5 = vpop.f32.mrb[16].mxu0 }
 0x303   : > { %v1587_v16 = vadd.f32 %v1920_v5, %v1749_v41  ;;  %v1578_v63 = vpop.f32.mrb[17].mxu0 }
 0x304   : > { %v1579_v51 = vadd.f32 %v1749_v41, %v1578_v63  ;;  %v1921_v57 = vpop.f32.mrb[18].mxu0 }
 0x305   : > { %v1611_v10 = vadd.f32 %v1587_v16, %v2089_v4  ;;  %v1590_v23 = vadd.f32 %v1921_v57, %v1749_v41  ;;  %v1581_v59 = vpop.f32.mrb[19].mxu0 }
 0x306   : > { %v1609_v61 = vadd.f32 %v1579_v51, %v2085_v2  ;;  %v1582_v49 = vadd.f32 %v1749_v41, %v1581_v59 }
 0x307   : > { %1619 = vst.msk [vmem:[%s278_s19 + $0x10] sm:$0xff] %vm323_vm0, %v1611_v10  ;;  %v1612_v47 = vadd.f32 %v1590_v23, %v2093_v7 }
 0x308   : > { %1617 = vst.msk [vmem:[%s278_s19] sm:$0xff] %vm323_vm0, %v1609_v61  ;;  %v1610_v54 = vadd.f32 %v1582_v49, %v2087_v3 }
 0x309   : > { %1620 = vst.msk [vmem:[%s278_s19 + $0x18] sm:$0xff] %vm323_vm0, %v1612_v47 }
 0x30a   : > { %1618 = vst.msk [vmem:[%s278_s19 + $0x8] sm:$0xff] %vm323_vm0, %v1610_v54  ;;  %v1924_v22 = vpop.f32.mrb[20].mxu0 }
 0x30b   : > { %v1603_v18 = vadd.f32 %v1924_v22, %v1749_v41  ;;  %v1594_v4 = vpop.f32.mrb[21].mxu0 }
 0x30c   : > { %v1595_v60 = vadd.f32 %v1749_v41, %v1594_v4  ;;  %v1925_v19 = vpop.f32.mrb[22].mxu0 }
 0x30d   : > { %v1615_v2 = vadd.f32 %v1603_v18, %v2103_v15  ;;  %v1606_v11 = vadd.f32 %v1925_v19, %v1749_v41  ;;  %v1597_v35 = vpop.f32.mrb[23].mxu0 }
 0x30e   : > { %v1613_v13 = vadd.f32 %v1595_v60, %v2096_v9  ;;  %v1598_v7 = vadd.f32 %v1749_v41, %v1597_v35 }
 0x30f   : > { %1623 = vst.msk [vmem:[%s278_s19 + $0x30] sm:$0xff] %vm323_vm0, %v1615_v2  ;;  %v1616_v3 = vadd.f32 %v1606_v11, %v2609_v62 }
 0x310   : > { %1621 = vst.msk [vmem:[%s278_s19 + $0x20] sm:$0xff] %vm323_vm0, %v1613_v13  ;;  %v1614_v24 = vadd.f32 %v1598_v7, %v2610_v58 }
 0x311   : > { %1624 = vst.msk [vmem:[%s278_s19 + $0x38] sm:$0xff] %vm323_vm0, %v1616_v3 }
 0x312   : > { %1622 = vst.msk [vmem:[%s278_s19 + $0x28] sm:$0xff] %vm323_vm0, %v1614_v24 }
 0x313 PF: > { %s17_s24 = sadd.s32 1, %s2020_s24  }
 0x314   : > { %p14_p4 = scmp.ge.s32.totalorder %s17_s24, 4  }
 0x316   :  { %16 = sbr.rel (!%p14_p4) target bundleno = 1 (0x1), region = 78 }

// kernel: _lambda_.4
= control target key start
LH: loop header
LB: loop body
LE: loop exit
PB: predicated region body
PF: predicated region fallthrough
CT: control target
= control target key end

     0   :  { %s1442_s30 = smov 0   ;;  %s1636_s0 = inlined_call_operand.vmem [shape: f32[2,16,16], index: 0, kind: input, shape index: {}]   ;;  %s1637_s1 = inlined_call_operand.vmem [shape: bf16[16,64], index: 1, kind: input, shape index: {}]   ;;  %s1638_s2 = inlined_call_operand.vmem [shape: f32[1,64], index: 2, kind: input, shape index: {}]   ;;  %s1639_s3 = inlined_call_operand.vmem [shape: bf16[64,16], index: 3, kind: input, shape index: {}]   ;;  %s1640_s4 = inlined_call_operand.vmem [shape: f32[1,16], index: 4, kind: input, shape index: {}]   ;;  %s1641_s5 = inlined_call_operand.vmem [shape: bf16[144,16], index: 5, kind: input, shape index: {}]   ;;  %s1642_s6 = inlined_call_operand.vmem [shape: f32[1,16], index: 6, kind: input, shape index: {}]   ;;  %s1643_s7 = inlined_call_operand.vmem [shape: bf16[16,64], index: 7, kind: input, shape index: {}]   ;;  %s1644_s8 = inlined_call_operand.vmem [shape: f32[1,64], index: 8, kind: input, shape index: {}]   ;;  %s1645_s9 = inlined_call_operand.vmem [shape: f32[2,16,64], index: 9, kind: output, shape index: {}]  }
   0x1 LB: > { %s1204_s10 = sadd.s32 4294967295, %s1388_s30   ;;  %p1208_p0 = scmp.ge.s32.totalorder %s1388_s30, 1  ;;  %s1388_s30 = sphi %s1442_s30, %s19_s30  }
   0x2   : > { %p287_p1 = scmp.lt.s32.totalorder %s1388_s30, 3 }
   0x4   : > { %p288_p2 = pnand %p1208_p0, %p287_p1 }
   0x5   : > { %v1367_v0 = vld [vmem:[%s1637_s1] sm:$0xff] (!%p288_p2)   ;;  %v1390_v1 = vmov (!%p288_p2), 0.0   ;;  %p323_p3 = scmp.lt.s32.totalorder (!%p288_p2), %s1204_s10, 1  ;;  %vm1391_vm0 = vmmov (!%p288_p2), 0   ;;  %v1369_v3 = vld [vmem:[%s1639_s3 + $0x8] sm:$0xff] (!%p288_p2)   ;;  %vm352_vm1 = vcmask (!%p288_p2), 130048   ;;  %v487_v21 = vlaneseq (!%p288_p2) }
   0x6   : > { %291 = sbr.rel (%p288_p2) target bundleno = 937 (0x3a9), region = 56  ;;  %1279 = vmatprep.subr.bf16.mxu0 (!%p288_p2), %v1390_v1  ;;  %1285 = vmatprep.subr.bf16.mxu1 (!%p288_p2), %v1390_v1  ;;  %v1368_v2 = vld [vmem:[%s1639_s3] sm:$0xff] (!%p288_p2)   ;;  %v1370_v7 = vld [vmem:[%s1639_s3 + $0x10] sm:$0xff] (!%p288_p2)   ;;  %v1371_v8 = vld [vmem:[%s1639_s3 + $0x18] sm:$0xff] (!%p288_p2)   ;;  %vm439_vm2 = vcmask (!%p288_p2), 523264   ;;  %vm562_vm7 = vcmask (!%p288_p2), 1041408  }
   0x7   : > { %1280 = vmatpush3.bf16.msra.mxu0 (!%p288_p2), %v1367_v0  ;;  %1281 = vmatprep.mubr.msk.bf16.mxu0 (!%p288_p2), %vm1391_vm0, %v1390_v1  ;;  %v1213_v9 = vld [vmem:[%s1638_s2] ss:$0 sm:$0xff] (!%p288_p2)  ;;  %v1372_v19 = vld [vmem:[%s1641_s5 + $0x8] sm:$0xff] (!%p288_p2)   ;;  %v1374_v20 = vld [vmem:[%s1641_s5 + $0x10] sm:$0xff] (!%p288_p2)   ;;  %v488_v22 = vshrl.u32 (!%p288_p2), %v487_v21, 7  ;;  %vm555_vm9 = vcmask (!%p288_p2), 1042432  }
   0x8   : > { %1286 = vmatpush3.bf16.msra.mxu1 (!%p288_p2), %v1368_v2  ;;  %1293 = vmatprep.mubr.msk.bf16.mxu1 (!%p288_p2), %vm1391_vm0, %v1390_v1  ;;  %v1216_v24 = vld [vmem:[%s1640_s4] ss:$0 sm:$0xff] (!%p288_p2)  ;;  %vm670_vm8 = vsmask.f32 (!%p288_p2), 1280  ;;  %vm556_vm10 = vsmask.f32 (!%p288_p2), 2304 }
   0x9   : > { %1287 = vmatprep.subr.bf16.mxu1 (!%p288_p2), %v1390_v1  ;;  %1297 = vmatprep.subr.bf16.mxu0 (!%p288_p2), %v1390_v1  ;;  %v489_v23 = vadd.s32 (!%p288_p2), 8, %v488_v22  ;;  %v494_v28 = vand.u32 (!%p288_p2), 3, %v488_v22  ;;  %v1373_v41 = vld [vmem:[%s1641_s5] sm:$0xff] (!%p288_p2)   ;;  %vm671_vm11 = vmand (!%p288_p2), %vm562_vm7, %vm670_vm8  ;;  %v1375_v58 = vld [vmem:[%s1641_s5 + $0x18] sm:$0xff] (!%p288_p2)   ;;  %vm729_vm13 = vcmask (!%p288_p2), 1040384  }
   0xa   : > { %vm557_vm12 = vmand (!%p288_p2), %vm555_vm9, %vm556_vm10  ;;  %v1376_v54 = vld [vmem:[%s1641_s5 + $0x20] sm:$0xff] (!%p288_p2)   ;;  %vm730_vm14 = vsmask.f32 (!%p288_p2), 256  ;;  %v1378_v2 = vld [vmem:[%s1641_s5 + $0x30] sm:$0xff] (!%p288_p2)   ;;  %vm1018_vm9 = vsmask.f32 (!%p288_p2), 5376 }
   0xb   : > { %v501_v29 = vand.u32 (!%p288_p2), 3, %v489_v23  ;;  %vm521_vm3 = vcmp.le.s32.totalorder (!%p288_p2), %v494_v28, 2  ;;  %vm514_vm5 = vcmp.ge.s32.totalorder (!%p288_p2), %v494_v28, 1  ;;  %vm1551_vm15 = vmand (!%p288_p2), %vm729_vm13, %vm730_vm14  ;;  %vm959_vm10 = vcmask (!%p288_p2), 1045504  }
   0xc   : > { %1288 = vmatpush3.bf16.msra.mxu1 (!%p288_p2), %v1369_v3  ;;  %v1224_v36 = vsel (!%p288_p2), %vm521_vm3, 1.0, %v1390_v1  ;;  %v1222_v42 = vsel (!%p288_p2), %vm514_vm5, 1.0, %v1390_v1  ;;  %vm901_vm3 = vcmask (!%p288_p2), 1046528   ;;  %vm840_vm5 = vcmask (!%p288_p2), 1047552  }
   0xd   : > { %s1653_s10 = smov (!%p323_p3, %s1204_s10), 1  ;;  %1289 = vmatprep.subr.bf16.mxu1 %v1390_v1  ;;  %vm522_vm4 = vcmp.le.s32.totalorder %v501_v29, 2  ;;  %vm515_vm6 = vcmp.ge.s32.totalorder %v501_v29, 1 }
   0xe   : > { %s1250_s17 = sshll.u32 %s1653_s10, 4  ;;  %v1225_v37 = vsel %vm522_vm4, 1.0, %v1390_v1  ;;  %v1223_v43 = vsel %vm515_vm6, 1.0, %v1390_v1  ;;  %vm902_vm4 = vsmask.f32 6400 }
   0xf   : > { %s327_s20 = scalar_lea.vmem %s1636_s0, %s1250_s17  ;;  %v1530_v48 = vpack.c.bf16 %v1225_v37, %v1224_v36  ;;  %v520_v51 = vpack.c.bf16 %v1223_v43, %v1222_v42  ;;  %vm841_vm6 = vsmask.f32 7424  ;;  %s332_s19 = scalar_lea.vmem %s1645_s9, %s1250_s17 }
  0x10   : > { %v334_v4 = vld [vmem:[%s327_s20] sm:$0xff]  ;;  %v335_v5 = vld [vmem:[%s327_s20 + $0x8] sm:$0xff]  ;;  %1290 = vmatpush3.bf16.msra.mxu1 %v1370_v7  ;;  %vm1580_vm8 = vmand %vm840_vm5, %vm841_vm6 }
  0x11   : > { %v336_v6 = vpack.c.bf16 %v335_v5, %v334_v4  ;;  %1291 = vmatprep.subr.bf16.mxu1 %v1390_v1  ;;  %v1377_v4 = vld [vmem:[%s1641_s5 + $0x28] sm:$0xff]  }
  0x13   : > { %1282 = vmatmul.mubr.msk.bf16.vlgmr.msra.gmra.mrb[0].mxu0 %vm352_vm1, %v336_v6 }
  0x14   : > { %1299 = vmatprep.mubr.msk.bf16.mxu0 %vm1391_vm0, %v1390_v1  ;;  %1292 = vmatpush3.bf16.msra.mxu1 %v1371_v8 }
  0x15   : > { %1309 = vmatprep.subr.bf16.mxu1 %v1390_v1  ;;  %1298 = vmatpush3.bf16.msra.mxu0 %v1372_v19 }
  0x16   : > { %1303 = vmatprep.subr.bf16.mxu0 %v1390_v1 }
  0xe6   : > { %v390_v10 = vpop.f32.mrb[0].mxu0 }
  0xe7   : > { %v1490_v11 = vadd.f32 %v1213_v9, %v390_v10  ;;  %v1283_v12 = vpop.f32.mrb[1].mxu0 }
  0xe8   : > { %v393_v13 = vpop.f32.mrb[2].mxu0 }
  0xe9   : > { %v1492_v14 = vadd.f32 %v1213_v9, %v393_v13  ;;  %v1284_v15 = vpop.f32.mrb[3].mxu0  ;;  %v397_v16 = vmax.f32 %v1490_v11, 0.0  ;;  %v1244_v9 = vld [vmem:[%s1642_s6] ss:$0 sm:$0xff] }
  0xeb   : > { %v398_v17 = vmax.f32 %v1492_v14, 0.0 }
  0xed   : > { %v399_v18 = vpack.c.bf16 %v398_v17, %v397_v16  ;;  %v1380_v16 = vld [vmem:[%s1641_s5 + $0x40] sm:$0xff]  }
  0xef   : > { %1294 = vmatmul.mubr.msk.bf16.vlgmr.msra.gmra.mrb[0].mxu1 %vm439_vm2, %v399_v18  ;;  %v1379_v18 = vld [vmem:[%s1641_s5 + $0x38] sm:$0xff]  }
  0xf0   : > { %1311 = vmatprep.mubr.msk.bf16.mxu1 %vm1391_vm0, %v1390_v1  ;;  %1310 = vmatpush3.bf16.msra.mxu1 %v1374_v20 }
  0xf1   : > { %1321 = vmatprep.subr.bf16.mxu1 %v1390_v1 }
 0x1c2   : > { %v477_v25 = vpop.f32.mrb[0].mxu1 }
 0x1c3   : > { %v478_v26 = vadd.f32 %v1216_v24, %v477_v25  ;;  %v1295_v27 = vpop.f32.mrb[1].mxu1  ;;  %v1381_v25 = vld [vmem:[%s1643_s7] sm:$0xff]  }
 0x1c4   : > { %v480_v30 = vpop.f32.mrb[2].mxu1 }
 0x1c5   : > { %v481_v31 = vadd.f32 %v1216_v24, %v480_v30  ;;  %v1296_v32 = vpop.f32.mrb[3].mxu1  ;;  %v484_v33 = vmax.f32 %v478_v26, 0.0 }
 0x1c7   : > { %v485_v34 = vmax.f32 %v481_v31, 0.0 }
 0x1c9   : > { %v1510_v35 = vpack.c.bf16 %v485_v34, %v484_v33 }
 0x1cb   : > { %v1515_v38 = vshrl.u32 %v1510_v35, 16  ;;  %v1518_v39 = vshll.u32 %v1510_v35, 16  ;;  %v561_v40 = vrot.slane %v1510_v35, 6  ;;  %v958_v22 = vrot.slane %v1510_v35, 2 }
 0x1cd   : > { %v565_v44 = vsel %vm562_vm7, 0, %v561_v40  ;;  %v665_v45 = vrot.slane %v1515_v38, 6  ;;  %v666_v46 = vrot.slane %v1518_v39, 7  ;;  %v549_v47 = vrot.slane %v1515_v38, 5  ;;  %vm1572_vm7 = vmand %vm901_vm3, %vm902_vm4 }
 0x1ce   : > { %1300 = vmatmul.mubr.msk.bf16.vlgmr.msra.gmra.mrb[4].mxu0 %vm352_vm1, %v565_v44  ;;  %v552_v49 = vrot.slane %v1518_v39, 6  ;;  %v726_v55 = vrot.slane %v1515_v38, 7  ;;  %v897_v62 = vrot.slane %v1515_v38, 1  ;;  %v898_v63 = vrot.slane %v1518_v39, 2 }
 0x1cf   : > { %v667_v50 = vor.u32 %v666_v46, %v665_v45  ;;  %1304 = vmatpush3.bf16.msra.mxu0 %v1373_v41  ;;  %1305 = vmatprep.mubr.msk.bf16.mxu0 %vm1391_vm0, %v1390_v1  ;;  %v837_v3 = vrot.slane %v1518_v39, 1  ;;  %v1013_v12 = vrot.slane %v1515_v38, 2  ;;  %v1014_v13 = vrot.slane %v1518_v39, 3 }
 0x1d0   : > { %1315 = vmatprep.subr.bf16.mxu0 %v1390_v1  ;;  %v553_v52 = vor.u32 %v552_v49, %v549_v47  ;;  %v727_v60 = vor.u32 %v726_v55, %v1518_v39  ;;  %v899_v5 = vor.u32 %v898_v63, %v897_v62  ;;  %v961_v24 = vsel %vm959_vm10, %v958_v22, 0  ;;  %v1245_v22 = vld [vmem:[%s1644_s8] ss:$0 sm:$0xff] }
 0x1d1   : > { %v672_v53 = vsel %vm671_vm11, 0, %v667_v50  ;;  %v838_v8 = vor.u32 %v837_v3, %v1515_v38  ;;  %v1015_v19 = vor.u32 %v1014_v13, %v1013_v12  ;;  %vm1019_vm11 = vmand %vm959_vm10, %vm1018_vm9 }
 0x1d2   : > { %v673_v56 = vmul.bf16 %v672_v53, %v1530_v48  ;;  %v558_v57 = vsel %vm557_vm12, 0, %v553_v52  ;;  %v732_v0 = vsel %vm1551_vm15, 0, %v727_v60  ;;  %v904_v10 = vsel %vm1572_vm7, %v899_v5, 0 }
 0x1d3   : > { %v559_v59 = vmul.bf16 %v558_v57, %v520_v51  ;;  %v733_v6 = vmul.bf16 %v732_v0, %v520_v51  ;;  %v843_v15 = vsel %vm1580_vm8, %v838_v8, 0  ;;  %v905_v17 = vmul.bf16 %v904_v10, %v520_v51 }
 0x1d4   : > { %1312 = vmatmul.mubr.msk.bf16.vlgmr.msra.gmra.mrb[4].mxu1 %vm352_vm1, %v673_v56  ;;  %v844_v20 = vmul.bf16 %v843_v15, %v1530_v48  ;;  %v1020_v21 = vsel %vm1019_vm11, %v1015_v19, 0 }
 0x1d5   : > { %1322 = vmatpush3.bf16.msra.mxu1 %v1376_v54  ;;  %1323 = vmatprep.mubr.msk.bf16.mxu1 %vm1391_vm0, %v1390_v1  ;;  %v1021_v23 = vmul.bf16 %v1020_v21, %v1530_v48 }
 0x1d6   : > { %1306 = vmatmul.mubr.msk.bf16.vlgmr.msra.gmra.mrb[8].mxu0 %vm352_vm1, %v559_v59  ;;  %1333 = vmatprep.subr.bf16.mxu1 %v1390_v1 }
 0x1d7   : > { %1316 = vmatpush3.bf16.msra.mxu0 %v1375_v58  ;;  %1317 = vmatprep.mubr.msk.bf16.mxu0 %vm1391_vm0, %v1390_v1 }
 0x1d8   : > { %1327 = vmatprep.subr.bf16.mxu0 %v1390_v1 }
 0x1dc   : > { %1324 = vmatmul.mubr.msk.bf16.vlgmr.msra.gmra.mrb[8].mxu1 %vm352_vm1, %v1510_v35 }
 0x1dd   : > { %1334 = vmatpush3.bf16.msra.mxu1 %v1378_v2  ;;  %1335 = vmatprep.mubr.msk.bf16.mxu1 %vm1391_vm0, %v1390_v1 }
 0x1de   : > { %1318 = vmatmul.mubr.msk.bf16.vlgmr.msra.gmra.mrb[12].mxu0 %vm352_vm1, %v733_v6  ;;  %1345 = vmatprep.subr.bf16.mxu1 %v1390_v1 }
 0x1df   : > { %1328 = vmatpush3.bf16.msra.mxu0 %v1377_v4  ;;  %1329 = vmatprep.mubr.msk.bf16.mxu0 %vm1391_vm0, %v1390_v1 }
 0x1e0   : > { %1339 = vmatprep.subr.bf16.mxu0 %v1390_v1 }
 0x1e4   : > { %1336 = vmatmul.mubr.msk.bf16.vlgmr.msra.gmra.mrb[12].mxu1 %vm352_vm1, %v905_v17 }
 0x1e5   : > { %1346 = vmatpush3.bf16.msra.mxu1 %v1380_v16  ;;  %1347 = vmatprep.mubr.msk.bf16.mxu1 %vm1391_vm0, %v1390_v1 }
 0x1e6   : > { %1330 = vmatmul.mubr.msk.bf16.vlgmr.msra.gmra.mrb[16].mxu0 %vm352_vm1, %v844_v20 }
 0x1e7   : > { %1340 = vmatpush3.bf16.msra.mxu0 %v1379_v18  ;;  %1341 = vmatprep.mubr.msk.bf16.mxu0 %vm1391_vm0, %v1390_v1 }
 0x1e8   : > { %1351 = vmatprep.subr.bf16.mxu0 %v1390_v1 }
 0x1ec   : > { %1348 = vmatmul.mubr.msk.bf16.vlgmr.msra.gmra.mrb[16].mxu1 %vm352_vm1, %v1021_v23 }
 0x1ee   : > { %1342 = vmatmul.mubr.msk.bf16.vlgmr.msra.gmra.mrb[20].mxu0 %vm352_vm1, %v961_v24 }
 0x1ef   : > { %1353 = vmatprep.mubr.msk.bf16.mxu0 %vm1391_vm0, %v1390_v1  ;;  %1352 = vmatpush3.bf16.msra.mxu0 %v1381_v25 }
 0x2a1   : > { %v608_v26 = vpop.f32.mrb[4].mxu0 }
 0x2a2   : > { %v1301_v27 = vpop.f32.mrb[5].mxu0 }
 0x2a3   : > { %v611_v28 = vpop.f32.mrb[6].mxu0 }
 0x2a4   : > { %v1302_v29 = vpop.f32.mrb[7].mxu0 }
 0x2a7   : > { %v717_v30 = vpop.f32.mrb[4].mxu1 }
 0x2a8   : > { %v1313_v31 = vpop.f32.mrb[5].mxu1 }
 0x2a9   : > { %v658_v32 = vpop.f32.mrb[8].mxu0  ;;  %v720_v33 = vpop.f32.mrb[6].mxu1 }
 0x2aa   : > { %v659_v34 = vadd.f32 %v658_v32, %v608_v26  ;;  %v1307_v35 = vpop.f32.mrb[9].mxu0  ;;  %v1314_v36 = vpop.f32.mrb[7].mxu1 }
 0x2ab   : > { %v661_v37 = vpop.f32.mrb[10].mxu0 }
 0x2ac   : > { %v662_v38 = vadd.f32 %v661_v37, %v611_v28  ;;  %v1308_v39 = vpop.f32.mrb[11].mxu0  ;;  %v724_v1 = vadd.f32 %v717_v30, %v659_v34 }
 0x2ae   : > { %v725_v40 = vadd.f32 %v720_v33, %v662_v38 }
 0x2af   : > { %v828_v41 = vpop.f32.mrb[8].mxu1 }
 0x2b0   : > { %v1325_v42 = vpop.f32.mrb[9].mxu1 }
 0x2b1   : > { %v777_v43 = vpop.f32.mrb[12].mxu0  ;;  %v831_v44 = vpop.f32.mrb[10].mxu1 }
 0x2b2   : > { %v784_v45 = vadd.f32 %v777_v43, %v724_v1  ;;  %v1319_v46 = vpop.f32.mrb[13].mxu0  ;;  %v1326_v47 = vpop.f32.mrb[11].mxu1 }
 0x2b3   : > { %v780_v48 = vpop.f32.mrb[14].mxu0 }
 0x2b4   : > { %v785_v49 = vadd.f32 %v780_v48, %v725_v40  ;;  %v1320_v50 = vpop.f32.mrb[15].mxu0  ;;  %v835_v51 = vadd.f32 %v828_v41, %v784_v45 }
 0x2b6   : > { %v836_v52 = vadd.f32 %v831_v44, %v785_v49 }
 0x2b7   : > { %v949_v53 = vpop.f32.mrb[12].mxu1 }
 0x2b8   : > { %v1337_v54 = vpop.f32.mrb[13].mxu1 }
 0x2b9   : > { %v888_v55 = vpop.f32.mrb[16].mxu0  ;;  %v952_v56 = vpop.f32.mrb[14].mxu1 }
 0x2ba   : > { %v895_v57 = vadd.f32 %v888_v55, %v835_v51  ;;  %v1331_v58 = vpop.f32.mrb[17].mxu0  ;;  %v1338_v59 = vpop.f32.mrb[15].mxu1 }
 0x2bb   : > { %v891_v60 = vpop.f32.mrb[18].mxu0 }
 0x2bc   : > { %v896_v61 = vadd.f32 %v891_v60, %v836_v52  ;;  %v1332_v62 = vpop.f32.mrb[19].mxu0  ;;  %v956_v63 = vadd.f32 %v949_v53, %v895_v57 }
 0x2be   : > { %v957_v0 = vadd.f32 %v952_v56, %v896_v61 }
 0x2bf   : > { %v1065_v2 = vpop.f32.mrb[16].mxu1 }
 0x2c0   : > { %v1349_v3 = vpop.f32.mrb[17].mxu1 }
 0x2c1   : > { %v1004_v4 = vpop.f32.mrb[20].mxu0  ;;  %v1068_v5 = vpop.f32.mrb[18].mxu1 }
 0x2c2   : > { %v1011_v6 = vadd.f32 %v1004_v4, %v956_v63  ;;  %v1343_v7 = vpop.f32.mrb[21].mxu0  ;;  %v1350_v8 = vpop.f32.mrb[19].mxu1 }
 0x2c3   : > { %v1007_v10 = vpop.f32.mrb[22].mxu0 }
 0x2c4   : > { %v1072_v12 = vadd.f32 %v1065_v2, %v1011_v6  ;;  %v1012_v13 = vadd.f32 %v1007_v10, %v957_v0  ;;  %v1344_v15 = vpop.f32.mrb[23].mxu0 }
 0x2c6   : > { %v1081_v16 = vadd.f32 %v1244_v9, %v1072_v12  ;;  %v1073_v17 = vadd.f32 %v1068_v5, %v1012_v13 }
 0x2c8   : > { %v1082_v18 = vadd.f32 %v1244_v9, %v1073_v17  ;;  %v1083_v19 = vmax.f32 %v1081_v16, 0.0 }
 0x2ca   : > { %v1084_v20 = vmax.f32 %v1082_v18, 0.0 }
 0x2cc   : > { %v1085_v21 = vpack.c.bf16 %v1084_v20, %v1083_v19 }
 0x2ce   : > { %1354 = vmatmul.mubr.msk.bf16.vlgmr.msra.gmra.mrb[24].mxu0 %vm352_vm1, %v1085_v21 }
 0x3a1   : > { %v1138_v23 = vpop.f32.mrb[24].mxu0 }
 0x3a2   : > { %v1139_v24 = vadd.f32 %v1245_v22, %v1138_v23  ;;  %v1355_v25 = vpop.f32.mrb[25].mxu0 }
 0x3a3   : > { %v1141_v26 = vpop.f32.mrb[26].mxu0 }
 0x3a4   : > { %v1145_v27 = vadd.f32 %v1139_v24, %v1490_v11  ;;  %v1142_v28 = vadd.f32 %v1245_v22, %v1141_v26  ;;  %v1356_v29 = vpop.f32.mrb[27].mxu0 }
 0x3a6   : > { %1147 = vst.msk [vmem:[%s332_s19] sm:$0xff] %vm439_vm2, %v1145_v27  ;;  %v1146_v30 = vadd.f32 %v1142_v28, %v1492_v14 }
 0x3a8   : > { %1148 = vst.msk [vmem:[%s332_s19 + $0x8] sm:$0xff] %vm439_vm2, %v1146_v30 }
 0x3a9 PF: > { %s19_s30 = sadd.s32 1, %s1388_s30  }
 0x3aa   : > { %p16_p4 = scmp.ge.s32.totalorder %s19_s30, 4  }
 0x3ac   :  { %18 = sbr.rel (!%p16_p4) target bundleno = 1 (0x1), region = 86 }

// kernel: _lambda_.5
= control target key start
LH: loop header
LB: loop body
LE: loop exit
PB: predicated region body
PF: predicated region fallthrough
CT: control target
= control target key end

     0   :  { %s2385_s27 = smov 0   ;;  %s2877_s0 = inlined_call_operand.vmem [shape: f32[2,16,64], index: 0, kind: input, shape index: {}]   ;;  %s2878_s1 = inlined_call_operand.vmem [shape: bf16[64,16], index: 1, kind: input, shape index: {}]   ;;  %s2879_s2 = inlined_call_operand.vmem [shape: f32[1,16], index: 2, kind: input, shape index: {}]   ;;  %s2880_s3 = inlined_call_operand.vmem [shape: f32[64,16], index: 3, kind: input, shape index: {}]   ;;  %s2881_s4 = inlined_call_operand.vmem [shape: bf16[144,16], index: 4, kind: input, shape index: {}]   ;;  %s2882_s5 = inlined_call_operand.vmem [shape: f32[1,16], index: 5, kind: input, shape index: {}]   ;;  %s2883_s6 = inlined_call_operand.vmem [shape: bf16[16,32], index: 6, kind: input, shape index: {}]   ;;  %s2884_s7 = inlined_call_operand.vmem [shape: f32[1,32], index: 7, kind: input, shape index: {}]   ;;  %s2885_s8 = inlined_call_operand.vmem [shape: f32[2,64,32], index: 8, kind: output, shape index: {}]  }
   0x1 LB: > { %s1929_s28 = sadd.s32 4294967295, %s2336_s27   ;;  %p1933_p0 = scmp.ge.s32.totalorder %s2336_s27, 1  ;;  %s2336_s27 = sphi %s2385_s27, %s18_s27  }
   0x2   : > { %p262_p1 = scmp.lt.s32.totalorder %s2336_s27, 3 }
   0x4   : > { %p263_p2 = pnand %p1933_p0, %p262_p1 }
   0x5   : > { %v2316_v0 = vld [vmem:[%s2878_s1] sm:$0xff] (!%p263_p2)   ;;  %v2338_v1 = vmov (!%p263_p2), 0.0   ;;  %v2317_v2 = vld [vmem:[%s2878_s1 + $0x8] sm:$0xff] (!%p263_p2)   ;;  %vm2339_vm0 = vmmov (!%p263_p2), 0   ;;  %p296_p3 = scmp.lt.s32.totalorder (!%p263_p2), %s1929_s28, 1  ;;  %v2318_v3 = vld [vmem:[%s2878_s1 + $0x10] sm:$0xff] (!%p263_p2)   ;;  %v493_v36 = vlaneseq (!%p263_p2) }
   0x6   : > { %266 = sbr.rel (%p263_p2) target bundleno = 1038 (0x40e), region = 52  ;;  %2098 = vmatprep.subr.bf16.mxu0 (!%p263_p2), %v2338_v1  ;;  %2106 = vmatprep.mubr.msk.bf16.mxu0 (!%p263_p2), %vm2339_vm0, %v2338_v1  ;;  %v2319_v4 = vld [vmem:[%s2878_s1 + $0x18] sm:$0xff] (!%p263_p2)   ;;  %vm351_vm1 = vcmask (!%p263_p2), 523264   ;;  %v2425_v10 = vld [vmem:[%s2880_s3] sm:$0xff] (!%p263_p2)  ;;  %v2430_v11 = vld [vmem:[%s2880_s3 + $0x8] sm:$0xff] (!%p263_p2)  ;;  %vm411_vm2 = vcmask (!%p263_p2), 130048  }
   0x7   : > { %2099 = vmatpush3.bf16.msra.mxu0 (!%p263_p2), %v2316_v0  ;;  %v406_v12 = vpack.c.bf16 (!%p263_p2), %v2430_v11, %v2425_v10  ;;  %v1938_v13 = vld [vmem:[%s2879_s2] ss:$0 sm:$0xff] (!%p263_p2)  ;;  %v2441_v22 = vld [vmem:[%s2880_s3 + $0x10] sm:$0xff] (!%p263_p2)  ;;  %v2446_v23 = vld [vmem:[%s2880_s3 + $0x18] sm:$0xff] (!%p263_p2)  ;;  %v494_v37 = vshrl.u32 (!%p263_p2), %v493_v36, 7  ;;  %vm723_vm13 = vcmask (!%p263_p2), 1043456  }
   0x8   : > { %2100 = vmatprep.subr.bf16.mxu0 (!%p263_p2), %v2338_v1  ;;  %v2451_v25 = vld [vmem:[%s2880_s3 + $0x20] sm:$0xff] (!%p263_p2)  ;;  %v2456_v26 = vld [vmem:[%s2880_s3 + $0x28] sm:$0xff] (!%p263_p2)  ;;  %v407_v27 = vpack.c.bf16 (!%p263_p2), %v2446_v23, %v2441_v22  ;;  %v2467_v29 = vld [vmem:[%s2880_s3 + $0x30] sm:$0xff] (!%p263_p2)  ;;  %vm672_vm14 = vsmask.f32 (!%p263_p2), 4352  ;;  %vm712_vm0 = vcmask (!%p263_p2), 1044480  }
   0x9   : > { %v408_v28 = vpack.c.bf16 (!%p263_p2), %v2456_v26, %v2451_v25  ;;  %v2472_v30 = vld [vmem:[%s2880_s3 + $0x38] sm:$0xff] (!%p263_p2)  ;;  %v2320_v32 = vld [vmem:[%s2881_s4 + $0x8] sm:$0xff] (!%p263_p2)   ;;  %v2483_v33 = vld [vmem:[%s2881_s4 + $0x10] sm:$0xff] (!%p263_p2)   ;;  %v495_v38 = vadd.s32 (!%p263_p2), 8, %v494_v37  ;;  %v496_v39 = vadd.s32 (!%p263_p2), 16, %v494_v37  ;;  %v497_v40 = vadd.s32 (!%p263_p2), 24, %v494_v37 }
   0xa   : > { %v409_v31 = vpack.c.bf16 (!%p263_p2), %v2472_v30, %v2467_v29  ;;  %v2488_v34 = vld [vmem:[%s2881_s4] sm:$0xff] (!%p263_p2)   ;;  %2240 = vmatprep.subr.bf16.mxu1 (!%p263_p2), %v2483_v33  ;;  %v2496_v35 = vld [vmem:[%s2881_s4 + $0x18] sm:$0xff] (!%p263_p2)   ;;  %v498_v41 = vadd.s32 (!%p263_p2), 32, %v494_v37  ;;  %v499_v42 = vadd.s32 (!%p263_p2), 40, %v494_v37  ;;  %v506_v43 = vand.u32 (!%p263_p2), 7, %v494_v37 }
   0xb   : > { %2101 = vmatpush3.bf16.msra.mxu0 (!%p263_p2), %v2317_v2  ;;  %2241 = vmatpush3.bf16.msra.mxu1 (!%p263_p2), %v2483_v33  ;;  %v513_v44 = vand.u32 (!%p263_p2), 7, %v495_v38  ;;  %v2499_v45 = vadd.s32 (!%p263_p2), 48, %v494_v37  ;;  %v2501_v46 = vadd.s32 (!%p263_p2), 56, %v494_v37  ;;  %v520_v47 = vand.u32 (!%p263_p2), 7, %v496_v39 }
   0xc   : > { %2102 = vmatprep.subr.bf16.mxu0 (!%p263_p2), %v2338_v1  ;;  %2150 = vmatprep.subr.bf16.mxu1 (!%p263_p2), %v2496_v35  ;;  %v527_v48 = vand.u32 (!%p263_p2), 7, %v497_v40  ;;  %v534_v49 = vand.u32 (!%p263_p2), 7, %v498_v41  ;;  %v541_v50 = vand.u32 (!%p263_p2), 7, %v499_v42  ;;  %vm598_vm3 = vcmp.ge.s32.totalorder (!%p263_p2), %v506_v43, 1 }
   0xd   : > { %s2905_s28 = smov (!%p296_p3, %s1929_s28), 1  ;;  %vm599_vm4 = vcmp.ge.s32.totalorder %v513_v44, 1  ;;  %v548_v51 = vand.u32 7, %v2499_v45  ;;  %v555_v52 = vand.u32 7, %v2501_v46  ;;  %vm600_vm5 = vcmp.ge.s32.totalorder %v520_v47, 1 }
   0xe   : > { %s2026_s13 = sshll.u32 %s2905_s28, 4  ;;  %vm601_vm6 = vcmp.ge.s32.totalorder %v527_v48, 1  ;;  %vm628_vm7 = vcmp.le.s32.totalorder %v520_v47, 6  ;;  %vm629_vm8 = vcmp.le.s32.totalorder %v527_v48, 6  ;;  %v1948_v53 = vsel %vm598_vm3, 1.0, %v2338_v1  ;;  %s2027_s19 = sshll.u32 %s2905_s28, 6 }
   0xf   : > { %s300_s16 = scalar_lea.vmem %s2877_s0, %s2026_s13  ;;  %2103 = vmatpush3.bf16.msra.mxu0 %v2318_v3  ;;  %v1949_v54 = vsel %vm599_vm4, 1.0, %v2338_v1  ;;  %vm630_vm9 = vcmp.le.s32.totalorder %v534_v49, 6  ;;  %vm631_vm10 = vcmp.le.s32.totalorder %v541_v50, 6  ;;  %v1950_v55 = vsel %vm600_vm5, 1.0, %v2338_v1  ;;  %s2856_s24 = scalar_lea.vmem %s2885_s8, %s2027_s19 }
  0x10   : > { %v2415_v5 = vld [vmem:[%s300_s16] sm:$0xff]  ;;  %v2417_v6 = vld [vmem:[%s300_s16 + $0x8] sm:$0xff]  ;;  %2104 = vmatprep.subr.bf16.mxu0 %v2338_v1  ;;  %v1951_v56 = vsel %vm601_vm6, 1.0, %v2338_v1  ;;  %vm632_vm11 = vcmp.le.s32.totalorder %v548_v51, 6  ;;  %vm633_vm12 = vcmp.le.s32.totalorder %v555_v52, 6  ;;  %v1958_v58 = vsel %vm628_vm7, 1.0, %v2338_v1 }
  0x11   : > { %v309_v7 = vmax.f32 %v2415_v5, 0.0  ;;  %v310_v8 = vmax.f32 %v2417_v6, 0.0  ;;  %v1959_v59 = vsel %vm629_vm8, 1.0, %v2338_v1  ;;  %v2515_v61 = vpack.c.bf16 %v1949_v54, %v1948_v53 }
  0x12   : > { %v1960_v62 = vsel %vm630_vm9, 1.0, %v2338_v1  ;;  %v1961_v63 = vsel %vm631_vm10, 1.0, %v2338_v1  ;;  %vm626_vm15 = vcmp.le.s32.totalorder %v506_v43, 6  ;;  %v2519_v2 = vpack.c.bf16 %v1951_v56, %v1950_v55  ;;  %vm2602_vm10 = vmand %vm712_vm0, %vm672_vm14 }
  0x13   : > { %v311_v9 = vpack.c.bf16 %v310_v8, %v309_v7  ;;  %2105 = vmatpush3.bf16.msra.mxu0 %v2319_v4  ;;  %v1962_v3 = vsel %vm632_vm11, 1.0, %v2338_v1  ;;  %v1963_v4 = vsel %vm633_vm12, 1.0, %v2338_v1  ;;  %vm627_vm3 = vcmp.le.s32.totalorder %v513_v44, 6 }
  0x14   : > { %vm2533_vm4 = vcmp.ge.s32.totalorder %v541_v50, 1  ;;  %vm900_vm5 = vsmask.f32 3328  ;;  %vm1017_vm6 = vsmask.f32 256  ;;  %vm1033_vm7 = vcmask 1040384  }
  0x15   : > { %vm1218_vm8 = vsmask.f32 7424  ;;  %v1953_v48 = vsel %vm2533_vm4, 1.0, %v2338_v1  ;;  %vm2594_vm9 = vcmp.ge.s32.totalorder %v548_v51, 1  ;;  %vm2655_vm11 = vmand %vm1033_vm7, %vm1017_vm6  ;;  %vm2664_vm12 = vcmp.ge.s32.totalorder %v555_v52, 1 }
  0x16   : > { %2107 = vmatmul.mubr.msk.bf16.vlgmr.msra.gmra.mrb[0].mxu0 %vm351_vm1, %v311_v9  ;;  %vm2525_vm1 = vcmp.ge.s32.totalorder %v534_v49, 1 }
  0x17   : > { %2112 = vmatprep.mubr.msk.bf16.mxu0 %vm411_vm2, %v406_v12  ;;  %v2529_v12 = vpack.c.bf16 %v1959_v59, %v1958_v58  ;;  %v1952_v37 = vsel %vm2525_vm1, 1.0, %v2338_v1 }
  0xe9   : > { %v389_v14 = vpop.f32.mrb[0].mxu0 }
  0xea   : > { %v390_v15 = vadd.f32 %v1938_v13, %v389_v14  ;;  %v2108_v16 = vpop.f32.mrb[1].mxu0 }
  0xeb   : > { %v392_v17 = vpop.f32.mrb[2].mxu0  ;;  %v1956_v16 = vsel %vm626_vm15, 1.0, %v2338_v1  ;;  %vm1234_vm15 = vcmask 1047552  }
  0xec   : > { %v393_v18 = vadd.f32 %v1938_v13, %v392_v17  ;;  %v2109_v19 = vpop.f32.mrb[3].mxu0  ;;  %v396_v20 = vmax.f32 %v390_v15, 0.0  ;;  %v2537_v15 = vpack.c.bf16 %v1961_v63, %v1960_v62  ;;  %vm1235_vm0 = vmand %vm1234_vm15, %vm1218_vm8 }
  0xee   : > { %v397_v21 = vmax.f32 %v393_v18, 0.0 }
  0xf0   : > { %v410_v24 = vpack.c.bf16 %v397_v21, %v396_v20  ;;  %v2547_v20 = vpack.c.bf16 %v1963_v4, %v1962_v3 }
  0xf2   : > { %2110 = vmatprep.subr.bf16.mxu0 %v410_v24 }
  0xf3   : > { %2111 = vmatpush3.bf16.msra.mxu0 %v410_v24 }
  0xf4   : > { %2120 = vmatprep.subr.bf16.mxu0 %v2320_v32 }
  0xf6   : > { %2113 = vmatmul.mubr.msk.bf16.vlgmr.msra.gmra.mrb[4].mxu0 %vm411_vm2, %v407_v27 }
  0xf7   : > { %2116 = vmatprep.mubr.msk.bf16.mxu0 %vm411_vm2, %v408_v28  ;;  %2121 = vmatpush3.bf16.msra.mxu0 %v2320_v32  ;;  %v1957_v28 = vsel %vm627_vm3, 1.0, %v2338_v1 }
  0xf8   : > { %2130 = vmatprep.subr.bf16.mxu0 %v2488_v34  ;;  %v2575_v49 = vpack.c.bf16 %v1957_v28, %v1956_v16 }
  0xfe   : > { %2117 = vmatmul.mubr.msk.bf16.gmra.mrb[8].mxu0 %vm411_vm2, %v409_v31 }
 0x1c9   : > { %v2114_v57 = vpop.f32.mrb[4].mxu0 }
 0x1ca   : > { %v458_v60 = vpop.f32.mrb[5].mxu0 }
 0x1cb   : > { %v2115_v0 = vpop.f32.mrb[6].mxu0 }
 0x1cc   : > { %v2523_v7 = vpack.c.bf16 %v2115_v0, %v2114_v57  ;;  %v461_v8 = vpop.f32.mrb[7].mxu0 }
 0x1cd   : > { %v2531_v13 = vpack.c.bf16 %v461_v8, %v458_v60 }
 0x1ce   : > { %v2541_v17 = vshrl.u32 %v2523_v7, 16  ;;  %v2544_v18 = vshll.u32 %v2523_v7, 16  ;;  %v725_v19 = vrot.slane %v2523_v7, 4 }
 0x1cf   : > { %v2550_v21 = vshrl.u32 %v2531_v13, 16  ;;  %v2553_v24 = vshll.u32 %v2531_v13, 16  ;;  %v724_v27 = vrot.slane %v2531_v13, 4 }
 0x1d0   : > { %v684_v31 = vrot.slane %v2541_v17, 3  ;;  %v687_v32 = vrot.slane %v2544_v18, 4  ;;  %v1020_v36 = vrot.slane %v2541_v17, 7  ;;  %v2887_v43 = vrot.slane %v2544_v18, 1 }
 0x1d1   : > { %v901_v38 = vrot.slane %v2550_v21, 4  ;;  %v902_v39 = vrot.slane %v2553_v24, 5  ;;  %v2118_v40 = vpop.f32.mrb[8].mxu0  ;;  %v734_v41 = vsel %vm723_vm13, 0, %v724_v27  ;;  %v2567_v42 = vsel %vm723_vm13, %v724_v27, %v725_v19 }
 0x1d2   : > { %v474_v44 = vpop.f32.mrb[9].mxu0  ;;  %2122 = vmatprep.mubr.msk.bf16.mxu0 %vm411_vm2, %v734_v41  ;;  %v676_v47 = vrot.slane %v2550_v21, 3  ;;  %v2577_v50 = vor.u32 %v687_v32, %v684_v31  ;;  %v679_v54 = vrot.slane %v2553_v24, 4  ;;  %v904_v55 = vrot.slane %v2541_v17, 4 }
 0x1d3   : > { %v2119_v53 = vpop.f32.mrb[10].mxu0  ;;  %2123 = vmatmul.mubr.msk.bf16.vlgmr.msra.gmra.mrb[12].mxu0 %vm411_vm2, %v2567_v42  ;;  %v905_v56 = vrot.slane %v2544_v18, 5  ;;  %v1021_v57 = vor.u32 %v1020_v36, %v2544_v18  ;;  %v2590_v60 = vor.u32 %v902_v39, %v901_v38  ;;  %v1223_v45 = vor.u32 %v2887_v43, %v2541_v17 }
 0x1d4   : > { %v2587_v58 = vpack.c.bf16 %v2119_v53, %v2118_v40  ;;  %v477_v59 = vpop.f32.mrb[11].mxu0  ;;  %2131 = vmatpush3.bf16.msra.mxu0 %v2488_v34  ;;  %v680_v0 = vor.u32 %v679_v54, %v676_v47  ;;  %v1018_v34 = vrot.slane %v2550_v21, 7 }
 0x1d5   : > { %v2598_v63 = vpack.c.bf16 %v477_v59, %v474_v44  ;;  %v906_v4 = vor.u32 %v905_v56, %v904_v55  ;;  %2140 = vmatprep.subr.bf16.mxu0 %v2483_v33  ;;  %v1955_v59 = vsel %vm2664_vm12, 1.0, %v2338_v1 }
 0x1d6   : > { %v2612_v51 = vshrl.u32 %v2587_v58, 16  ;;  %v2615_v8 = vshll.u32 %v2587_v58, 16  ;;  %v2886_v9 = vrot.slane %v2587_v58, 4  ;;  %v2625_v28 = vsel %vm672_vm14, %v680_v0, %v2577_v50 }
 0x1d7   : > { %v2619_v14 = vshrl.u32 %v2598_v63, 16  ;;  %v694_v16 = vshll.u32 %v2598_v63, 16  ;;  %v727_v27 = vrot.slane %v2598_v63, 4  ;;  %v714_v31 = vsel %vm2602_vm10, 0, %v680_v0 }
 0x1d8   : > { %v2631_v32 = vsel %vm900_vm5, %v2590_v60, %v906_v4  ;;  %v912_v38 = vrot.slane %v2612_v51, 4  ;;  %v913_v39 = vrot.slane %v2615_v8, 5  ;;  %v1019_v47 = vor.u32 %v1018_v34, %v2553_v24 }
 0x1d9   : > { %v1224_v40 = vrot.slane %v694_v16, 1  ;;  %v2636_v41 = vsel %vm723_vm13, %v725_v19, %v727_v27  ;;  %v2641_v44 = vsel %vm723_vm13, %v727_v27, %v2886_v9  ;;  %v715_v53 = vmul.bf16 %v714_v31, %v2515_v61 }
 0x1da   : > { %2126 = vmatprep.mubr.msk.bf16.mxu0 %vm411_vm2, %v2636_v41  ;;  %v908_v54 = vrot.slane %v2619_v14, 4  ;;  %v909_v55 = vrot.slane %v694_v16, 5  ;;  %v914_v56 = vor.u32 %v913_v39, %v912_v38  ;;  %v2659_v0 = vpack.c.bf16 %v1953_v48, %v1952_v37 }
 0x1db   : > { %2127 = vmatmul.mubr.msk.bf16.gmra.mrb[16].mxu0 %vm411_vm2, %v2641_v44  ;;  %v2651_v19 = vsel %vm1218_vm8, %v1223_v45, %v1224_v40  ;;  %v693_v27 = vrot.slane %v2619_v14, 3  ;;  %v696_v38 = vrot.slane %v694_v16, 4  ;;  %v1954_v39 = vsel %vm2594_vm9, 1.0, %v2338_v1 }
 0x1dc   : > { %2132 = vmatprep.mubr.msk.bf16.mxu0 %vm411_vm2, %v715_v53  ;;  %v910_v45 = vor.u32 %v909_v55, %v908_v54  ;;  %v1219_v9 = vrot.slane %v2553_v24, 1  ;;  %v1022_v37 = vsel %vm1017_vm6, %v1018_v34, %v1021_v57  ;;  %v1023_v48 = vrot.slane %v2619_v14, 7 }
 0x1dd   : > { %v702_v46 = vrot.slane %v2612_v51, 3  ;;  %v705_v52 = vrot.slane %v2615_v8, 4  ;;  %v1035_v62 = vsel %vm2655_vm11, 0, %v1019_v47  ;;  %v697_v54 = vor.u32 %v696_v38, %v693_v27 }
 0x1de   : > { %v2678_v43 = vsel %vm900_vm5, %v906_v4, %v910_v45  ;;  %v2681_v53 = vsel %vm900_vm5, %v910_v45, %v914_v56  ;;  %v1024_v55 = vor.u32 %v1023_v48, %v694_v16  ;;  %v1026_v27 = vrot.slane %v2612_v51, 7  ;;  %v2324_v16 = vld [vmem:[%s2881_s4 + $0x20] sm:$0xff]  }
 0x1df   : > { %v924_v24 = vmul.bf16 %v2678_v43, %v2537_v15  ;;  %v1515_v57 = vmul.bf16 %v2678_v43, %v2529_v12  ;;  %v925_v34 = vmul.bf16 %v2681_v53, %v2547_v20  ;;  %v2693_v4 = vsel %vm672_vm14, %v2577_v50, %v697_v54 }
 0x1e0   : > { %v2698_v47 = vor.u32 %v705_v52, %v702_v46  ;;  %v1036_v45 = vmul.bf16 %v1035_v62, %v2515_v61  ;;  %v716_v38 = vmul.bf16 %v2625_v28, %v2519_v2  ;;  %v1025_v50 = vsel %vm1017_vm6, %v1020_v36, %v1024_v55  ;;  %v2325_v55 = vld [vmem:[%s2881_s4 + $0x28] sm:$0xff]  }
 0x1e1   : > { %2146 = vmatprep.mubr.msk.bf16.mxu1 %vm411_vm2, %v924_v24  ;;  %v1220_v1 = vor.u32 %v1219_v9, %v2550_v21  ;;  %v717_v31 = vmul.bf16 %v2693_v4, %v2659_v0  ;;  %v1027_v52 = vor.u32 %v1026_v27, %v2615_v8  ;;  %v1226_v17 = vor.u32 %v1224_v40, %v2619_v14 }
 0x1e2   : > { %2147 = vmatmul.mubr.msk.bf16.vlgmr.msra.gmra.mrb[0].mxu1 %vm411_vm2, %v925_v34  ;;  %v2717_v46 = vsel %vm672_vm14, %v697_v54, %v2698_v47  ;;  %v2900_v36 = vrot.slane %v2544_v18, 1  ;;  %v1227_v9 = vrot.slane %v2615_v8, 1  ;;  %vm2731_vm14 = vmand %vm723_vm13, %vm900_vm5  ;;  %v1333_v18 = vsel %vm2602_vm10, %v2698_v47, 0 }
 0x1e3   : > { %2152 = vmatprep.mubr.msk.bf16.mxu1 %vm411_vm2, %v1036_v45  ;;  %2133 = vmatmul.mubr.msk.bf16.vlgmr.msra.gmra.mrb[12].mxu0 %vm411_vm2, %v716_v38  ;;  %v1028_v14 = vsel %vm1017_vm6, %v1023_v48, %v1027_v52  ;;  %v625_v40 = vpack.c.bf16 %v1955_v59, %v1954_v39  ;;  %v1516_v54 = vmul.bf16 %v2681_v53, %v2537_v15  ;;  %v921_v48 = vsel %vm2731_vm14, 0, %v2590_v60  ;;  %v2009_v38 = vld [vmem:[%s2882_s5] ss:$0 sm:$0xff] }
 0x1e4   : > { %v1222_v21 = vsel %vm1218_vm8, %v1220_v1, %v2900_v36  ;;  %2136 = vmatprep.mubr.msk.bf16.mxu0 %vm411_vm2, %v717_v31  ;;  %2151 = vmatpush3.bf16.msra.mxu1 %v2496_v35  ;;  %v1228_v8 = vsel %vm1218_vm8, %v1226_v17, %v1227_v9  ;;  %v1514_v35 = vmul.bf16 %v2631_v32, %v2575_v49  ;;  %v1513_v3 = vsel %vm2731_vm14, %v914_v56, 0 }
 0x1e5   : > { %2160 = vmatprep.subr.bf16.mxu1 %v2324_v16  ;;  %2141 = vmatpush3.bf16.msra.mxu0 %v2483_v33  ;;  %v1037_v39 = vmul.bf16 %v1022_v37, %v2519_v2  ;;  %v1517_v24 = vmul.bf16 %v1513_v3, %v2547_v20  ;;  %v1038_v33 = vmul.bf16 %v1025_v50, %v2659_v0  ;;  %v2326_v37 = vld [vmem:[%s2881_s4 + $0x30] sm:$0xff]  }
 0x1e6   : > { %v718_v34 = vmul.bf16 %v2717_v46, %v625_v40  ;;  %v922_v53 = vmul.bf16 %v921_v48, %v2575_v49  ;;  %v1039_v60 = vmul.bf16 %v1028_v14, %v625_v40  ;;  %v923_v56 = vmul.bf16 %v2631_v32, %v2529_v12 }
 0x1e7   : > { %v1237_v32 = vmul.bf16 %v1222_v21, %v2575_v49  ;;  %v1239_v59 = vmul.bf16 %v1228_v8, %v2537_v15  ;;  %v1335_v15 = vmul.bf16 %v2693_v4, %v2519_v2  ;;  %v1336_v27 = vmul.bf16 %v2717_v46, %v2659_v0 }
 0x1e8   : > { %v2903_v2 = vrot.slane %v2587_v58, 4 }
 0x1ea   : > { %2153 = vmatmul.mubr.msk.bf16.vlgmr.msra.gmra.mrb[4].mxu1 %vm411_vm2, %v1037_v39 }
 0x1eb   : > { %2156 = vmatprep.mubr.msk.bf16.mxu1 %vm411_vm2, %v1038_v33  ;;  %2137 = vmatmul.mubr.msk.bf16.gmra.mrb[16].mxu0 %vm411_vm2, %v718_v34 }
 0x1ec   : > { %2142 = vmatprep.mubr.msk.bf16.mxu0 %vm411_vm2, %v922_v53  ;;  %2161 = vmatpush3.bf16.msra.mxu1 %v2324_v16 }
 0x1ed   : > { %2170 = vmatprep.subr.bf16.mxu1 %v2325_v55 }
 0x1f2   : > { %2157 = vmatmul.mubr.msk.bf16.gmra.mrb[0].mxu1 %vm411_vm2, %v1039_v60 }
 0x1f3   : > { %2162 = vmatprep.mubr.msk.bf16.mxu1 %vm411_vm2, %v2531_v13  ;;  %2143 = vmatmul.mubr.msk.bf16.vlgmr.msra.gmra.mrb[12].mxu0 %vm411_vm2, %v923_v56  ;;  %v1238_v13 = vmul.bf16 %v2651_v19, %v2529_v12  ;;  %v1334_v19 = vmul.bf16 %v2625_v28, %v2515_v61  ;;  %v1337_v61 = vmul.bf16 %v1333_v18, %v625_v40 }
 0x1fa   : > { %2163 = vmatmul.mubr.msk.bf16.vlgmr.msra.gmra.mrb[4].mxu1 %vm411_vm2, %v2523_v7  ;;  %v2327_v7 = vld [vmem:[%s2881_s4 + $0x38] sm:$0xff]  }
 0x1fb   : > { %2166 = vmatprep.mubr.msk.bf16.mxu1 %vm411_vm2, %v2598_v63  ;;  %2171 = vmatpush3.bf16.msra.mxu1 %v2325_v55  ;;  %v1229_v63 = vor.u32 %v1227_v9, %v2612_v51  ;;  %v2328_v51 = vld [vmem:[%s2881_s4 + $0x40] sm:$0xff]  }
 0x1fc   : > { %2180 = vmatprep.subr.bf16.mxu1 %v2326_v37 }
 0x1fd   : > { %v1236_v49 = vsel %vm1235_vm0, %v1229_v63, 0 }
 0x1fe   : > { %v1240_v47 = vmul.bf16 %v1236_v49, %v2547_v20  ;;  %v1430_v20 = vsel %vm723_vm13, %v2903_v2, 0 }
 0x202   : > { %2167 = vmatmul.mubr.msk.bf16.gmra.mrb[0].mxu1 %vm411_vm2, %v2587_v58  ;;  %v2236_v58 = vpack.c.bf16 %v2417_v6, %v2415_v5 }
 0x203   : > { %2172 = vmatprep.mubr.msk.bf16.mxu1 %vm411_vm2, %v1237_v32 }
 0x20a   : > { %2173 = vmatmul.mubr.msk.bf16.vlgmr.msra.gmra.mrb[4].mxu1 %vm411_vm2, %v1238_v13 }
 0x20b   : > { %2176 = vmatprep.mubr.msk.bf16.mxu1 %vm411_vm2, %v1239_v59  ;;  %2181 = vmatpush3.bf16.msra.mxu1 %v2326_v37 }
 0x20c   : > { %2190 = vmatprep.subr.bf16.mxu1 %v2327_v7 }
 0x212   : > { %2177 = vmatmul.mubr.msk.bf16.gmra.mrb[0].mxu1 %vm411_vm2, %v1240_v47 }
 0x213   : > { %2182 = vmatprep.mubr.msk.bf16.mxu1 %vm411_vm2, %v1334_v19 }
 0x21a   : > { %2183 = vmatmul.mubr.msk.bf16.vlgmr.msra.gmra.mrb[4].mxu1 %vm411_vm2, %v1335_v15 }
 0x21b   : > { %2186 = vmatprep.mubr.msk.bf16.mxu1 %vm411_vm2, %v1336_v27  ;;  %2191 = vmatpush3.bf16.msra.mxu1 %v2327_v7 }
 0x21c   : > { %2200 = vmatprep.subr.bf16.mxu1 %v2328_v51 }
 0x222   : > { %2187 = vmatmul.mubr.msk.bf16.gmra.mrb[0].mxu1 %vm411_vm2, %v1337_v61 }
 0x223   : > { %2192 = vmatprep.mubr.msk.bf16.mxu1 %vm411_vm2, %v2567_v42  ;;  %v2329_v42 = vld [vmem:[%s2883_s6] sm:$0xff]  }
 0x224   : > { %2210 = vmatprep.subr.bf16.mxu0 %v2329_v42 }
 0x225   : > { %2211 = vmatpush3.bf16.msra.mxu0 %v2329_v42 }
 0x226   : > { %2237 = vmatprep.subr.bf16.mxu0 %v2236_v58 }
 0x22a   : > { %2193 = vmatmul.mubr.msk.bf16.vlgmr.msra.gmra.mrb[4].mxu1 %vm411_vm2, %v2636_v41 }
 0x22b   : > { %2196 = vmatprep.mubr.msk.bf16.mxu1 %vm411_vm2, %v2641_v44  ;;  %2201 = vmatpush3.bf16.msra.mxu1 %v2328_v51 }
 0x232   : > { %2197 = vmatmul.mubr.msk.bf16.gmra.mrb[0].mxu1 %vm411_vm2, %v1430_v20 }
 0x233   : > { %2202 = vmatprep.mubr.msk.bf16.mxu1 %vm411_vm2, %v1514_v35 }
 0x23a   : > { %2203 = vmatmul.mubr.msk.bf16.vlgmr.msra.gmra.mrb[4].mxu1 %vm411_vm2, %v1515_v57 }
 0x23b   : > { %2206 = vmatprep.mubr.msk.bf16.mxu1 %vm411_vm2, %v1516_v54 }
 0x242   : > { %2207 = vmatmul.mubr.msk.bf16.gmra.mrb[0].mxu1 %vm411_vm2, %v1517_v24 }
 0x2be   : > { %v2138_v28 = vpop.f32.mrb[16].mxu0 }
 0x2bf   : > { %v885_v41 = vpop.f32.mrb[17].mxu0 }
 0x2c0   : > { %v2139_v44 = vpop.f32.mrb[18].mxu0 }
 0x2c1   : > { %v888_v12 = vpop.f32.mrb[19].mxu0 }
 0x2c6   : > { %v2144_v43 = vpop.f32.mrb[12].mxu0 }
 0x2c7   : > { %v978_v0 = vpop.f32.mrb[13].mxu0 }
 0x2c8   : > { %v2145_v57 = vpop.f32.mrb[14].mxu0 }
 0x2c9   : > { %v981_v4 = vpop.f32.mrb[15].mxu0 }
 0x30d   : > { %v2204_v45 = vpop.f32.mrb[4].mxu1 }
 0x30e   : > { %v2242_v50 = vadd.f32 %v2204_v45, %v2144_v43  ;;  %v1570_v16 = vpop.f32.mrb[5].mxu1 }
 0x30f   : > { %v2243_v1 = vadd.f32 %v1570_v16, %v978_v0  ;;  %v2205_v31 = vpop.f32.mrb[6].mxu1 }
 0x310   : > { %v1618_v46 = vadd.f32 %v2242_v50, %v2009_v38  ;;  %v2244_v5 = vadd.f32 %v2205_v31, %v2145_v57  ;;  %v1573_v6 = vpop.f32.mrb[7].mxu1 }
 0x311   : > { %v1616_v52 = vadd.f32 %v2243_v1, %v2009_v38  ;;  %v2245_v17 = vadd.f32 %v1573_v6, %v981_v4 }
 0x312   : > { %v1619_v36 = vadd.f32 %v2244_v5, %v2009_v38  ;;  %v1626_v9 = vmax.f32 %v1618_v46, 0.0 }
 0x313   : > { %v1617_v21 = vadd.f32 %v2245_v17, %v2009_v38  ;;  %v1624_v14 = vmax.f32 %v1616_v52, 0.0 }
 0x314   : > { %v1627_v62 = vmax.f32 %v1619_v36, 0.0 }
 0x315   : > { %v1625_v18 = vmax.f32 %v1617_v21, 0.0  ;;  %v2208_v40 = vpop.f32.mrb[0].mxu1 }
 0x316   : > { %v1633_v8 = vpack.c.bf16 %v1627_v62, %v1626_v9  ;;  %v2246_v35 = vadd.f32 %v2208_v40, %v2138_v28  ;;  %v1586_v54 = vpop.f32.mrb[1].mxu1 }
 0x317   : > { %v1632_v48 = vpack.c.bf16 %v1625_v18, %v1624_v14  ;;  %v2247_v3 = vadd.f32 %v1586_v54, %v885_v41  ;;  %v2209_v39 = vpop.f32.mrb[2].mxu1 }
 0x318   : > { %v1622_v24 = vadd.f32 %v2246_v35, %v2009_v38  ;;  %v2248_v33 = vadd.f32 %v2209_v39, %v2139_v44  ;;  %v1589_v34 = vpop.f32.mrb[3].mxu1 }
 0x319   : > { %v1620_v55 = vadd.f32 %v2247_v3, %v2009_v38  ;;  %v2249_v53 = vadd.f32 %v1589_v34, %v888_v12  ;;  %2212 = vmatprep.mubr.msk.bf16.mxu0 %vm411_vm2, %v1632_v48 }
 0x31a   : > { %v1623_v60 = vadd.f32 %v2248_v33, %v2009_v38  ;;  %2213 = vmatmul.mubr.msk.bf16.vlgmr.msra.gmra.mrb[20].mxu0 %vm411_vm2, %v1633_v8  ;;  %v1630_v37 = vmax.f32 %v1622_v24, 0.0 }
 0x31b   : > { %v1621_v56 = vadd.f32 %v2249_v53, %v2009_v38  ;;  %2239 = vmatpush3.bf16.msra.mxu0 %v2236_v58  ;;  %v1628_v13 = vmax.f32 %v1620_v55, 0.0 }
 0x31c   : > { %v1631_v32 = vmax.f32 %v1623_v60, 0.0 }
 0x31d   : > { %v1629_v7 = vmax.f32 %v1621_v56, 0.0 }
 0x31e   : > { %v1635_v59 = vpack.c.bf16 %v1631_v32, %v1630_v37 }
 0x31f   : > { %v1634_v63 = vpack.c.bf16 %v1629_v7, %v1628_v13 }
 0x321   : > { %2216 = vmatprep.mubr.msk.bf16.mxu0 %vm411_vm2, %v1634_v63 }
 0x322   : > { %2217 = vmatmul.mubr.msk.bf16.gmra.mrb[24].mxu0 %vm411_vm2, %v1635_v59 }
 0x323   : > { %2224 = vmatprep.mubr.msk.f32.mxu0 %vm411_vm2, %v2425_v10 }
 0x32a   : > { %2225 = vmatmul.mubr.msk.f32.vlgmr.msra.gmra.mrb[28].mxu0 %vm411_vm2, %v2430_v11 }
 0x32b   : > { %2227 = vmatprep.mubr.msk.f32.mxu0 %vm411_vm2, %v2441_v22 }
 0x32e   : > { %2228 = vmatmul.mubr.msk.f32.gmra.mrb[30].mxu0 %vm411_vm2, %v2446_v23 }
 0x32f   : > { %2230 = vmatprep.mubr.msk.f32.mxu0 %vm411_vm2, %v2451_v25  ;;  %v2010_v25 = vld [vmem:[%s2884_s7] ss:$0 sm:$0xff] }
 0x332   : > { %2231 = vmatmul.mubr.msk.f32.gmra.mrb[32].mxu0 %vm411_vm2, %v2456_v26 }
 0x333   : > { %2233 = vmatprep.mubr.msk.f32.mxu0 %vm411_vm2, %v2467_v29 }
 0x336   : > { %2234 = vmatmul.mubr.msk.f32.gmra.mrb[34].mxu0 %vm411_vm2, %v2472_v30  ;;  %vm1865_vm2 = vcmask 261120  }
 0x3ed   : > { %v2214_v10 = vpop.f32.mrb[20].mxu0 }
 0x3ee   : > { %v1697_v11 = vpop.f32.mrb[21].mxu0  ;;  %v1706_v20 = vadd.f32 %v2214_v10, %v2010_v25 }
 0x3ef   : > { %v2215_v49 = vpop.f32.mrb[22].mxu0  ;;  %v1698_v29 = vadd.f32 %v2010_v25, %v1697_v11 }
 0x3f0   : > { %v1700_v47 = vpop.f32.mrb[23].mxu0  ;;  %v1709_v2 = vadd.f32 %v2215_v49, %v2010_v25 }
 0x3f1   : > { %v1701_v26 = vadd.f32 %v2010_v25, %v1700_v47 }
 0x3f5   : > { %v2218_v22 = vpop.f32.mrb[24].mxu0 }
 0x3f6   : > { %v1713_v19 = vpop.f32.mrb[25].mxu0  ;;  %v1722_v38 = vadd.f32 %v2218_v22, %v2010_v25 }
 0x3f7   : > { %v2219_v15 = vpop.f32.mrb[26].mxu0  ;;  %v1714_v12 = vadd.f32 %v2010_v25, %v1713_v19 }
 0x3f8   : > { %v1716_v23 = vpop.f32.mrb[27].mxu0  ;;  %v1725_v45 = vadd.f32 %v2219_v15, %v2010_v25 }
 0x3f9   : > { %v1717_v44 = vadd.f32 %v2010_v25, %v1716_v23 }
 0x3fd   : > { %v2226_v30 = vpop.f32.mrb[28].mxu0 }
 0x3fe   : > { %v1858_v51 = vadd.f32 %v2226_v30, %v1701_v26  ;;  %v1818_v27 = vpop.f32.mrb[29].mxu0 }
 0x3ff   : > { %v1857_v61 = vadd.f32 %v1818_v27, %v1698_v29 }
 0x400   : > { %1867 = vst.msk [vmem:[%s2856_s24 + $0x8] sm:$0xff] %vm1865_vm2, %v1858_v51 }
 0x401   : > { %1866 = vst.msk [vmem:[%s2856_s24] sm:$0xff] %vm1865_vm2, %v1857_v61  ;;  %v2229_v42 = vpop.f32.mrb[30].mxu0 }
 0x402   : > { %v1860_v58 = vadd.f32 %v2229_v42, %v1709_v2  ;;  %v1828_v28 = vpop.f32.mrb[31].mxu0 }
 0x403   : > { %v1859_v41 = vadd.f32 %v1828_v28, %v1706_v20 }
 0x404   : > { %1869 = vst.msk [vmem:[%s2856_s24 + $0x18] sm:$0xff] %vm1865_vm2, %v1860_v58 }
 0x405   : > { %1868 = vst.msk [vmem:[%s2856_s24 + $0x10] sm:$0xff] %vm1865_vm2, %v1859_v41  ;;  %v2232_v43 = vpop.f32.mrb[32].mxu0 }
 0x406   : > { %v1862_v0 = vadd.f32 %v2232_v43, %v1717_v44  ;;  %v1838_v57 = vpop.f32.mrb[33].mxu0 }
 0x407   : > { %v1861_v4 = vadd.f32 %v1838_v57, %v1714_v12 }
 0x408   : > { %1871 = vst.msk [vmem:[%s2856_s24 + $0x28] sm:$0xff] %vm1865_vm2, %v1862_v0 }
 0x409   : > { %1870 = vst.msk [vmem:[%s2856_s24 + $0x20] sm:$0xff] %vm1865_vm2, %v1861_v4  ;;  %v2235_v50 = vpop.f32.mrb[34].mxu0 }
 0x40a   : > { %v1864_v16 = vadd.f32 %v2235_v50, %v1725_v45  ;;  %v1848_v1 = vpop.f32.mrb[35].mxu0 }
 0x40b   : > { %v1863_v31 = vadd.f32 %v1848_v1, %v1722_v38 }
 0x40c   : > { %1873 = vst.msk [vmem:[%s2856_s24 + $0x38] sm:$0xff] %vm1865_vm2, %v1864_v16 }
 0x40d   : > { %1872 = vst.msk [vmem:[%s2856_s24 + $0x30] sm:$0xff] %vm1865_vm2, %v1863_v31 }
 0x40e PF: > { %s18_s27 = sadd.s32 1, %s2336_s27  }
 0x40f   : > { %p15_p4 = scmp.ge.s32.totalorder %s18_s27, 4  }
 0x411   :  { %17 = sbr.rel (!%p15_p4) target bundleno = 1 (0x1), region = 82 }

// kernel: _lambda_.7
= control target key start
LH: loop header
LB: loop body
LE: loop exit
PB: predicated region body
PF: predicated region fallthrough
CT: control target
= control target key end

     0   :  { %s2288_s30 = smov 0   ;;  %s2761_s0 = inlined_call_operand.vmem [shape: f32[2,64,32], index: 0, kind: input, shape index: {}]   ;;  %s2762_s1 = inlined_call_operand.vmem [shape: bf16[32,8], index: 1, kind: input, shape index: {}]   ;;  %s2763_s2 = inlined_call_operand.vmem [shape: f32[1,8], index: 2, kind: input, shape index: {}]   ;;  %s2764_s3 = inlined_call_operand.vmem [shape: bf16[72,8], index: 3, kind: input, shape index: {}]   ;;  %s2765_s4 = inlined_call_operand.vmem [shape: f32[1,8], index: 4, kind: input, shape index: {}]   ;;  %s2766_s5 = inlined_call_operand.vmem [shape: bf16[8,32], index: 5, kind: input, shape index: {}]   ;;  %s2767_s6 = inlined_call_operand.vmem [shape: f32[1,32], index: 6, kind: input, shape index: {}]   ;;  %s2768_s7 = inlined_call_operand.vmem [shape: bf16[32,3], index: 7, kind: input, shape index: {}]   ;;  %s2769_s8 = inlined_call_operand.vmem [shape: f32[1,3], index: 8, kind: input, shape index: {}]   ;;  %s2770_s9 = inlined_call_operand.vmem [shape: f32[2,64,3], index: 9, kind: output, shape index: {}]  }
   0x1 LB: > { %s1863_s10 = sadd.s32 4294967295, %s2235_s30   ;;  %p1867_p0 = scmp.ge.s32.totalorder %s2235_s30, 1  ;;  %s2235_s30 = sphi %s2288_s30, %s19_s30  }
   0x2   : > { %p287_p1 = scmp.lt.s32.totalorder %s2235_s30, 3 }
   0x4   : > { %p288_p2 = pnand %p1867_p0, %p287_p1 }
   0x5   : > { %v2225_v0 = vld [vmem:[%s2762_s1] sm:$0xff] (!%p288_p2)   ;;  %p323_p3 = scmp.lt.s32.totalorder (!%p288_p2), %s1863_s10, 1  ;;  %v2226_v1 = vld [vmem:[%s2762_s1 + $0x8] sm:$0xff] (!%p288_p2)   ;;  %vm377_vm0 = vcmask (!%p288_p2), 261120   ;;  %vm688_vm1 = vcmask (!%p288_p2), 1043456   ;;  %v467_v28 = vlaneseq (!%p288_p2)  ;;  %v2237_v42 = vmov (!%p288_p2), 0.0  }
   0x6   : > { %291 = sbr.rel (%p288_p2) target bundleno = 1010 (0x3f2), region = 56  ;;  %2018 = vmatprep.subr.bf16.mxu0 (!%p288_p2), %v2225_v0  ;;  %v629_v22 = vld [vmem:[%s2764_s3 + $0x4] sm:$0xf] (!%p288_p2)  ;;  %v631_v24 = vld [vmem:[%s2764_s3 + $0xc] sm:$0xf] (!%p288_p2)  ;;  %vm700_vm6 = vcmask (!%p288_p2), 64512  }
   0x7   : > { %2019 = vmatpush3.bf16.msra.mxu0 (!%p288_p2), %v2225_v0  ;;  %v713_v23 = vsel (!%p288_p2), %vm688_vm1, %v629_v22, 0  ;;  %2209 = vmatprep.subr.msk.bf16.mxu1 (!%p288_p2), %vm688_vm1, %v631_v24  ;;  %v1010_v25 = vsel (!%p288_p2), %vm688_vm1, %v631_v24, 0  ;;  %v632_v26 = vld [vmem:[%s2764_s3 + $0x10] sm:$0xf] (!%p288_p2)  ;;  %v628_v27 = vld [vmem:[%s2764_s3] sm:$0xf] (!%p288_p2) }
   0x8   : > { %2020 = vmatprep.subr.bf16.mxu0 (!%p288_p2), %v2226_v1  ;;  %2061 = vmatpush3.bf16.msra.mxu1 (!%p288_p2), %v1010_v25  ;;  %v2356_v29 = vshrl.u32 (!%p288_p2), %v467_v28, 7  ;;  %v1872_v41 = vld [vmem:[%s2763_s2] ss:$0 sm:$0xff] (!%p288_p2)  ;;  %vm974_vm7 = vsmask.f32 (!%p288_p2), 256  ;;  %vm990_vm8 = vcmask (!%p288_p2), 1040384  }
   0x9   : > { %2210 = vmatprep.subr.msk.bf16.mxu1 (!%p288_p2), %vm688_vm1, %v632_v26  ;;  %vm637_vm13 = vsmask.f32 (!%p288_p2), 4352  ;;  %vm677_vm14 = vcmask (!%p288_p2), 1044480   ;;  %vm2461_vm15 = vmand (!%p288_p2), %vm990_vm8, %vm974_vm7 }
   0xa   : > { %v2359_v30 = vadd.s32 (!%p288_p2), 8, %v2356_v29  ;;  %v2362_v31 = vadd.s32 (!%p288_p2), 16, %v2356_v29  ;;  %v2365_v32 = vadd.s32 (!%p288_p2), 24, %v2356_v29  ;;  %v480_v33 = vand.u32 (!%p288_p2), 7, %v2356_v29 }
   0xb   : > { %2021 = vmatpush3.bf16.msra.mxu0 (!%p288_p2), %v2226_v1  ;;  %v2374_v37 = vadd.s32 (!%p288_p2), 48, %v2356_v29  ;;  %v2377_v38 = vadd.s32 (!%p288_p2), 56, %v2356_v29  ;;  %v2384_v39 = vadd.s32 (!%p288_p2), 32, %v2356_v29  ;;  %v2387_v40 = vadd.s32 (!%p288_p2), 40, %v2356_v29 }
   0xc   : > { %2206 = vmatprep.subr.msk.bf16.mxu0 (!%p288_p2), %vm688_vm1, %v629_v22  ;;  %v487_v34 = vand.u32 (!%p288_p2), 7, %v2359_v30  ;;  %v2777_v35 = vand.u32 (!%p288_p2), 7, %v2362_v31  ;;  %v2776_v36 = vand.u32 (!%p288_p2), 7, %v2365_v32  ;;  %vm572_vm2 = vcmp.ge.s32.totalorder (!%p288_p2), %v480_v33, 1 }
   0xd   : > { %s2798_s10 = smov (!%p323_p3, %s1863_s10), 1  ;;  %v1879_v43 = vsel %vm572_vm2, 1.0, %v2237_v42  ;;  %v2772_v47 = vand.u32 7, %v2374_v37  ;;  %v2771_v48 = vand.u32 7, %v2377_v38  ;;  %v2775_v52 = vand.u32 7, %v2384_v39 }
   0xe   : > { %s1954_s15 = sshll.u32 %s2798_s10, 6  ;;  %vm573_vm3 = vcmp.ge.s32.totalorder %v487_v34, 1  ;;  %vm574_vm4 = vcmp.ge.s32.totalorder %v2777_v35, 1  ;;  %vm575_vm5 = vcmp.ge.s32.totalorder %v2776_v36, 1  ;;  %v2774_v53 = vand.u32 7, %v2387_v40 }
   0xf   : > { %s327_s18 = scalar_lea.vmem %s2761_s0, %s1954_s15  ;;  %v1880_v45 = vsel %vm573_vm3, 1.0, %v2237_v42  ;;  %v1881_v46 = vsel %vm574_vm4, 1.0, %v2237_v42  ;;  %v1882_v51 = vsel %vm575_vm5, 1.0, %v2237_v42  ;;  %vm578_vm9 = vcmp.ge.s32.totalorder %v2772_v47, 1  ;;  %vm2487_vm3 = vmand %vm677_vm14, %vm637_vm13  ;;  %s332_s17 = scalar_lea.vmem %s2770_s9, %s1954_s15 }
  0x10   : > { %v2310_v2 = vld [vmem:[%s327_s18] sm:$0xff]  ;;  %v2312_v3 = vld [vmem:[%s327_s18 + $0x8] sm:$0xff]  ;;  %v2314_v4 = vld [vmem:[%s327_s18 + $0x10] sm:$0xff]  ;;  %v2402_v58 = vpack.c.bf16 %v1880_v45, %v1879_v43  ;;  %v2404_v60 = vpack.c.bf16 %v1882_v51, %v1881_v46  ;;  %vm2410_vm10 = vcmp.ge.s32.totalorder %v2771_v48, 1  ;;  %vm576_vm11 = vcmp.ge.s32.totalorder %v2775_v52, 1 }
  0x11   : > { %v342_v5 = vmax.f32 %v2310_v2, 0.0  ;;  %v343_v6 = vmax.f32 %v2312_v3, 0.0  ;;  %v2318_v7 = vld [vmem:[%s327_s18 + $0x18] sm:$0xff]  ;;  %v344_v8 = vmax.f32 %v2314_v4, 0.0  ;;  %v2321_v9 = vld [vmem:[%s327_s18 + $0x20] sm:$0xff]  ;;  %v2323_v10 = vld [vmem:[%s327_s18 + $0x28] sm:$0xff] }
  0x12   : > { %v345_v11 = vmax.f32 %v2318_v7, 0.0  ;;  %v346_v12 = vmax.f32 %v2321_v9, 0.0  ;;  %v347_v13 = vmax.f32 %v2323_v10, 0.0  ;;  %v2328_v15 = vld [vmem:[%s327_s18 + $0x30] sm:$0xff]  ;;  %v2330_v16 = vld [vmem:[%s327_s18 + $0x38] sm:$0xff]  ;;  %vm577_vm12 = vcmp.ge.s32.totalorder %v2774_v53, 1 }
  0x13   : > { %v350_v14 = vpack.c.bf16 %v343_v6, %v342_v5  ;;  %v348_v19 = vmax.f32 %v2328_v15, 0.0  ;;  %v349_v20 = vmax.f32 %v2330_v16, 0.0  ;;  %v2421_v6 = vsel %vm688_vm1, %v632_v26, 0 }
  0x14   : > { %v351_v17 = vpack.c.bf16 %v345_v11, %v344_v8  ;;  %v352_v18 = vpack.c.bf16 %v347_v13, %v346_v12  ;;  %v793_v8 = vsel %vm688_vm1, %v628_v27, 0  ;;  %v1885_v11 = vsel %vm578_vm9, 1.0, %v2237_v42 }
  0x15   : > { %2022 = vmatprep.mubr.msk.bf16.mxu0 %vm377_vm0, %v350_v14  ;;  %v353_v21 = vpack.c.bf16 %v349_v20, %v348_v19  ;;  %v1883_v14 = vsel %vm576_vm11, 1.0, %v2237_v42  ;;  %vm860_vm2 = vsmask.f32 3328  ;;  %vm1169_vm4 = vsmask.f32 7424 }
  0x16   : > { %2023 = vmatmul.mubr.msk.bf16.vlgmr.msra.gmra.mrb[0].mxu0 %vm377_vm0, %v351_v17  ;;  %v1884_v17 = vsel %vm577_vm12, 1.0, %v2237_v42  ;;  %vm2553_vm5 = vcmp.le.s32.totalorder %v480_v33, 6  ;;  %vm2559_vm8 = vcmp.le.s32.totalorder %v487_v34, 6 }
  0x17   : > { %2026 = vmatprep.mubr.msk.bf16.mxu0 %vm377_vm0, %v352_v18  ;;  %2031 = vmatpush3.bf16.msra.mxu0 %v713_v23  ;;  %v1886_v18 = vsel %vm2410_vm10, 1.0, %v2237_v42  ;;  %v2448_v46 = vpack.c.bf16 %v1884_v17, %v1883_v14 }
  0x18   : > { %2207 = vmatprep.subr.msk.bf16.mxu0 %vm688_vm1, %v628_v27 }
  0x1e   : > { %2027 = vmatmul.mubr.msk.bf16.gmra.mrb[4].mxu0 %vm377_vm0, %v353_v21 }
  0xe9   : > { %v2024_v44 = vpop.f32.mrb[0].mxu0 }
  0xea   : > { %v433_v49 = vadd.f32 %v2024_v44, %v1872_v41  ;;  %v424_v50 = vpop.f32.mrb[1].mxu0 }
  0xeb   : > { %v425_v54 = vadd.f32 %v1872_v41, %v424_v50  ;;  %v2025_v55 = vpop.f32.mrb[2].mxu0 }
  0xec   : > { %v436_v56 = vadd.f32 %v2025_v55, %v1872_v41  ;;  %v427_v57 = vpop.f32.mrb[3].mxu0  ;;  %v457_v62 = vmax.f32 %v433_v49, 0.0  ;;  %v2450_v49 = vpack.c.bf16 %v1886_v18, %v1885_v11  ;;  %v2470_v11 = vld [vmem:[%s2764_s3 + $0x8] sm:$0xf] }
  0xed   : > { %v428_v59 = vadd.f32 %v1872_v41, %v427_v57  ;;  %v455_v0 = vmax.f32 %v425_v54, 0.0 }
  0xee   : > { %v458_v63 = vmax.f32 %v436_v56, 0.0 }
  0xef   : > { %v456_v1 = vmax.f32 %v428_v59, 0.0 }
  0xf0   : > { %v2418_v5 = vpack.c.bf16 %v458_v63, %v457_v62 }
  0xf1   : > { %v2425_v12 = vpack.c.bf16 %v456_v1, %v455_v0  ;;  %v2028_v13 = vpop.f32.mrb[4].mxu0 }
  0xf2   : > { %v2433_v19 = vshrl.u32 %v2418_v5, 16  ;;  %v2436_v20 = vshll.u32 %v2418_v5, 16  ;;  %v690_v21 = vrot.slane %v2418_v5, 4  ;;  %v449_v22 = vadd.f32 %v2028_v13, %v1872_v41  ;;  %v440_v23 = vpop.f32.mrb[5].mxu0 }
  0xf3   : > { %v2440_v24 = vshrl.u32 %v2425_v12, 16  ;;  %v2443_v25 = vshll.u32 %v2425_v12, 16  ;;  %v441_v26 = vadd.f32 %v1872_v41, %v440_v23  ;;  %v2029_v27 = vpop.f32.mrb[6].mxu0  ;;  %v689_v28 = vrot.slane %v2425_v12, 4 }
  0xf4   : > { %v649_v43 = vrot.slane %v2433_v19, 3  ;;  %v652_v44 = vrot.slane %v2436_v20, 4  ;;  %v443_v45 = vpop.f32.mrb[7].mxu0  ;;  %v461_v50 = vmax.f32 %v449_v22, 0.0  ;;  %v452_v54 = vadd.f32 %v2029_v27, %v1872_v41 }
  0xf5   : > { %v459_v51 = vmax.f32 %v441_v26, 0.0  ;;  %v444_v55 = vadd.f32 %v1872_v41, %v443_v45  ;;  %v699_v56 = vsel %vm688_vm1, 0, %v689_v28  ;;  %v2454_v57 = vsel %vm688_vm1, %v689_v28, %v690_v21 }
  0xf6   : > { %v975_v59 = vrot.slane %v2440_v24, 7  ;;  %v977_v61 = vrot.slane %v2433_v19, 7  ;;  %v462_v62 = vmax.f32 %v452_v54, 0.0  ;;  %2032 = vmatprep.mubr.msk.bf16.mxu0 %vm700_vm6, %v699_v56  ;;  %v641_v41 = vrot.slane %v2440_v24, 3 }
  0xf7   : > { %v460_v63 = vmax.f32 %v444_v55, 0.0  ;;  %v644_v1 = vrot.slane %v2443_v25, 4  ;;  %v864_v13 = vrot.slane %v2433_v19, 4  ;;  %v865_v14 = vrot.slane %v2436_v20, 5  ;;  %2033 = vmatmul.mubr.msk.bf16.vlgmr.msra.gmra.mrb[8].mxu0 %vm700_vm6, %v2454_v57 }
  0xf8   : > { %v976_v17 = vor.u32 %v975_v59, %v2443_v25  ;;  %v978_v18 = vor.u32 %v977_v61, %v2436_v20  ;;  %v2478_v22 = vpack.c.bf16 %v462_v62, %v461_v50  ;;  %v653_v27 = vor.u32 %v652_v44, %v649_v43  ;;  %2041 = vmatpush3.bf16.msra.mxu0 %v793_v8 }
  0xf9   : > { %v2480_v23 = vpack.c.bf16 %v460_v63, %v459_v51  ;;  %v645_v26 = vor.u32 %v644_v1, %v641_v41  ;;  %v861_v55 = vrot.slane %v2440_v24, 4  ;;  %v862_v50 = vrot.slane %v2443_v25, 5  ;;  %2208 = vmatprep.subr.msk.bf16.mxu0 %vm688_vm1, %v2470_v11 }
  0xfa   : > { %v992_v28 = vsel %vm2461_vm15, 0, %v976_v17  ;;  %v979_v45 = vsel %vm974_vm7, %v975_v59, %v978_v18  ;;  %v2496_v8 = vshrl.u32 %v2478_v22, 16  ;;  %v1170_v51 = vrot.slane %v2443_v25, 1 }
  0xfb   : > { %v656_v43 = vshrl.u32 %v2480_v23, 16  ;;  %v659_v44 = vshll.u32 %v2480_v23, 16  ;;  %v2502_v56 = vshll.u32 %v2478_v22, 16  ;;  %v993_v59 = vmul.bf16 %v992_v28, %v2402_v58 }
  0xfc   : > { %v692_v62 = vrot.slane %v2480_v23, 4  ;;  %v2773_v63 = vrot.slane %v2478_v22, 4  ;;  %v994_v0 = vmul.bf16 %v979_v45, %v2404_v60  ;;  %v2509_v41 = vsel %vm637_vm13, %v645_v26, %v653_v27  ;;  %v633_v45 = vld [vmem:[%s2764_s3 + $0x14] sm:$0xf] }
  0xfd   : > { %v679_v1 = vsel %vm2487_vm3, 0, %v645_v26  ;;  %v980_v17 = vrot.slane %v656_v43, 7  ;;  %2062 = vmatprep.mubr.msk.bf16.mxu1 %vm700_vm6, %v993_v59  ;;  %v866_v48 = vor.u32 %v865_v14, %v864_v13  ;;  %v658_v59 = vrot.slane %v656_v43, 3 }
  0xfe   : > { %v2515_v25 = vsel %vm688_vm1, %v690_v21, %v692_v62  ;;  %v2520_v18 = vsel %vm688_vm1, %v692_v62, %v2773_v63  ;;  %v680_v28 = vmul.bf16 %v679_v1, %v2402_v58  ;;  %2063 = vmatmul.mubr.msk.bf16.vlgmr.msra.gmra.mrb[0].mxu1 %vm700_vm6, %v994_v0  ;;  %v983_v21 = vrot.slane %v2496_v8, 7 }
  0xff   : > { %2036 = vmatprep.mubr.msk.bf16.mxu0 %vm700_vm6, %v2515_v25  ;;  %v981_v26 = vor.u32 %v980_v17, %v659_v44  ;;  %v661_v47 = vrot.slane %v659_v44, 4  ;;  %2071 = vmatpush3.bf16.msra.mxu1 %v2421_v6  ;;  %v667_v62 = vrot.slane %v2496_v8, 3  ;;  %v670_v1 = vrot.slane %v2502_v56, 4 }
 0x100   : > { %2037 = vmatmul.mubr.msk.bf16.gmra.mrb[12].mxu0 %vm700_vm6, %v2520_v18  ;;  %v863_v13 = vor.u32 %v862_v50, %v861_v55  ;;  %v1171_v14 = vor.u32 %v1170_v51, %v2440_v24  ;;  %v984_v63 = vor.u32 %v983_v21, %v2502_v56  ;;  %2211 = vmatprep.subr.msk.bf16.mxu1 %vm688_vm1, %v633_v45  ;;  %v1172_v6 = vrot.slane %v2436_v20, 1  ;;  %v634_v20 = vld [vmem:[%s2764_s3 + $0x18] sm:$0xf] }
 0x101   : > { %2042 = vmatprep.mubr.msk.bf16.mxu0 %vm700_vm6, %v680_v28  ;;  %v982_v0 = vsel %vm974_vm7, %v977_v61, %v981_v26  ;;  %v662_v53 = vor.u32 %v661_v47, %v658_v59  ;;  %v1175_v52 = vrot.slane %v659_v44, 1  ;;  %v2542_v35 = vor.u32 %v670_v1, %v667_v62 }
 0x102   : > { %v995_v36 = vmul.bf16 %v982_v0, %v2448_v46  ;;  %v2545_v55 = vsel %vm860_vm2, %v863_v13, %v866_v48  ;;  %v985_v24 = vsel %vm974_vm7, %v980_v17, %v984_v63  ;;  %v1173_v33 = vsel %vm1169_vm4, %v1171_v14, %v1172_v6  ;;  %vm2597_vm7 = vmand %vm688_vm1, %vm860_vm2 }
 0x103   : > { %v2549_v50 = vsel %vm637_vm13, %v653_v27, %v662_v53  ;;  %v2566_v61 = vsel %vm637_vm13, %v662_v53, %v2542_v35  ;;  %v899_v27 = vsel %vm688_vm1, %v2470_v11, 0  ;;  %v996_v29 = vmul.bf16 %v985_v24, %v2450_v49 }
 0x104   : > { %2066 = vmatprep.mubr.msk.bf16.mxu1 %vm700_vm6, %v995_v36  ;;  %v1174_v51 = vor.u32 %v1172_v6, %v2433_v19  ;;  %v868_v30 = vrot.slane %v656_v43, 4  ;;  %v681_v34 = vmul.bf16 %v2509_v41, %v2404_v60  ;;  %v869_v63 = vrot.slane %v659_v44, 5 }
 0x105   : > { %v1177_v17 = vor.u32 %v1175_v52, %v656_v43  ;;  %v1178_v36 = vrot.slane %v2502_v56, 1  ;;  %v682_v53 = vmul.bf16 %v2549_v50, %v2448_v46  ;;  %v872_v28 = vrot.slane %v2496_v8, 4 }
 0x106   : > { %2067 = vmatmul.mubr.msk.bf16.gmra.mrb[4].mxu1 %vm700_vm6, %v996_v29  ;;  %v1176_v11 = vsel %vm1169_vm4, %v1174_v51, %v1175_v52  ;;  %v873_v26 = vrot.slane %v2502_v56, 5  ;;  %v870_v19 = vor.u32 %v869_v63, %v868_v30  ;;  %v1887_v44 = vsel %vm2553_vm5, 1.0, %v2237_v42 }
 0x107   : > { %2072 = vmatprep.mubr.msk.bf16.mxu1 %vm700_vm6, %v2425_v12  ;;  %v1179_v43 = vsel %vm1169_vm4, %v1177_v17, %v1178_v36  ;;  %v1888_v52 = vsel %vm2559_vm8, 1.0, %v2237_v42  ;;  %v2790_v14 = vand.u32 7, %v2362_v31  ;;  %v2791_v0 = vand.u32 7, %v2365_v32 }
 0x108   : > { %2043 = vmatmul.mubr.msk.bf16.vlgmr.msra.gmra.mrb[8].mxu0 %vm700_vm6, %v681_v34  ;;  %v2593_v56 = vor.u32 %v873_v26, %v872_v28  ;;  %v2602_v21 = vsel %vm860_vm2, %v866_v48, %v870_v19  ;;  %v2608_v62 = vpack.c.bf16 %v1888_v52, %v1887_v44  ;;  %v1205_v6 = vsel %vm688_vm1, %v633_v45, 0  ;;  %v635_v26 = vld [vmem:[%s2764_s3 + $0x1c] sm:$0xf]  ;;  %v636_v52 = vld [vmem:[%s2764_s3 + $0x20] sm:$0xf] }
 0x109   : > { %2046 = vmatprep.mubr.msk.bf16.mxu0 %vm700_vm6, %v682_v53  ;;  %2051 = vmatpush3.bf16.msra.mxu0 %v899_v27  ;;  %vm602_vm9 = vcmp.le.s32.totalorder %v2790_v14, 6  ;;  %vm603_vm10 = vcmp.le.s32.totalorder %v2791_v0, 6  ;;  %v881_v48 = vsel %vm2597_vm7, 0, %v863_v13  ;;  %v2792_v24 = vand.u32 7, %v2384_v39  ;;  %v1931_v0 = vld [vmem:[%s2765_s4] ss:$0 sm:$0xff] }
 0x10a   : > { %v2606_v59 = vsel %vm860_vm2, %v870_v19, %v2593_v56  ;;  %v1455_v1 = vsel %vm2597_vm7, %v2593_v56, 0  ;;  %v2793_v47 = vand.u32 7, %v2387_v40  ;;  %v683_v31 = vmul.bf16 %v2566_v61, %v2450_v49 }
 0x10b   : > { %vm604_vm11 = vcmp.le.s32.totalorder %v2792_v24, 6  ;;  %v1889_v32 = vsel %vm602_vm9, 1.0, %v2237_v42  ;;  %v1890_v45 = vsel %vm603_vm10, 1.0, %v2237_v42  ;;  %v882_v39 = vmul.bf16 %v881_v48, %v2608_v62 }
 0x10c   : > { %vm605_vm12 = vcmp.le.s32.totalorder %v2793_v47, 6  ;;  %v1891_v40 = vsel %vm604_vm11, 1.0, %v2237_v42  ;;  %v2794_v29 = vand.u32 7, %v2374_v37  ;;  %v2795_v51 = vand.u32 7, %v2377_v38 }
 0x10d   : > { %v1892_v13 = vsel %vm605_vm12, 1.0, %v2237_v42  ;;  %vm1185_vm15 = vcmask 1047552   ;;  %v1180_v28 = vor.u32 %v1178_v36, %v2496_v8  ;;  %v1282_v8 = vmul.bf16 %v2509_v41, %v2402_v58 }
 0x10e   : > { %2073 = vmatmul.mubr.msk.bf16.vlgmr.msra.gmra.mrb[0].mxu1 %vm700_vm6, %v2418_v5  ;;  %v625_v5 = vpack.c.bf16 %v1890_v45, %v1889_v32  ;;  %v626_v27 = vpack.c.bf16 %v1892_v13, %v1891_v40  ;;  %vm606_vm13 = vcmp.le.s32.totalorder %v2794_v29, 6  ;;  %vm607_vm14 = vcmp.le.s32.totalorder %v2795_v51, 6  ;;  %vm1186_vm2 = vmand %vm1185_vm15, %vm1169_vm4 }
 0x10f   : > { %2081 = vmatpush3.bf16.msra.mxu1 %v1205_v6  ;;  %2076 = vmatprep.mubr.msk.bf16.mxu1 %vm700_vm6, %v2480_v23  ;;  %v1188_v23 = vmul.bf16 %v1173_v33, %v2608_v62  ;;  %v1893_v63 = vsel %vm606_vm13, 1.0, %v2237_v42  ;;  %v1894_v17 = vsel %vm607_vm14, 1.0, %v2237_v42  ;;  %v1299_v33 = vsel %vm688_vm1, %v634_v20, 0 }
 0x110   : > { %2047 = vmatmul.mubr.msk.bf16.gmra.mrb[12].mxu0 %vm700_vm6, %v683_v31  ;;  %2212 = vmatprep.subr.msk.bf16.mxu1 %vm688_vm1, %v634_v20  ;;  %v883_v30 = vmul.bf16 %v2545_v55, %v625_v5  ;;  %v884_v34 = vmul.bf16 %v2602_v21, %v626_v27  ;;  %v627_v37 = vpack.c.bf16 %v1894_v17, %v1893_v63  ;;  %v1281_v58 = vsel %vm2487_vm3, %v2542_v35, 0 }
 0x111   : > { %2052 = vmatprep.mubr.msk.bf16.mxu0 %vm700_vm6, %v882_v39  ;;  %v1189_v38 = vmul.bf16 %v1176_v11, %v625_v5  ;;  %v1190_v53 = vmul.bf16 %v1179_v43, %v626_v27  ;;  %v1187_v11 = vsel %vm1186_vm2, %v1180_v28, 0  ;;  %v1283_v36 = vmul.bf16 %v2549_v50, %v2404_v60 }
 0x112   : > { %v885_v42 = vmul.bf16 %v2606_v59, %v627_v37  ;;  %v1191_v19 = vmul.bf16 %v1187_v11, %v627_v37  ;;  %v1379_v43 = vsel %vm688_vm1, %v635_v26, 0  ;;  %v1284_v44 = vmul.bf16 %v2566_v61, %v2448_v46 }
 0x113   : > { %v1285_v60 = vmul.bf16 %v1281_v58, %v2450_v49  ;;  %v1473_v46 = vsel %vm688_vm1, %v636_v52, 0  ;;  %v2796_v41 = vrot.slane %v2478_v22, 4  ;;  %v1456_v49 = vmul.bf16 %v2545_v55, %v2608_v62  ;;  %v2227_v55 = vld [vmem:[%s2768_s7] sm:$0xff]  }
 0x114   : > { %v1458_v54 = vmul.bf16 %v2606_v59, %v626_v27 }
 0x115   : > { %v1375_v35 = vsel %vm688_vm1, %v2796_v41, 0 }
 0x116   : > { %2077 = vmatmul.mubr.msk.bf16.gmra.mrb[4].mxu1 %vm700_vm6, %v2478_v22  ;;  %v1459_v22 = vmul.bf16 %v1455_v1, %v627_v37 }
 0x117   : > { %2082 = vmatprep.mubr.msk.bf16.mxu1 %vm700_vm6, %v1188_v23 }
 0x118   : > { %2053 = vmatmul.mubr.msk.bf16.vlgmr.msra.gmra.mrb[8].mxu0 %vm700_vm6, %v883_v30 }
 0x119   : > { %2056 = vmatprep.mubr.msk.bf16.mxu0 %vm700_vm6, %v884_v34 }
 0x11e   : > { %2083 = vmatmul.mubr.msk.bf16.vlgmr.msra.gmra.mrb[0].mxu1 %vm700_vm6, %v1189_v38 }
 0x11f   : > { %2091 = vmatpush3.bf16.msra.mxu1 %v1299_v33  ;;  %2086 = vmatprep.mubr.msk.bf16.mxu1 %vm700_vm6, %v1190_v53 }
 0x120   : > { %2057 = vmatmul.mubr.msk.bf16.gmra.mrb[12].mxu0 %vm700_vm6, %v885_v42  ;;  %2213 = vmatprep.subr.msk.bf16.mxu1 %vm688_vm1, %v635_v26 }
 0x126   : > { %2087 = vmatmul.mubr.msk.bf16.gmra.mrb[4].mxu1 %vm700_vm6, %v1191_v19 }
 0x127   : > { %2092 = vmatprep.mubr.msk.bf16.mxu1 %vm700_vm6, %v1282_v8 }
 0x12e   : > { %2093 = vmatmul.mubr.msk.bf16.vlgmr.msra.gmra.mrb[0].mxu1 %vm700_vm6, %v1283_v36 }
 0x12f   : > { %2101 = vmatpush3.bf16.msra.mxu1 %v1379_v43  ;;  %2096 = vmatprep.mubr.msk.bf16.mxu1 %vm700_vm6, %v1284_v44 }
 0x130   : > { %2214 = vmatprep.subr.msk.bf16.mxu1 %vm688_vm1, %v636_v52 }
 0x136   : > { %2097 = vmatmul.mubr.msk.bf16.gmra.mrb[4].mxu1 %vm700_vm6, %v1285_v60  ;;  %v2228_v60 = vld [vmem:[%s2768_s7 + $0x8] sm:$0xff]  }
 0x137   : > { %2102 = vmatprep.mubr.msk.bf16.mxu1 %vm700_vm6, %v2454_v57  ;;  %v1457_v57 = vmul.bf16 %v2602_v21, %v625_v5 }
 0x13e   : > { %2103 = vmatmul.mubr.msk.bf16.vlgmr.msra.gmra.mrb[0].mxu1 %vm700_vm6, %v2515_v25  ;;  %v1575_v25 = vld [vmem:[%s2766_s5] sm:$0xf] }
 0x13f   : > { %2111 = vmatpush3.bf16.msra.mxu1 %v1473_v46  ;;  %2106 = vmatprep.mubr.msk.bf16.mxu1 %vm700_vm6, %v2520_v18  ;;  %v1596_v18 = vsel %vm688_vm1, %v1575_v25, 0  ;;  %v1932_v46 = vld [vmem:[%s2767_s6] ss:$0 sm:$0xff] }
 0x140   : > { %2215 = vmatprep.subr.msk.bf16.mxu0 %vm688_vm1, %v1575_v25  ;;  %vm1799_vm1 = vcmask 23552  }
 0x141   : > { %2121 = vmatpush3.bf16.msra.mxu0 %v1596_v18 }
 0x142   : > { %2130 = vmatprep.subr.bf16.mxu0 %v2227_v55 }
 0x146   : > { %2107 = vmatmul.mubr.msk.bf16.gmra.mrb[4].mxu1 %vm700_vm6, %v1375_v35 }
 0x147   : > { %2112 = vmatprep.mubr.msk.bf16.mxu1 %vm700_vm6, %v1456_v49 }
 0x14e   : > { %2113 = vmatmul.mubr.msk.bf16.vlgmr.msra.gmra.mrb[0].mxu1 %vm700_vm6, %v1457_v57 }
 0x14f   : > { %2116 = vmatprep.mubr.msk.bf16.mxu1 %vm700_vm6, %v1458_v54 }
 0x156   : > { %2117 = vmatmul.mubr.msk.bf16.gmra.mrb[4].mxu1 %vm700_vm6, %v1459_v22 }
 0x1eb   : > { %v2054_v50 = vpop.f32.mrb[8].mxu0 }
 0x1ec   : > { %v935_v61 = vpop.f32.mrb[9].mxu0 }
 0x1ed   : > { %v2055_v56 = vpop.f32.mrb[10].mxu0 }
 0x1ee   : > { %v938_v12 = vpop.f32.mrb[11].mxu0 }
 0x1f3   : > { %v2058_v21 = vpop.f32.mrb[12].mxu0 }
 0x1f4   : > { %v951_v59 = vpop.f32.mrb[13].mxu0 }
 0x1f5   : > { %v2059_v62 = vpop.f32.mrb[14].mxu0 }
 0x1f6   : > { %v954_v1 = vpop.f32.mrb[15].mxu0 }
 0x221   : > { %v2114_v14 = vpop.f32.mrb[0].mxu1 }
 0x222   : > { %v2142_v6 = vadd.f32 %v2114_v14, %v2054_v50  ;;  %v1509_v48 = vpop.f32.mrb[1].mxu1 }
 0x223   : > { %v2143_v24 = vadd.f32 %v1509_v48, %v935_v61  ;;  %v2115_v47 = vpop.f32.mrb[2].mxu1 }
 0x224   : > { %v1557_v20 = vadd.f32 %v2142_v6, %v1931_v0  ;;  %v2144_v31 = vadd.f32 %v2115_v47, %v2055_v56  ;;  %v1512_v32 = vpop.f32.mrb[3].mxu1 }
 0x225   : > { %v1555_v45 = vadd.f32 %v2143_v24, %v1931_v0  ;;  %v2145_v39 = vadd.f32 %v1512_v32, %v938_v12 }
 0x226   : > { %v1558_v40 = vadd.f32 %v2144_v31, %v1931_v0  ;;  %v1565_v5 = vmax.f32 %v1557_v20, 0.0 }
 0x227   : > { %v1556_v13 = vadd.f32 %v2145_v39, %v1931_v0  ;;  %v1563_v29 = vmax.f32 %v1555_v45, 0.0 }
 0x228   : > { %v1566_v27 = vmax.f32 %v1558_v40, 0.0 }
 0x229   : > { %v1564_v51 = vmax.f32 %v1556_v13, 0.0  ;;  %v2118_v23 = vpop.f32.mrb[4].mxu1 }
 0x22a   : > { %v1572_v30 = vpack.c.bf16 %v1566_v27, %v1565_v5  ;;  %v2146_v34 = vadd.f32 %v2118_v23, %v2058_v21  ;;  %v1525_v63 = vpop.f32.mrb[5].mxu1 }
 0x22b   : > { %v1571_v17 = vpack.c.bf16 %v1564_v51, %v1563_v29  ;;  %v2147_v37 = vadd.f32 %v1525_v63, %v951_v59  ;;  %v2119_v38 = vpop.f32.mrb[6].mxu1 }
 0x22c   : > { %v1561_v33 = vadd.f32 %v2146_v34, %v1931_v0  ;;  %v2148_v53 = vadd.f32 %v2119_v38, %v2059_v62  ;;  %v1528_v28 = vpop.f32.mrb[7].mxu1 }
 0x22d   : > { %v1559_v26 = vadd.f32 %v2147_v37, %v1931_v0  ;;  %v2149_v42 = vadd.f32 %v1528_v28, %v954_v1  ;;  %2122 = vmatprep.mubr.msk.bf16.mxu0 %vm700_vm6, %v1571_v17 }
 0x22e   : > { %v1562_v11 = vadd.f32 %v2148_v53, %v1931_v0  ;;  %2123 = vmatmul.mubr.msk.bf16.vlgmr.msra.gmra.mrb[16].mxu0 %vm700_vm6, %v1572_v30  ;;  %v1569_v8 = vmax.f32 %v1561_v33, 0.0 }
 0x22f   : > { %v1560_v19 = vadd.f32 %v2149_v42, %v1931_v0  ;;  %2131 = vmatpush3.bf16.msra.mxu0 %v2227_v55  ;;  %v1567_v43 = vmax.f32 %v1559_v26, 0.0 }
 0x230   : > { %v1570_v36 = vmax.f32 %v1562_v11, 0.0  ;;  %2132 = vmatprep.subr.bf16.mxu0 %v2228_v60 }
 0x231   : > { %v1568_v44 = vmax.f32 %v1560_v19, 0.0 }
 0x232   : > { %v1574_v52 = vpack.c.bf16 %v1570_v36, %v1569_v8 }
 0x233   : > { %v1573_v58 = vpack.c.bf16 %v1568_v44, %v1567_v43  ;;  %2133 = vmatpush3.bf16.msra.mxu0 %v2228_v60 }
 0x235   : > { %2126 = vmatprep.mubr.msk.bf16.mxu0 %vm700_vm6, %v1573_v58 }
 0x236   : > { %2127 = vmatmul.mubr.msk.bf16.gmra.mrb[20].mxu0 %vm700_vm6, %v1574_v52 }
 0x301   : > { %v2124_v41 = vpop.f32.mrb[16].mxu0 }
 0x302   : > { %v1641_v35 = vadd.f32 %v2124_v41, %v1932_v46  ;;  %v1632_v49 = vpop.f32.mrb[17].mxu0 }
 0x303   : > { %v1633_v57 = vadd.f32 %v1932_v46, %v1632_v49  ;;  %v2125_v54 = vpop.f32.mrb[18].mxu0 }
 0x304   : > { %v1665_v22 = vadd.f32 %v1641_v35, %v2314_v4  ;;  %v1644_v25 = vadd.f32 %v2125_v54, %v1932_v46  ;;  %v1635_v18 = vpop.f32.mrb[19].mxu0 }
 0x305   : > { %v1663_v55 = vadd.f32 %v1633_v57, %v2310_v2  ;;  %v1636_v50 = vadd.f32 %v1932_v46, %v1635_v18 }
 0x306   : > { %v1666_v61 = vadd.f32 %v1644_v25, %v2318_v7  ;;  %v1673_v12 = vmax.f32 %v1665_v22, 0.0 }
 0x307   : > { %v1664_v56 = vadd.f32 %v1636_v50, %v2312_v3  ;;  %v1671_v59 = vmax.f32 %v1663_v55, 0.0 }
 0x308   : > { %v1674_v21 = vmax.f32 %v1666_v61, 0.0 }
 0x309   : > { %v1672_v62 = vmax.f32 %v1664_v56, 0.0  ;;  %v2128_v1 = vpop.f32.mrb[20].mxu0 }
 0x30a   : > { %v1680_v14 = vpack.c.bf16 %v1674_v21, %v1673_v12  ;;  %v1657_v0 = vadd.f32 %v2128_v1, %v1932_v46  ;;  %v1648_v6 = vpop.f32.mrb[21].mxu0 }
 0x30b   : > { %v1679_v48 = vpack.c.bf16 %v1672_v62, %v1671_v59  ;;  %v1649_v24 = vadd.f32 %v1932_v46, %v1648_v6  ;;  %v2129_v4 = vpop.f32.mrb[22].mxu0 }
 0x30c   : > { %v1669_v47 = vadd.f32 %v1657_v0, %v2328_v15  ;;  %v1660_v20 = vadd.f32 %v2129_v4, %v1932_v46  ;;  %v1651_v2 = vpop.f32.mrb[23].mxu0 }
 0x30d   : > { %v1667_v31 = vadd.f32 %v1649_v24, %v2321_v9  ;;  %v1652_v7 = vadd.f32 %v1932_v46, %v1651_v2  ;;  %2134 = vmatprep.mubr.msk.bf16.mxu0 %vm377_vm0, %v1679_v48  ;;  %v1937_v9 = vld [vmem:[%s2769_s8] ss:$0 sm:$0xff] }
 0x30e   : > { %v1670_v3 = vadd.f32 %v1660_v20, %v2330_v16  ;;  %2135 = vmatmul.mubr.msk.bf16.vlgmr.msra.gmra.mrb[24].mxu0 %vm377_vm0, %v1680_v14  ;;  %v1677_v45 = vmax.f32 %v1669_v47, 0.0 }
 0x30f   : > { %v1668_v32 = vadd.f32 %v1652_v7, %v2323_v10  ;;  %v1675_v40 = vmax.f32 %v1667_v31, 0.0 }
 0x310   : > { %v1678_v39 = vmax.f32 %v1670_v3, 0.0 }
 0x311   : > { %v1676_v13 = vmax.f32 %v1668_v32, 0.0 }
 0x312   : > { %v1682_v5 = vpack.c.bf16 %v1678_v39, %v1677_v45 }
 0x313   : > { %v1681_v15 = vpack.c.bf16 %v1676_v13, %v1675_v40 }
 0x315   : > { %2138 = vmatprep.mubr.msk.bf16.mxu0 %vm377_vm0, %v1681_v15 }
 0x316   : > { %2139 = vmatmul.mubr.msk.bf16.gmra.mrb[28].mxu0 %vm377_vm0, %v1682_v5 }
 0x3e1   : > { %v2136_v27 = vpop.f32.mrb[24].mxu0 }
 0x3e2   : > { %v1761_v16 = vadd.f32 %v2136_v27, %v1937_v9  ;;  %v1752_v29 = vpop.f32.mrb[25].mxu0 }
 0x3e3   : > { %v1753_v10 = vadd.f32 %v1937_v9, %v1752_v29  ;;  %v2137_v51 = vpop.f32.mrb[26].mxu0 }
 0x3e4   : > { %v1946_v23 = vclamps-f32 %v1761_v16, 1.0  ;;  %v1764_v30 = vadd.f32 %v2137_v51, %v1937_v9  ;;  %v1755_v34 = vpop.f32.mrb[27].mxu0 }
 0x3e5   : > { %v1944_v63 = vclamps-f32 %v1753_v10, 1.0  ;;  %v1756_v17 = vadd.f32 %v1937_v9, %v1755_v34 }
 0x3e6   : > { %1802 = vst.msk [vmem:[%s332_s17 + $0x10] sm:$0xff] %vm1799_vm1, %v1946_v23  ;;  %v1947_v37 = vclamps-f32 %v1764_v30, 1.0 }
 0x3e7   : > { %1800 = vst.msk [vmem:[%s332_s17] sm:$0xff] %vm1799_vm1, %v1944_v63  ;;  %v1945_v38 = vclamps-f32 %v1756_v17, 1.0 }
 0x3e8   : > { %1803 = vst.msk [vmem:[%s332_s17 + $0x18] sm:$0xff] %vm1799_vm1, %v1947_v37 }
 0x3e9   : > { %1801 = vst.msk [vmem:[%s332_s17 + $0x8] sm:$0xff] %vm1799_vm1, %v1945_v38  ;;  %v2140_v33 = vpop.f32.mrb[28].mxu0 }
 0x3ea   : > { %v1777_v53 = vadd.f32 %v2140_v33, %v1937_v9  ;;  %v1768_v28 = vpop.f32.mrb[29].mxu0 }
 0x3eb   : > { %v1769_v26 = vadd.f32 %v1937_v9, %v1768_v28  ;;  %v2141_v42 = vpop.f32.mrb[30].mxu0 }
 0x3ec   : > { %v1950_v11 = vclamps-f32 %v1777_v53, 1.0  ;;  %v1780_v19 = vadd.f32 %v2141_v42, %v1937_v9  ;;  %v1771_v8 = vpop.f32.mrb[31].mxu0 }
 0x3ed   : > { %v1948_v36 = vclamps-f32 %v1769_v26, 1.0  ;;  %v1772_v43 = vadd.f32 %v1937_v9, %v1771_v8 }
 0x3ee   : > { %1806 = vst.msk [vmem:[%s332_s17 + $0x30] sm:$0xff] %vm1799_vm1, %v1950_v11  ;;  %v1951_v44 = vclamps-f32 %v1780_v19, 1.0 }
 0x3ef   : > { %1804 = vst.msk [vmem:[%s332_s17 + $0x20] sm:$0xff] %vm1799_vm1, %v1948_v36  ;;  %v1949_v52 = vclamps-f32 %v1772_v43, 1.0 }
 0x3f0   : > { %1807 = vst.msk [vmem:[%s332_s17 + $0x38] sm:$0xff] %vm1799_vm1, %v1951_v44 }
 0x3f1   : > { %1805 = vst.msk [vmem:[%s332_s17 + $0x28] sm:$0xff] %vm1799_vm1, %v1949_v52 }
 0x3f2 PF: > { %s19_s30 = sadd.s32 1, %s2235_s30  }
 0x3f3   : > { %p16_p4 = scmp.ge.s32.totalorder %s19_s30, 4  }
 0x3f5   :  { %18 = sbr.rel (!%p16_p4) target bundleno = 1 (0x1), region = 86 }

</bundles_post_ra>
